<compile_context>
chip_gen: v6e
topology: v6e:2x2x1
jax: 0.10.0
libtpu: 0.0.40
codegen_flags: <defaults>
</compile_context>

<pallas_src>
import functools

import jax
import jax.numpy as jnp
from jax.experimental import pallas as pl
from jax.experimental.pallas import tpu as pltpu


# ----------------------------------------------------------------------------
# XLA-side im2col (pure strided slicing, fused by jit; no arithmetic)
# ----------------------------------------------------------------------------
def _im2col_nhwc(x, kh, kw, sh, sw):
    n, h, w, c = x.shape
    ho = (h - kh) // sh + 1
    wo = (w - kw) // sw + 1
    cols = []
    for i in range(kh):
        for j in range(kw):
            cols.append(
                x[:, i : i + (ho - 1) * sh + 1 : sh, j : j + (wo - 1) * sw + 1 : sw, :]
            )
    patches = jnp.concatenate(cols, axis=-1)  # (n, ho, wo, kh*kw*c), (kh,kw,Cin) order
    return patches.reshape(n, ho * wo, kh * kw * c), ho, wo


# ----------------------------------------------------------------------------
# Kernel 1: conv1 (8x8 / s4) as matmul + bias + ReLU, gridded over batch
# ----------------------------------------------------------------------------
def _conv1_kernel(p_ref, w_ref, b_ref, o_ref):
    # p: (1, P, K) bf16, w: (K, 32) bf16, b: (1, 32) f32 -> o: (1, P, 32) bf16
    acc = jnp.dot(p_ref[0], w_ref[...], preferred_element_type=jnp.float32)
    o_ref[0] = jnp.maximum(acc + b_ref[...], 0.0).astype(o_ref.dtype)


def _conv1_head(p1, w, b):
    n, m1, k1 = p1.shape
    co = w.shape[1]
    flops = 2 * n * m1 * k1 * co
    bytes_accessed = p1.size * 2 + w.size * 2 + b.size * 4 + n * m1 * co * 2
    return pl.pallas_call(
        _conv1_kernel,
        out_shape=jax.ShapeDtypeStruct((n, m1, co), jnp.bfloat16),
        grid_spec=pltpu.PrefetchScalarGridSpec(
            num_scalar_prefetch=0,
            grid=(n,),
            in_specs=[
                pl.BlockSpec((1, m1, k1), lambda i: (i, 0, 0)),
                pl.BlockSpec((k1, co), lambda i: (0, 0)),
                pl.BlockSpec((1, co), lambda i: (0, 0)),
            ],
            out_specs=pl.BlockSpec((1, m1, co), lambda i: (i, 0, 0)),
        ),
        compiler_params=pltpu.CompilerParams(dimension_semantics=("parallel",)),
        cost_estimate=pl.CostEstimate(
            flops=flops, transcendentals=0, bytes_accessed=bytes_accessed
        ),
    )(p1, w, b)


# ----------------------------------------------------------------------------
# Kernel 2: fused tail — conv2 + pad + detector 1x1 (+ te fold) + channel
#           concat + conv3 (3x3 via 9 K=128 taps) + conv4 (1x1); VMEM-resident.
# ----------------------------------------------------------------------------
def _tail_kernel(p2_ref, det_ref, te_ref, w2_ref, b2_ref, wd_ref, bd_ref,
                 wt_ref, w3_ref, b3_ref, w4_ref, b4_ref, o_ref, cat_ref,
                 *, hp, wp):
    f32 = jnp.float32
    bf16 = jnp.bfloat16
    ho, wo = hp - 2, wp - 2
    nout = ho * wo

    # --- conv2 (4x4 / s2) + ReLU, on the precomputed im2col patch matrix ---
    x2 = jnp.dot(p2_ref[0], w2_ref[...], preferred_element_type=f32)
    x2 = jnp.maximum(x2 + b2_ref[...], 0.0)                       # (nout, 64) f32

    # --- detector 1x1 conv + ReLU with the target-encoding concat folded in ---
    te_add = jnp.dot(te_ref[0], wt_ref[...], preferred_element_type=f32)   # (1, 64)
    d = jnp.dot(det_ref[0], wd_ref[...], preferred_element_type=f32)       # (hp*wp, 64)
    d = jnp.maximum(d + te_add + bd_ref[...], 0.0)

    # --- torch.cat([detections, F.pad(x2)], dim=channel), assembled in VMEM ---
    cat_ref[...] = jnp.zeros_like(cat_ref)
    cat_ref[:, :, 0:64] = d.reshape(hp, wp, 64)
    cat_ref[1 : hp - 1, 1 : wp - 1, 64:128] = x2.reshape(ho, wo, 64)

    # --- conv3 (3x3 / s1) + ReLU: 9 accumulating K=128 matmuls over taps ---
    acc = jnp.zeros((nout, 128), f32)
    for t in range(9):
        i, j = t // 3, t % 3
        slab = cat_ref[i : i + ho, j : j + wo, :].astype(bf16).reshape(nout, 128)
        acc = acc + jnp.dot(slab, w3_ref[t], preferred_element_type=f32)
    acc = jnp.maximum(acc + b3_ref[...], 0.0)

    # --- conv4 (1x1, no ReLU) ---
    y4 = jnp.dot(acc.astype(bf16), w4_ref[...], preferred_element_type=f32)
    o_ref[0] = (y4 + b4_ref[...]).astype(o_ref.dtype)


def _fused_tail(p2, det, te, params, hp, wp):
    n, m2, k2 = p2.shape
    cdet = det.shape[2]
    tc = te.shape[2]
    flops = 2 * n * (
        m2 * k2 * 64 + hp * wp * cdet * 64 + tc * 64
        + 9 * m2 * 128 * 128 + m2 * 128 * 32
    )
    bytes_accessed = (
        p2.size * 2 + det.size * 2 + te.size * 2
        + params["conv2_w"].size * 2 + params["det_w"].size * 2
        + params["te_w"].size * 2 + params["conv3_w"].size * 2
        + params["conv4_w"].size * 2 + n * m2 * 32 * 2
        + 4 * (64 + 64 + 128 + 32)
    )
    kern = functools.partial(_tail_kernel, hp=hp, wp=wp)
    return pl.pallas_call(
        kern,
        out_shape=jax.ShapeDtypeStruct((n, m2, 32), jnp.bfloat16),
        grid_spec=pltpu.PrefetchScalarGridSpec(
            num_scalar_prefetch=0,
            grid=(n,),
            in_specs=[
                pl.BlockSpec((1, m2, k2), lambda i: (i, 0, 0)),          # conv2 patches
                pl.BlockSpec((1, hp * wp, cdet), lambda i: (i, 0, 0)),   # detector rows
                pl.BlockSpec((1, 1, tc), lambda i: (i, 0, 0)),           # target enc.
                pl.BlockSpec((k2, 64), lambda i: (0, 0)),                # w2
                pl.BlockSpec((1, 64), lambda i: (0, 0)),                 # b2
                pl.BlockSpec((cdet, 64), lambda i: (0, 0)),              # w_det
                pl.BlockSpec((1, 64), lambda i: (0, 0)),                 # b_det
                pl.BlockSpec((tc, 64), lambda i: (0, 0)),                # w_te
                pl.BlockSpec((9, 128, 128), lambda i: (0, 0, 0)),        # w3 taps
                pl.BlockSpec((1, 128), lambda i: (0, 0)),                # b3
                pl.BlockSpec((128, 32), lambda i: (0, 0)),               # w4
                pl.BlockSpec((1, 32), lambda i: (0, 0)),                 # b4
            ],
            out_specs=pl.BlockSpec((1, m2, 32), lambda i: (i, 0, 0)),
            scratch_shapes=[pltpu.VMEM((hp, wp, 128), jnp.float32)],
        ),
        compiler_params=pltpu.CompilerParams(dimension_semantics=("parallel",)),
        cost_estimate=pl.CostEstimate(
            flops=flops, transcendentals=0, bytes_accessed=bytes_accessed
        ),
    )(p2, det, te,
      params["conv2_w"], params["conv2_b"],
      params["det_w"], params["det_b"], params["te_w"],
      params["conv3_w"], params["conv3_b"],
      params["conv4_w"], params["conv4_b"])


# ----------------------------------------------------------------------------
# Kernel 3: final Linear + ReLU (nn.Flatten's NCHW order is folded into fc_w)
# ----------------------------------------------------------------------------
def _fc_kernel(x_ref, w_ref, b_ref, o_ref):
    acc = jnp.dot(x_ref[...], w_ref[...], preferred_element_type=jnp.float32)
    o_ref[...] = jnp.maximum(acc + b_ref[...], 0.0).astype(o_ref.dtype)


def _fc(x, w, b):
    n, k = x.shape
    co = w.shape[1]
    return pl.pallas_call(
        _fc_kernel,
        out_shape=jax.ShapeDtypeStruct((n, co), jnp.float32),
        in_specs=[pl.BlockSpec(memory_space=pltpu.MemorySpace.VMEM)] * 3,
        out_specs=pl.BlockSpec(memory_space=pltpu.MemorySpace.VMEM),
        cost_estimate=pl.CostEstimate(
            flops=2 * n * k * co, transcendentals=0,
            bytes_accessed=x.size * 2 + w.size * 2 + b.size * 4 + n * co * 4),
    )(x, w, b)


# ----------------------------------------------------------------------------
# Parameters: kaiming-normal-like weights, zero biases (layer_init), with all
# layout conversions done ONCE here (review: hoist re-layouts out of forward).
# ----------------------------------------------------------------------------
def _kaiming(key, shape, fan_in):
    std = (2.0 / float(fan_in)) ** 0.5
    return jax.random.normal(key, shape, dtype=jnp.float32) * std


def init_params(key, *, n_input_rgb, no_classes, det_channels, spatial_out,
                output_size):
    ks = jax.random.split(key, 6)
    bf16 = jnp.bfloat16

    def conv_mat(w):  # (Cout,Cin,kh,kw) -> (kh*kw*Cin, Cout): matches im2col order
        co, ci, kh, kw = w.shape
        return jnp.transpose(w, (2, 3, 1, 0)).reshape(kh * kw * ci, co)

    w1 = _kaiming(ks[0], (32, n_input_rgb, 8, 8), n_input_rgb * 64)
    w2 = _kaiming(ks[1], (64, 32, 4, 4), 32 * 16)
    wdet_full = _kaiming(ks[2], (64, det_channels + no_classes, 1, 1),
                         det_channels + no_classes)
    w3 = _kaiming(ks[3], (128, 128, 3, 3), 128 * 9)
    w4 = _kaiming(ks[4], (32, 128, 1, 1), 128)

    nhw = spatial_out * spatial_out
    fc_in = 32 * nhw
    fc_w = _kaiming(ks[5], (fc_in, output_size), fc_in)  # rows in NCHW flatten order

    # Split the detector 1x1 conv so the target-encoding concat becomes an add.
    wdet = wdet_full[:, :det_channels, 0, 0]   # (64, 85)
    wte = wdet_full[:, det_channels:, 0, 0]    # (64, tc)

    # Reorder fc rows from NCHW flatten order (c*HW + hw) to the row-major
    # (hw*C + c) order the fused tail kernel emits -> no runtime transpose.
    fc_w_folded = fc_w.reshape(32, nhw, output_size).transpose(1, 0, 2).reshape(
        fc_in, output_size)

    # conv3 as 9 (Cin=128, Cout=128) tap matrices, tap index t = i*3 + j.
    w3_taps = jnp.transpose(w3, (2, 3, 1, 0)).reshape(9, 128, 128)

    return {
        "conv1_w": conv_mat(w1).astype(bf16),
        "conv1_b": jnp.zeros((1, 32), jnp.float32),
        "conv2_w": conv_mat(w2).astype(bf16),
        "conv2_b": jnp.zeros((1, 64), jnp.float32),
        "det_w": jnp.transpose(wdet).astype(bf16),   # (85, 64)
        "te_w": jnp.transpose(wte).astype(bf16),     # (tc, 64)
        "det_b": jnp.zeros((1, 64), jnp.float32),
        "conv3_w": w3_taps.astype(bf16),             # (9, 128, 128)
        "conv3_b": jnp.zeros((1, 128), jnp.float32),
        "conv4_w": jnp.transpose(w4[:, :, 0, 0]).astype(bf16),  # (128, 32)
        "conv4_b": jnp.zeros((1, 32), jnp.float32),
        "fc_w": fc_w_folded.astype(bf16),
        "fc_b": jnp.zeros((1, output_size), jnp.float32),
    }


# ----------------------------------------------------------------------------
# Forward pass (rgb path; detector_features supplied in observations)
# ----------------------------------------------------------------------------
@jax.jit
def aimas_cnn_forward(params, observations, target_encoding):
    rgb = observations["rgb"].astype(jnp.float32) * (1.0 / 255.0)
    rgb = rgb.astype(jnp.bfloat16)
    n = rgb.shape[0]

    # cnn_1 conv #1 (8x8 / s4): im2col in XLA, matmul+bias+ReLU in Pallas.
    p1, h1, w1 = _im2col_nhwc(rgb, 8, 8, 4, 4)                  # (n, 225, 192)
    x = _conv1_head(p1, params["conv1_w"], params["conv1_b"])   # (n, 225, 32) bf16
    x = x.reshape(n, h1, w1, 32)

    # conv #2 patch matrix; the matmul itself runs inside the fused tail kernel.
    p2, h2, w2 = _im2col_nhwc(x, 4, 4, 2, 2)                    # (n, 36, 512)

    # Detector branch inputs: detached, NCHW -> (n, H*W, 85) rows (1x1 conv
    # needs no im2col), target encoding kept as a (n, 1, tc) row.
    det = jax.lax.stop_gradient(observations["detector_features"])
    det = jnp.transpose(det, (0, 2, 3, 1))                      # NHWC
    hp, wp = det.shape[1], det.shape[2]
    assert (hp, wp) == (h2 + 2, w2 + 2), "detector grid must match padded conv2 output"
    det = det.reshape(n, hp * wp, det.shape[3]).astype(jnp.bfloat16)
    te = target_encoding.reshape(n, 1, target_encoding.shape[1]).astype(jnp.bfloat16)

    # Fused: conv2 + F.pad + detector 1x1 (+ te fold) + channel concat +
    # conv3 (3x3) + conv4 (1x1) — one pallas_call, activations stay in VMEM.
    y4 = _fused_tail(p2, det, te, params, hp, wp)               # (n, 36, 32) bf16

    # nn.Flatten's NCHW ordering is folded into fc_w, so a plain row-major
    # reshape suffices; Linear + ReLU in Pallas.
    flat = y4.reshape(n, y4.shape[1] * y4.shape[2])
    return _fc(flat, params["fc_w"], params["fc_b"])


# ----------------------------------------------------------------------------
if __name__ == "__main__":
    # rgb 64x64x3 -> conv8/4 -> 15x15 -> conv4/2 -> 6x6 -> pad -> 8x8
    # detector features must be 85ch @ 8x8; conv3 -> 6x6x128, conv4 -> 6x6x32
    # Linear in = 32*6*6 = 1152 (== 32*(cnn_dims+2)^2 in the PyTorch module)
    batch = 2
    H = W = 64
    n_rgb = 3
    no_classes = 4
    det_channels = 765 // (3 * 3)  # 85
    output_size = 32
    spatial_out = 6

    key = jax.random.PRNGKey(0)
    k_rgb, k_det, k_tgt, k_par = jax.random.split(key, 4)

    observations = {
        "rgb": jax.random.uniform(k_rgb, (batch, H, W, n_rgb), jnp.float32, 0.0, 255.0),
        "detector_features": jax.random.uniform(
            k_det, (batch, det_channels, spatial_out + 2, spatial_out + 2),
            jnp.float32, 0.0, 1.0),
    }
    target_encoding = jax.random.uniform(
        k_tgt, (batch, no_classes), jnp.float32, 0.0, 1.0)

    params = init_params(
        k_par,
        n_input_rgb=n_rgb,
        no_classes=no_classes,
        det_channels=det_channels,
        spatial_out=spatial_out,
        output_size=output_size,
    )

    # TODO(synk): the `self.detector.detect(rgb)` fallback calls an external
    # detector object and has no Pallas equivalent; detector_features are
    # supplied directly (the common path in the PyTorch forward).
    out = aimas_cnn_forward(params, observations, target_encoding)
    out = jax.block_until_ready(out)
    assert out.shape == (batch, output_size), out.shape
    print("KERNEL_OK")
</pallas_src>

<mosaic_0001>
module attributes {stable_mosaic.version = 11 : i64} {
  func.func @_conv1_kernel(%arg0: i32, %arg1: memref<1x225x192xbf16, #tpu.memory_space<vmem>>, %arg2: memref<192x32xbf16, #tpu.memory_space<vmem>>, %arg3: memref<1x32xf32, #tpu.memory_space<vmem>>, %arg4: memref<1x225x32xbf16, #tpu.memory_space<vmem>>) attributes {dimension_semantics = [#tpu.dimension_semantics<parallel>], iteration_bounds = array<i64: 2>, scalar_prefetch = 0 : i64, scratch_operands = 0 : i64, tpu.core_type = #tpu.core_type<tc>, window_params = [{transform_indices = @transform_0, window_bounds = array<i64: 1, 225, 192>}, {pipeline_mode = #tpu.pipeline_mode<synchronous>, transform_indices = @transform_1, window_bounds = array<i64: 192, 32>}, {pipeline_mode = #tpu.pipeline_mode<synchronous>, transform_indices = @transform_2, window_bounds = array<i64: 1, 32>}, {transform_indices = @transform_3, window_bounds = array<i64: 1, 225, 32>}]} {
    %c0 = arith.constant 0 : index
    %c0_0 = arith.constant 0 : index
    %c0_1 = arith.constant 0 : index
    %0 = vector.load %arg1[%c0, %c0_0, %c0_1] : memref<1x225x192xbf16, #tpu.memory_space<vmem>>, vector<1x225x192xbf16>
    %1 = vector.shape_cast %0 : vector<1x225x192xbf16> to vector<225x192xbf16>
    %c0_2 = arith.constant 0 : index
    %c0_3 = arith.constant 0 : index
    %2 = vector.load %arg2[%c0_2, %c0_3] : memref<192x32xbf16, #tpu.memory_space<vmem>>, vector<192x32xbf16>
    %cst = arith.constant dense<0.000000e+00> : vector<225x32xf32>
    %3 = tpu.matmul %1, %2, %cst {dimension_numbers = #tpu.dot_dimension_numbers<[1], [0], [0], [1], [0, 0, 1, 1], [], []>} : vector<225x192xbf16>, vector<192x32xbf16>, vector<225x32xf32> -> vector<225x32xf32>
    %c0_4 = arith.constant 0 : index
    %c0_5 = arith.constant 0 : index
    %4 = vector.load %arg3[%c0_4, %c0_5] : memref<1x32xf32, #tpu.memory_space<vmem>>, vector<1x32xf32>
    %5 = vector.broadcast %4 : vector<1x32xf32> to vector<225x32xf32>
    %6 = arith.addf %3, %5 : vector<225x32xf32>
    %cst_6 = arith.constant 0.000000e+00 : f32
    %7 = vector.broadcast %cst_6 : f32 to vector<225x32xf32>
    %8 = arith.maximumf %6, %7 : vector<225x32xf32>
    %9 = arith.truncf %8 : vector<225x32xf32> to vector<225x32xbf16>
    %c0_7 = arith.constant 0 : index
    %c0_8 = arith.constant 0 : index
    %c0_9 = arith.constant 0 : index
    %10 = vector.load %arg4[%c0_7, %c0_8, %c0_9] : memref<1x225x32xbf16, #tpu.memory_space<vmem>>, vector<1x225x32xbf16>
    %11 = vector.shape_cast %10 : vector<1x225x32xbf16> to vector<225x32xbf16>
    %12 = vector.shape_cast %9 : vector<225x32xbf16> to vector<1x225x32xbf16>
    tpu.vector_store %arg4[%c0_7, %c0_8, %c0_9], %12 {strides = array<i32>} : memref<1x225x32xbf16, #tpu.memory_space<vmem>>, vector<1x225x32xbf16>,
    return
  }
  func.func @transform_0(%arg0: i32) -> (i32, i32, i32) {
    %c0_i32 = arith.constant 0 : i32
    %c0_i32_0 = arith.constant 0 : i32
    %c0_i32_1 = arith.constant 0 : i32
    return %arg0, %c0_i32, %c0_i32_0 : i32, i32, i32
  }
  func.func @transform_1(%arg0: i32) -> (i32, i32) {
    %c0_i32 = arith.constant 0 : i32
    %c0_i32_0 = arith.constant 0 : i32
    %c0_i32_1 = arith.constant 0 : i32
    return %c0_i32, %c0_i32_0 : i32, i32
  }
  func.func @transform_2(%arg0: i32) -> (i32, i32) {
    %c0_i32 = arith.constant 0 : i32
    %c0_i32_0 = arith.constant 0 : i32
    %c0_i32_1 = arith.constant 0 : i32
    return %c0_i32, %c0_i32_0 : i32, i32
  }
  func.func @transform_3(%arg0: i32) -> (i32, i32, i32) {
    %c0_i32 = arith.constant 0 : i32
    %c0_i32_0 = arith.constant 0 : i32
    %c0_i32_1 = arith.constant 0 : i32
    return %arg0, %c0_i32, %c0_i32_0 : i32, i32, i32
  }
}

module attributes {stable_mosaic.version = 11 : i64} {
  func.func @_tail_kernel(%arg0: i32, %arg1: memref<1x36x512xbf16, #tpu.memory_space<vmem>>, %arg2: memref<1x64x85xbf16, #tpu.memory_space<vmem>>, %arg3: memref<1x1x4xbf16, #tpu.memory_space<vmem>>, %arg4: memref<512x64xbf16, #tpu.memory_space<vmem>>, %arg5: memref<1x64xf32, #tpu.memory_space<vmem>>, %arg6: memref<85x64xbf16, #tpu.memory_space<vmem>>, %arg7: memref<1x64xf32, #tpu.memory_space<vmem>>, %arg8: memref<4x64xbf16, #tpu.memory_space<vmem>>, %arg9: memref<9x128x128xbf16, #tpu.memory_space<vmem>>, %arg10: memref<1x128xf32, #tpu.memory_space<vmem>>, %arg11: memref<128x32xbf16, #tpu.memory_space<vmem>>, %arg12: memref<1x32xf32, #tpu.memory_space<vmem>>, %arg13: memref<1x36x32xbf16, #tpu.memory_space<vmem>>, %arg14: memref<8x8x128xf32, #tpu.memory_space<vmem>>) attributes {dimension_semantics = [#tpu.dimension_semantics<parallel>], iteration_bounds = array<i64: 2>, scalar_prefetch = 0 : i64, scratch_operands = 1 : i64, tpu.core_type = #tpu.core_type<tc>, window_params = [{transform_indices = @transform_0, window_bounds = array<i64: 1, 36, 512>}, {transform_indices = @transform_1, window_bounds = array<i64: 1, 64, 85>}, {transform_indices = @transform_2, window_bounds = array<i64: 1, 1, 4>}, {pipeline_mode = #tpu.pipeline_mode<synchronous>, transform_indices = @transform_3, window_bounds = array<i64: 512, 64>}, {pipeline_mode = #tpu.pipeline_mode<synchronous>, transform_indices = @transform_4, window_bounds = array<i64: 1, 64>}, {pipeline_mode = #tpu.pipeline_mode<synchronous>, transform_indices = @transform_5, window_bounds = array<i64: 85, 64>}, {pipeline_mode = #tpu.pipeline_mode<synchronous>, transform_indices = @transform_6, window_bounds = array<i64: 1, 64>}, {pipeline_mode = #tpu.pipeline_mode<synchronous>, transform_indices = @transform_7, window_bounds = array<i64: 4, 64>}, {pipeline_mode = #tpu.pipeline_mode<synchronous>, transform_indices = @transform_8, window_bounds = array<i64: 9, 128, 128>}, {pipeline_mode = #tpu.pipeline_mode<synchronous>, transform_indices = @transform_9, window_bounds = array<i64: 1, 128>}, {pipeline_mode = #tpu.pipeline_mode<synchronous>, transform_indices = @transform_10, window_bounds = array<i64: 128, 32>}, {pipeline_mode = #tpu.pipeline_mode<synchronous>, transform_indices = @transform_11, window_bounds = array<i64: 1, 32>}, {transform_indices = @transform_12, window_bounds = array<i64: 1, 36, 32>}]} {
    %c0 = arith.constant 0 : index
    %c0_0 = arith.constant 0 : index
    %c0_1 = arith.constant 0 : index
    %0 = vector.load %arg1[%c0, %c0_0, %c0_1] : memref<1x36x512xbf16, #tpu.memory_space<vmem>>, vector<1x36x512xbf16>
    %1 = vector.shape_cast %0 : vector<1x36x512xbf16> to vector<36x512xbf16>
    %c0_2 = arith.constant 0 : index
    %c0_3 = arith.constant 0 : index
    %2 = vector.load %arg4[%c0_2, %c0_3] : memref<512x64xbf16, #tpu.memory_space<vmem>>, vector<512x64xbf16>
    %cst = arith.constant dense<0.000000e+00> : vector<36x64xf32>
    %3 = tpu.matmul %1, %2, %cst {dimension_numbers = #tpu.dot_dimension_numbers<[1], [0], [0], [1], [0, 0, 1, 1], [], []>} : vector<36x512xbf16>, vector<512x64xbf16>, vector<36x64xf32> -> vector<36x64xf32>
    %c0_4 = arith.constant 0 : index
    %c0_5 = arith.constant 0 : index
    %4 = vector.load %arg5[%c0_4, %c0_5] : memref<1x64xf32, #tpu.memory_space<vmem>>, vector<1x64xf32>
    %5 = vector.broadcast %4 : vector<1x64xf32> to vector<36x64xf32>
    %6 = arith.addf %3, %5 : vector<36x64xf32>
    %cst_6 = arith.constant 0.000000e+00 : f32
    %7 = vector.broadcast %cst_6 : f32 to vector<36x64xf32>
    %8 = arith.maximumf %6, %7 : vector<36x64xf32>
    %c0_7 = arith.constant 0 : index
    %c0_8 = arith.constant 0 : index
    %c0_9 = arith.constant 0 : index
    %9 = vector.load %arg3[%c0_7, %c0_8, %c0_9] : memref<1x1x4xbf16, #tpu.memory_space<vmem>>, vector<1x1x4xbf16>
    %10 = vector.shape_cast %9 : vector<1x1x4xbf16> to vector<1x4xbf16>
    %c0_10 = arith.constant 0 : index
    %c0_11 = arith.constant 0 : index
    %11 = vector.load %arg8[%c0_10, %c0_11] : memref<4x64xbf16, #tpu.memory_space<vmem>>, vector<4x64xbf16>
    %cst_12 = arith.constant dense<0.000000e+00> : vector<1x64xf32>
    %12 = tpu.matmul %10, %11, %cst_12 {dimension_numbers = #tpu.dot_dimension_numbers<[1], [0], [0], [1], [0, 0, 1, 1], [], []>} : vector<1x4xbf16>, vector<4x64xbf16>, vector<1x64xf32> -> vector<1x64xf32>
    %c0_13 = arith.constant 0 : index
    %c0_14 = arith.constant 0 : index
    %c0_15 = arith.constant 0 : index
    %13 = vector.load %arg2[%c0_13, %c0_14, %c0_15] : memref<1x64x85xbf16, #tpu.memory_space<vmem>>, vector<1x64x85xbf16>
    %14 = vector.shape_cast %13 : vector<1x64x85xbf16> to vector<64x85xbf16>
    %c0_16 = arith.constant 0 : index
    %c0_17 = arith.constant 0 : index
    %15 = vector.load %arg6[%c0_16, %c0_17] : memref<85x64xbf16, #tpu.memory_space<vmem>>, vector<85x64xbf16>
    %cst_18 = arith.constant dense<0.000000e+00> : vector<64x64xf32>
    %16 = tpu.matmul %14, %15, %cst_18 {dimension_numbers = #tpu.dot_dimension_numbers<[1], [0], [0], [1], [0, 0, 1, 1], [], []>} : vector<64x85xbf16>, vector<85x64xbf16>, vector<64x64xf32> -> vector<64x64xf32>
    %17 = vector.broadcast %12 : vector<1x64xf32> to vector<64x64xf32>
    %18 = arith.addf %16, %17 : vector<64x64xf32>
    %c0_19 = arith.constant 0 : index
    %c0_20 = arith.constant 0 : index
    %19 = vector.load %arg7[%c0_19, %c0_20] : memref<1x64xf32, #tpu.memory_space<vmem>>, vector<1x64xf32>
    %20 = vector.broadcast %19 : vector<1x64xf32> to vector<64x64xf32>
    %21 = arith.addf %18, %20 : vector<64x64xf32>
    %cst_21 = arith.constant 0.000000e+00 : f32
    %22 = vector.broadcast %cst_21 : f32 to vector<64x64xf32>
    %23 = arith.maximumf %21, %22 : vector<64x64xf32>
    %cst_22 = arith.constant 0.000000e+00 : f32
    %24 = vector.broadcast %cst_22 : f32 to vector<8x8x128xf32>
    %c0_23 = arith.constant 0 : index
    %c0_24 = arith.constant 0 : index
    %c0_25 = arith.constant 0 : index
    %25 = vector.load %arg14[%c0_23, %c0_24, %c0_25] : memref<8x8x128xf32, #tpu.memory_space<vmem>>, vector<8x8x128xf32>
    tpu.vector_store %arg14[%c0_23, %c0_24, %c0_25], %24 {strides = array<i32>} : memref<8x8x128xf32, #tpu.memory_space<vmem>>, vector<8x8x128xf32>,
    %26 = vector.shape_cast %23 : vector<64x64xf32> to vector<8x8x64xf32>
    %c0_26 = arith.constant 0 : index
    %c0_27 = arith.constant 0 : index
    %c0_28 = arith.constant 0 : index
    %27 = vector.load %arg14[%c0_26, %c0_27, %c0_28] : memref<8x8x128xf32, #tpu.memory_space<vmem>>, vector<8x8x64xf32>
    tpu.vector_store %arg14[%c0_26, %c0_27, %c0_28], %26 {strides = array<i32>} : memref<8x8x128xf32, #tpu.memory_space<vmem>>, vector<8x8x64xf32>,
    %28 = vector.shape_cast %8 : vector<36x64xf32> to vector<6x6x64xf32>
    %c1 = arith.constant 1 : index
    %c1_29 = arith.constant 1 : index
    %c64 = arith.constant 64 : index
    %29 = vector.load %arg14[%c1, %c1_29, %c64] : memref<8x8x128xf32, #tpu.memory_space<vmem>>, vector<6x6x64xf32>
    tpu.vector_store %arg14[%c1, %c1_29, %c64], %28 {strides = array<i32>} : memref<8x8x128xf32, #tpu.memory_space<vmem>>, vector<6x6x64xf32>,
    %cst_30 = arith.constant 0.000000e+00 : f32
    %30 = vector.broadcast %cst_30 : f32 to vector<36x128xf32>
    %c0_31 = arith.constant 0 : index
    %c0_32 = arith.constant 0 : index
    %c0_33 = arith.constant 0 : index
    %31 = vector.load %arg14[%c0_31, %c0_32, %c0_33] : memref<8x8x128xf32, #tpu.memory_space<vmem>>, vector<6x6x128xf32>
    %32 = arith.truncf %31 : vector<6x6x128xf32> to vector<6x6x128xbf16>
    %33 = vector.shape_cast %32 : vector<6x6x128xbf16> to vector<36x128xbf16>
    %c0_34 = arith.constant 0 : index
    %c0_35 = arith.constant 0 : index
    %c0_36 = arith.constant 0 : index
    %34 = vector.load %arg9[%c0_34, %c0_35, %c0_36] : memref<9x128x128xbf16, #tpu.memory_space<vmem>>, vector<1x128x128xbf16>
    %35 = vector.shape_cast %34 : vector<1x128x128xbf16> to vector<128x128xbf16>
    %cst_37 = arith.constant dense<0.000000e+00> : vector<36x128xf32>
    %36 = tpu.matmul %33, %35, %cst_37 {dimension_numbers = #tpu.dot_dimension_numbers<[1], [0], [0], [1], [0, 0, 1, 1], [], []>} : vector<36x128xbf16>, vector<128x128xbf16>, vector<36x128xf32> -> vector<36x128xf32>
    %37 = arith.addf %30, %36 : vector<36x128xf32>
    %c0_38 = arith.constant 0 : index
    %c1_39 = arith.constant 1 : index
    %c0_40 = arith.constant 0 : index
    %38 = vector.load %arg14[%c0_38, %c1_39, %c0_40] : memref<8x8x128xf32, #tpu.memory_space<vmem>>, vector<6x6x128xf32>
    %39 = arith.truncf %38 : vector<6x6x128xf32> to vector<6x6x128xbf16>
    %40 = vector.shape_cast %39 : vector<6x6x128xbf16> to vector<36x128xbf16>
    %c1_41 = arith.constant 1 : index
    %c0_42 = arith.constant 0 : index
    %c0_43 = arith.constant 0 : index
    %41 = vector.load %arg9[%c1_41, %c0_42, %c0_43] : memref<9x128x128xbf16, #tpu.memory_space<vmem>>, vector<1x128x128xbf16>
    %42 = vector.shape_cast %41 : vector<1x128x128xbf16> to vector<128x128xbf16>
    %cst_44 = arith.constant dense<0.000000e+00> : vector<36x128xf32>
    %43 = tpu.matmul %40, %42, %cst_44 {dimension_numbers = #tpu.dot_dimension_numbers<[1], [0], [0], [1], [0, 0, 1, 1], [], []>} : vector<36x128xbf16>, vector<128x128xbf16>, vector<36x128xf32> -> vector<36x128xf32>
    %44 = arith.addf %37, %43 : vector<36x128xf32>
    %c0_45 = arith.constant 0 : index
    %c2 = arith.constant 2 : index
    %c0_46 = arith.constant 0 : index
    %45 = vector.load %arg14[%c0_45, %c2, %c0_46] : memref<8x8x128xf32, #tpu.memory_space<vmem>>, vector<6x6x128xf32>
    %46 = arith.truncf %45 : vector<6x6x128xf32> to vector<6x6x128xbf16>
    %47 = vector.shape_cast %46 : vector<6x6x128xbf16> to vector<36x128xbf16>
    %c2_47 = arith.constant 2 : index
    %c0_48 = arith.constant 0 : index
    %c0_49 = arith.constant 0 : index
    %48 = vector.load %arg9[%c2_47, %c0_48, %c0_49] : memref<9x128x128xbf16, #tpu.memory_space<vmem>>, vector<1x128x128xbf16>
    %49 = vector.shape_cast %48 : vector<1x128x128xbf16> to vector<128x128xbf16>
    %cst_50 = arith.constant dense<0.000000e+00> : vector<36x128xf32>
    %50 = tpu.matmul %47, %49, %cst_50 {dimension_numbers = #tpu.dot_dimension_numbers<[1], [0], [0], [1], [0, 0, 1, 1], [], []>} : vector<36x128xbf16>, vector<128x128xbf16>, vector<36x128xf32> -> vector<36x128xf32>
    %51 = arith.addf %44, %50 : vector<36x128xf32>
    %c1_51 = arith.constant 1 : index
    %c0_52 = arith.constant 0 : index
    %c0_53 = arith.constant 0 : index
    %52 = vector.load %arg14[%c1_51, %c0_52, %c0_53] : memref<8x8x128xf32, #tpu.memory_space<vmem>>, vector<6x6x128xf32>
    %53 = arith.truncf %52 : vector<6x6x128xf32> to vector<6x6x128xbf16>
    %54 = vector.shape_cast %53 : vector<6x6x128xbf16> to vector<36x128xbf16>
    %c3 = arith.constant 3 : index
    %c0_54 = arith.constant 0 : index
    %c0_55 = arith.constant 0 : index
    %55 = vector.load %arg9[%c3, %c0_54, %c0_55] : memref<9x128x128xbf16, #tpu.memory_space<vmem>>, vector<1x128x128xbf16>
    %56 = vector.shape_cast %55 : vector<1x128x128xbf16> to vector<128x128xbf16>
    %cst_56 = arith.constant dense<0.000000e+00> : vector<36x128xf32>
    %57 = tpu.matmul %54, %56, %cst_56 {dimension_numbers = #tpu.dot_dimension_numbers<[1], [0], [0], [1], [0, 0, 1, 1], [], []>} : vector<36x128xbf16>, vector<128x128xbf16>, vector<36x128xf32> -> vector<36x128xf32>
    %58 = arith.addf %51, %57 : vector<36x128xf32>
    %c1_57 = arith.constant 1 : index
    %c1_58 = arith.constant 1 : index
    %c0_59 = arith.constant 0 : index
    %59 = vector.load %arg14[%c1_57, %c1_58, %c0_59] : memref<8x8x128xf32, #tpu.memory_space<vmem>>, vector<6x6x128xf32>
    %60 = arith.truncf %59 : vector<6x6x128xf32> to vector<6x6x128xbf16>
    %61 = vector.shape_cast %60 : vector<6x6x128xbf16> to vector<36x128xbf16>
    %c4 = arith.constant 4 : index
    %c0_60 = arith.constant 0 : index
    %c0_61 = arith.constant 0 : index
    %62 = vector.load %arg9[%c4, %c0_60, %c0_61] : memref<9x128x128xbf16, #tpu.memory_space<vmem>>, vector<1x128x128xbf16>
    %63 = vector.shape_cast %62 : vector<1x128x128xbf16> to vector<128x128xbf16>
    %cst_62 = arith.constant dense<0.000000e+00> : vector<36x128xf32>
    %64 = tpu.matmul %61, %63, %cst_62 {dimension_numbers = #tpu.dot_dimension_numbers<[1], [0], [0], [1], [0, 0, 1, 1], [], []>} : vector<36x128xbf16>, vector<128x128xbf16>, vector<36x128xf32> -> vector<36x128xf32>
    %65 = arith.addf %58, %64 : vector<36x128xf32>
    %c1_63 = arith.constant 1 : index
    %c2_64 = arith.constant 2 : index
    %c0_65 = arith.constant 0 : index
    %66 = vector.load %arg14[%c1_63, %c2_64, %c0_65] : memref<8x8x128xf32, #tpu.memory_space<vmem>>, vector<6x6x128xf32>
    %67 = arith.truncf %66 : vector<6x6x128xf32> to vector<6x6x128xbf16>
    %68 = vector.shape_cast %67 : vector<6x6x128xbf16> to vector<36x128xbf16>
    %c5 = arith.constant 5 : index
    %c0_66 = arith.constant 0 : index
    %c0_67 = arith.constant 0 : index
    %69 = vector.load %arg9[%c5, %c0_66, %c0_67] : memref<9x128x128xbf16, #tpu.memory_space<vmem>>, vector<1x128x128xbf16>
    %70 = vector.shape_cast %69 : vector<1x128x128xbf16> to vector<128x128xbf16>
    %cst_68 = arith.constant dense<0.000000e+00> : vector<36x128xf32>
    %71 = tpu.matmul %68, %70, %cst_68 {dimension_numbers = #tpu.dot_dimension_numbers<[1], [0], [0], [1], [0, 0, 1, 1], [], []>} : vector<36x128xbf16>, vector<128x128xbf16>, vector<36x128xf32> -> vector<36x128xf32>
    %72 = arith.addf %65, %71 : vector<36x128xf32>
    %c2_69 = arith.constant 2 : index
    %c0_70 = arith.constant 0 : index
    %c0_71 = arith.constant 0 : index
    %73 = vector.load %arg14[%c2_69, %c0_70, %c0_71] : memref<8x8x128xf32, #tpu.memory_space<vmem>>, vector<6x6x128xf32>
    %74 = arith.truncf %73 : vector<6x6x128xf32> to vector<6x6x128xbf16>
    %75 = vector.shape_cast %74 : vector<6x6x128xbf16> to vector<36x128xbf16>
    %c6 = arith.constant 6 : index
    %c0_72 = arith.constant 0 : index
    %c0_73 = arith.constant 0 : index
    %76 = vector.load %arg9[%c6, %c0_72, %c0_73] : memref<9x128x128xbf16, #tpu.memory_space<vmem>>, vector<1x128x128xbf16>
    %77 = vector.shape_cast %76 : vector<1x128x128xbf16> to vector<128x128xbf16>
    %cst_74 = arith.constant dense<0.000000e+00> : vector<36x128xf32>
    %78 = tpu.matmul %75, %77, %cst_74 {dimension_numbers = #tpu.dot_dimension_numbers<[1], [0], [0], [1], [0, 0, 1, 1], [], []>} : vector<36x128xbf16>, vector<128x128xbf16>, vector<36x128xf32> -> vector<36x128xf32>
    %79 = arith.addf %72, %78 : vector<36x128xf32>
    %c2_75 = arith.constant 2 : index
    %c1_76 = arith.constant 1 : index
    %c0_77 = arith.constant 0 : index
    %80 = vector.load %arg14[%c2_75, %c1_76, %c0_77] : memref<8x8x128xf32, #tpu.memory_space<vmem>>, vector<6x6x128xf32>
    %81 = arith.truncf %80 : vector<6x6x128xf32> to vector<6x6x128xbf16>
    %82 = vector.shape_cast %81 : vector<6x6x128xbf16> to vector<36x128xbf16>
    %c7 = arith.constant 7 : index
    %c0_78 = arith.constant 0 : index
    %c0_79 = arith.constant 0 : index
    %83 = vector.load %arg9[%c7, %c0_78, %c0_79] : memref<9x128x128xbf16, #tpu.memory_space<vmem>>, vector<1x128x128xbf16>
    %84 = vector.shape_cast %83 : vector<1x128x128xbf16> to vector<128x128xbf16>
    %cst_80 = arith.constant dense<0.000000e+00> : vector<36x128xf32>
    %85 = tpu.matmul %82, %84, %cst_80 {dimension_numbers = #tpu.dot_dimension_numbers<[1], [0], [0], [1], [0, 0, 1, 1], [], []>} : vector<36x128xbf16>, vector<128x128xbf16>, vector<36x128xf32> -> vector<36x128xf32>
    %86 = arith.addf %79, %85 : vector<36x128xf32>
    %c2_81 = arith.constant 2 : index
    %c2_82 = arith.constant 2 : index
    %c0_83 = arith.constant 0 : index
    %87 = vector.load %arg14[%c2_81, %c2_82, %c0_83] : memref<8x8x128xf32, #tpu.memory_space<vmem>>, vector<6x6x128xf32>
    %88 = arith.truncf %87 : vector<6x6x128xf32> to vector<6x6x128xbf16>
    %89 = vector.shape_cast %88 : vector<6x6x128xbf16> to vector<36x128xbf16>
    %c8 = arith.constant 8 : index
    %c0_84 = arith.constant 0 : index
    %c0_85 = arith.constant 0 : index
    %90 = vector.load %arg9[%c8, %c0_84, %c0_85] : memref<9x128x128xbf16, #tpu.memory_space<vmem>>, vector<1x128x128xbf16>
    %91 = vector.shape_cast %90 : vector<1x128x128xbf16> to vector<128x128xbf16>
    %cst_86 = arith.constant dense<0.000000e+00> : vector<36x128xf32>
    %92 = tpu.matmul %89, %91, %cst_86 {dimension_numbers = #tpu.dot_dimension_numbers<[1], [0], [0], [1], [0, 0, 1, 1], [], []>} : vector<36x128xbf16>, vector<128x128xbf16>, vector<36x128xf32> -> vector<36x128xf32>
    %93 = arith.addf %86, %92 : vector<36x128xf32>
    %c0_87 = arith.constant 0 : index
    %c0_88 = arith.constant 0 : index
    %94 = vector.load %arg10[%c0_87, %c0_88] : memref<1x128xf32, #tpu.memory_space<vmem>>, vector<1x128xf32>
    %95 = vector.broadcast %94 : vector<1x128xf32> to vector<36x128xf32>
    %96 = arith.addf %93, %95 : vector<36x128xf32>
    %cst_89 = arith.constant 0.000000e+00 : f32
    %97 = vector.broadcast %cst_89 : f32 to vector<36x128xf32>
    %98 = arith.maximumf %96, %97 : vector<36x128xf32>
    %99 = arith.truncf %98 : vector<36x128xf32> to vector<36x128xbf16>
    %c0_90 = arith.constant 0 : index
    %c0_91 = arith.constant 0 : index
    %100 = vector.load %arg11[%c0_90, %c0_91] : memref<128x32xbf16, #tpu.memory_space<vmem>>, vector<128x32xbf16>
    %cst_92 = arith.constant dense<0.000000e+00> : vector<36x32xf32>
    %101 = tpu.matmul %99, %100, %cst_92 {dimension_numbers = #tpu.dot_dimension_numbers<[1], [0], [0], [1], [0, 0, 1, 1], [], []>} : vector<36x128xbf16>, vector<128x32xbf16>, vector<36x32xf32> -> vector<36x32xf32>
    %c0_93 = arith.constant 0 : index
    %c0_94 = arith.constant 0 : index
    %102 = vector.load %arg12[%c0_93, %c0_94] : memref<1x32xf32, #tpu.memory_space<vmem>>, vector<1x32xf32>
    %103 = vector.broadcast %102 : vector<1x32xf32> to vector<36x32xf32>
    %104 = arith.addf %101, %103 : vector<36x32xf32>
    %105 = arith.truncf %104 : vector<36x32xf32> to vector<36x32xbf16>
    %c0_95 = arith.constant 0 : index
    %c0_96 = arith.constant 0 : index
    %c0_97 = arith.constant 0 : index
    %106 = vector.load %arg13[%c0_95, %c0_96, %c0_97] : memref<1x36x32xbf16, #tpu.memory_space<vmem>>, vector<1x36x32xbf16>
    %107 = vector.shape_cast %106 : vector<1x36x32xbf16> to vector<36x32xbf16>
    %108 = vector.shape_cast %105 : vector<36x32xbf16> to vector<1x36x32xbf16>
    tpu.vector_store %arg13[%c0_95, %c0_96, %c0_97], %108 {strides = array<i32>} : memref<1x36x32xbf16, #tpu.memory_space<vmem>>, vector<1x36x32xbf16>,
    return
  }
  func.func @transform_0(%arg0: i32) -> (i32, i32, i32) {
    %c0_i32 = arith.constant 0 : i32
    %c0_i32_0 = arith.constant 0 : i32
    %c0_i32_1 = arith.constant 0 : i32
    return %arg0, %c0_i32, %c0_i32_0 : i32, i32, i32
  }
  func.func @transform_1(%arg0: i32) -> (i32, i32, i32) {
    %c0_i32 = arith.constant 0 : i32
    %c0_i32_0 = arith.constant 0 : i32
    %c0_i32_1 = arith.constant 0 : i32
    return %arg0, %c0_i32, %c0_i32_0 : i32, i32, i32
  }
  func.func @transform_2(%arg0: i32) -> (i32, i32, i32) {
    %c0_i32 = arith.constant 0 : i32
    %c0_i32_0 = arith.constant 0 : i32
    %c0_i32_1 = arith.constant 0 : i32
    return %arg0, %c0_i32, %c0_i32_0 : i32, i32, i32
  }
  func.func @transform_3(%arg0: i32) -> (i32, i32) {
    %c0_i32 = arith.constant 0 : i32
    %c0_i32_0 = arith.constant 0 : i32
    %c0_i32_1 = arith.constant 0 : i32
    return %c0_i32, %c0_i32_0 : i32, i32
  }
  func.func @transform_4(%arg0: i32) -> (i32, i32) {
    %c0_i32 = arith.constant 0 : i32
    %c0_i32_0 = arith.constant 0 : i32
    %c0_i32_1 = arith.constant 0 : i32
    return %c0_i32, %c0_i32_0 : i32, i32
  }
  func.func @transform_5(%arg0: i32) -> (i32, i32) {
    %c0_i32 = arith.constant 0 : i32
    %c0_i32_0 = arith.constant 0 : i32
    %c0_i32_1 = arith.constant 0 : i32
    return %c0_i32, %c0_i32_0 : i32, i32
  }
  func.func @transform_6(%arg0: i32) -> (i32, i32) {
    %c0_i32 = arith.constant 0 : i32
    %c0_i32_0 = arith.constant 0 : i32
    %c0_i32_1 = arith.constant 0 : i32
    return %c0_i32, %c0_i32_0 : i32, i32
  }
  func.func @transform_7(%arg0: i32) -> (i32, i32) {
    %c0_i32 = arith.constant 0 : i32
    %c0_i32_0 = arith.constant 0 : i32
    %c0_i32_1 = arith.constant 0 : i32
    return %c0_i32, %c0_i32_0 : i32, i32
  }
  func.func @transform_8(%arg0: i32) -> (i32, i32, i32) {
    %c0_i32 = arith.constant 0 : i32
    %c0_i32_0 = arith.constant 0 : i32
    %c0_i32_1 = arith.constant 0 : i32
    %c0_i32_2 = arith.constant 0 : i32
    return %c0_i32, %c0_i32_0, %c0_i32_1 : i32, i32, i32
  }
  func.func @transform_9(%arg0: i32) -> (i32, i32) {
    %c0_i32 = arith.constant 0 : i32
    %c0_i32_0 = arith.constant 0 : i32
    %c0_i32_1 = arith.constant 0 : i32
    return %c0_i32, %c0_i32_0 : i32, i32
  }
  func.func @transform_10(%arg0: i32) -> (i32, i32) {
    %c0_i32 = arith.constant 0 : i32
    %c0_i32_0 = arith.constant 0 : i32
    %c0_i32_1 = arith.constant 0 : i32
    return %c0_i32, %c0_i32_0 : i32, i32
  }
  func.func @transform_11(%arg0: i32) -> (i32, i32) {
    %c0_i32 = arith.constant 0 : i32
    %c0_i32_0 = arith.constant 0 : i32
    %c0_i32_1 = arith.constant 0 : i32
    return %c0_i32, %c0_i32_0 : i32, i32
  }
  func.func @transform_12(%arg0: i32) -> (i32, i32, i32) {
    %c0_i32 = arith.constant 0 : i32
    %c0_i32_0 = arith.constant 0 : i32
    %c0_i32_1 = arith.constant 0 : i32
    return %arg0, %c0_i32, %c0_i32_0 : i32, i32, i32
  }
}

module attributes {stable_mosaic.version = 11 : i64} {
  func.func @_fc_kernel(%arg0: memref<2x1152xbf16, #tpu.memory_space<vmem>>, %arg1: memref<1152x32xbf16, #tpu.memory_space<vmem>>, %arg2: memref<1x32xf32, #tpu.memory_space<vmem>>, %arg3: memref<2x32xf32, #tpu.memory_space<vmem>>) attributes {dimension_semantics = [], scalar_prefetch = 0 : i64, scratch_operands = 0 : i64, tpu.core_type = #tpu.core_type<tc>} {
    %c0 = arith.constant 0 : index
    %c0_0 = arith.constant 0 : index
    %0 = vector.load %arg0[%c0, %c0_0] : memref<2x1152xbf16, #tpu.memory_space<vmem>>, vector<2x1152xbf16>
    %c0_1 = arith.constant 0 : index
    %c0_2 = arith.constant 0 : index
    %1 = vector.load %arg1[%c0_1, %c0_2] : memref<1152x32xbf16, #tpu.memory_space<vmem>>, vector<1152x32xbf16>
    %cst = arith.constant dense<0.000000e+00> : vector<2x32xf32>
    %2 = tpu.matmul %0, %1, %cst {dimension_numbers = #tpu.dot_dimension_numbers<[1], [0], [0], [1], [0, 0, 1, 1], [], []>} : vector<2x1152xbf16>, vector<1152x32xbf16>, vector<2x32xf32> -> vector<2x32xf32>
    %c0_3 = arith.constant 0 : index
    %c0_4 = arith.constant 0 : index
    %3 = vector.load %arg2[%c0_3, %c0_4] : memref<1x32xf32, #tpu.memory_space<vmem>>, vector<1x32xf32>
    %4 = vector.broadcast %3 : vector<1x32xf32> to vector<2x32xf32>
    %5 = arith.addf %2, %4 : vector<2x32xf32>
    %cst_5 = arith.constant 0.000000e+00 : f32
    %6 = vector.broadcast %cst_5 : f32 to vector<2x32xf32>
    %7 = arith.maximumf %5, %6 : vector<2x32xf32>
    %c0_6 = arith.constant 0 : index
    %c0_7 = arith.constant 0 : index
    %8 = vector.load %arg3[%c0_6, %c0_7] : memref<2x32xf32, #tpu.memory_space<vmem>>, vector<2x32xf32>
    tpu.vector_store %arg3[%c0_6, %c0_7], %7 {strides = array<i32>} : memref<2x32xf32, #tpu.memory_space<vmem>>, vector<2x32xf32>,
    return
  }
}

</mosaic_0001>

<bundles_post_ra>
// kernel: aimas_cnn_forward.3
= control target key start
LH: loop header
LB: loop body
LE: loop exit
PB: predicated region body
PF: predicated region fallthrough
CT: control target
= control target key end

     0   :  { %s1115_s12 = smov 0   ;;  %s1336_s0 = inlined_call_operand.vmem [shape: bf16[2,225,192], index: 0, kind: input, shape index: {}]   ;;  %s1337_s1 = inlined_call_operand.vmem [shape: bf16[192,32], index: 1, kind: input, shape index: {}]   ;;  %s1338_s2 = inlined_call_operand.vmem [shape: f32[1,32], index: 2, kind: input, shape index: {}]   ;;  %s1339_s3 = inlined_call_operand.vmem [shape: bf16[2,225,32], index: 3, kind: output, shape index: {}]  }
   0x1 LB: > { %s870_s13 = sadd.s32 4294967295, %s1092_s12   ;;  %p874_p0 = scmp.ge.s32.totalorder %s1092_s12, 1  ;;  %s1092_s12 = sphi %s1115_s12, %s13_s12  }
   0x2   : > { %p137_p1 = scmp.lt.s32.totalorder %s1092_s12, 3 }
   0x4   : > { %p138_p2 = pnand %p874_p0, %p137_p1 }
   0x5   : > { %p161_p3 = scmp.lt.s32.totalorder (!%p138_p2), %s870_s13, 1 }
   0x6   : > { %141 = sbr.rel (%p138_p2) target bundleno = 320 (0x140), region = 32 }
   0xb   : > { %v1030_v0 = vld [vmem:[%s1337_s1 + $0x38] sm:$0xff]   ;;  %v1094_v1 = vmov 0   ;;  %v1031_v2 = vld [vmem:[%s1337_s1 + $0x30] sm:$0xff]   ;;  %s1341_s13 = smov (!%p161_p3, %s870_s13), 1  ;;  %v1032_v3 = vld [vmem:[%s1337_s1 + $0x28] sm:$0xff]   ;;  %vm436_vm0 = vcmask 523264  }
   0xc   : > { %482 = vmatprep.subr.bf16.mxu0 %v1094_v1  ;;  %995 = vmatprep.subr.bf16.mxu1 %v1094_v1  ;;  %s1019_s20 = smul.u32 232, %s1341_s13  ;;  %v1033_v4 = vld [vmem:[%s1337_s1 + $0x20] sm:$0xff]   ;;  %v1034_v6 = vld [vmem:[%s1337_s1 + $0x18] sm:$0xff]   ;;  %v1035_v8 = vld [vmem:[%s1337_s1 + $0x10] sm:$0xff]   ;;  %vm780_vm1 = vcmask 257024   ;;  %vm809_vm2 = vcmask 253952  }
   0xd   : > { %483 = vmatpush1.bf16.msra.mxu0 %v1030_v0  ;;  %1007 = vmatpush1.bf16.msra.mxu1 %v1030_v0  ;;  %v1036_v9 = vld [vmem:[%s1337_s1 + $0x8] sm:$0xff]   ;;  %v1037_v10 = vld [vmem:[%s1337_s1] sm:$0xff]   ;;  %v1038_v11 = vld [vmem:[%s1337_s1 + $0x58] sm:$0xff]   ;;  %s1020_s19 = smul.u32 116, %s1341_s13  ;;  %vm810_vm3 = vsmask.f32 256 }
   0xe   : > { %484 = vmatprep.subr.bf16.mxu0 %v1094_v1  ;;  %996 = vmatprep.subr.bf16.mxu1 %v1094_v1  ;;  %s1147_s25 = scalar_lea.vmem %s1336_s0, %s1019_s20  ;;  %v1039_v12 = vld [vmem:[%s1337_s1 + $0x50] sm:$0xff]   ;;  %v1040_v13 = vld [vmem:[%s1337_s1 + $0x48] sm:$0xff]   ;;  %v1041_v14 = vld [vmem:[%s1337_s1 + $0x40] sm:$0xff]  }
   0xf   : > { %v1044_v5 = vld [vmem:[%s1147_s25 + $0x4] ss:$8 sps:$4 sm:$0xff]   ;;  %v1042_v15 = vld [vmem:[%s1147_s25] ss:$8 sps:$4 sm:$0xff]   ;;  %v1048_v17 = vld [vmem:[%s1147_s25 + $0x14] ss:$8 sps:$4 sm:$0xff]   ;;  %s1246_s22 = scalar_lea.vmem %s1339_s3, %s1020_s19 }
  0x10   : > { %v1047_v7 = vld [vmem:[%s1147_s25 + $0x84] ss:$8 sps:$4 sm:$0xff]   ;;  %920 = vmatprep.mubr.msk.bf16.mxu0 %vm436_vm0, %v1044_v5  ;;  %v1045_v16 = vld [vmem:[%s1147_s25 + $0x80] ss:$8 sps:$4 sm:$0xff]   ;;  %v1051_v18 = vld [vmem:[%s1147_s25 + $0x94] ss:$8 sps:$4 sm:$0xff]  }
  0x11   : > { %485 = vmatpush1.bf16.msra.mxu0 %v1031_v2  ;;  %1008 = vmatpush1.bf16.msra.mxu1 %v1031_v2  ;;  %v1050_v19 = vld [vmem:[%s1147_s25 + $0x10] ss:$8 sps:$4 sm:$0xff]   ;;  %v1054_v21 = vld [vmem:[%s1147_s25 + $0x24] ss:$8 sps:$4 sm:$0xff]   ;;  %v1056_v23 = vld [vmem:[%s1147_s25 + $0x20] ss:$8 sps:$4 sm:$0xff]  }
  0x12   : > { %486 = vmatprep.subr.bf16.mxu0 %v1094_v1  ;;  %997 = vmatprep.subr.bf16.mxu1 %v1094_v1  ;;  %v1053_v20 = vld [vmem:[%s1147_s25 + $0x90] ss:$8 sps:$4 sm:$0xff]   ;;  %v1057_v22 = vld [vmem:[%s1147_s25 + $0xa4] ss:$8 sps:$4 sm:$0xff]   ;;  %v1059_v24 = vld [vmem:[%s1147_s25 + $0xa0] ss:$8 sps:$4 sm:$0xff]  }
  0x13   : > { %928 = vmatprep.mubr.msk.bf16.mxu1 %vm436_vm0, %v1047_v7  ;;  %v1060_v25 = vld [vmem:[%s1147_s25 + $0x34] ss:$8 sps:$4 sm:$0xff]   ;;  %v1062_v27 = vld [vmem:[%s1147_s25 + $0x30] ss:$8 sps:$4 sm:$0xff]   ;;  %v1066_v29 = vld [vmem:[%s1147_s25 + $0x44] ss:$8 sps:$4 sm:$0xff]  }
  0x14   : > { %v1063_v26 = vld [vmem:[%s1147_s25 + $0xb4] ss:$8 sps:$4 sm:$0xff]   ;;  %v1065_v28 = vld [vmem:[%s1147_s25 + $0xb0] ss:$8 sps:$4 sm:$0xff]   ;;  %v1069_v30 = vld [vmem:[%s1147_s25 + $0xc4] ss:$8 sps:$4 sm:$0xff]  }
  0x15   : > { %487 = vmatpush1.bf16.msra.mxu0 %v1032_v3  ;;  %1009 = vmatpush1.bf16.msra.mxu1 %v1032_v3  ;;  %v1068_v31 = vld [vmem:[%s1147_s25 + $0x40] ss:$8 sps:$4 sm:$0xff]   ;;  %v1072_v33 = vld [vmem:[%s1147_s25 + $0x54] ss:$8 sps:$4 sm:$0xff]   ;;  %v1074_v36 = vld [vmem:[%s1147_s25 + $0x50] ss:$8 sps:$4 sm:$0xff]  }
  0x16   : > { %488 = vmatprep.subr.bf16.mxu0 %v1094_v1  ;;  %998 = vmatprep.subr.bf16.mxu1 %v1094_v1  ;;  %v1071_v32 = vld [vmem:[%s1147_s25 + $0xc0] ss:$8 sps:$4 sm:$0xff]   ;;  %v1075_v34 = vld [vmem:[%s1147_s25 + $0xd4] ss:$8 sps:$4 sm:$0xff]   ;;  %v1077_v37 = vld [vmem:[%s1147_s25 + $0xd0] ss:$8 sps:$4 sm:$0xff]  }
  0x17   : > { %v200_v35 = vld [vmem:[%s1147_s25 + $0xe0] sm:$0x11]  ;;  %v1083_v42 = vld [vmem:[%s1147_s25 + $0x74] ss:$8 sps:$4 sm:$0xff]   ;;  %v1085_v43 = vld [vmem:[%s1147_s25 + $0x70] ss:$8 sps:$4 sm:$0xff]  }
  0x18   : > { %v1078_v38 = vld [vmem:[%s1147_s25 + $0x64] ss:$8 sps:$4 sm:$0xff]   ;;  %v907_v39 = vcombine.high %v200_v35, %v200_v35  ;;  %v1080_v40 = vld [vmem:[%s1147_s25 + $0x60] ss:$8 sps:$4 sm:$0xff]   ;;  %v906_v41 = vcombine.low %v200_v35, %v200_v35  ;;  %vm811_vm4 = vmand %vm809_vm2, %vm810_vm3 }
  0x19   : > { %489 = vmatpush1.bf16.msra.mxu0 %v1033_v4  ;;  %1010 = vmatpush1.bf16.msra.mxu1 %v1033_v4  ;;  %v1238_v44 = vld [vmem:[%s1338_s2] ss:$0 sm:$0xff] }
  0x1a   : > { %490 = vmatprep.subr.bf16.mxu0 %v1094_v1  ;;  %999 = vmatprep.subr.bf16.mxu1 %v1094_v1 }
  0x1d   : > { %491 = vmatpush1.bf16.msra.mxu0 %v1034_v6  ;;  %1011 = vmatpush1.bf16.msra.mxu1 %v1034_v6 }
  0x1e   : > { %492 = vmatprep.subr.bf16.mxu0 %v1094_v1  ;;  %1000 = vmatprep.subr.bf16.mxu1 %v1094_v1 }
  0x21   : > { %493 = vmatpush1.bf16.msra.mxu0 %v1035_v8  ;;  %1012 = vmatpush1.bf16.msra.mxu1 %v1035_v8 }
  0x22   : > { %494 = vmatprep.subr.bf16.mxu0 %v1094_v1  ;;  %1001 = vmatprep.subr.bf16.mxu1 %v1094_v1 }
  0x25   : > { %495 = vmatpush1.bf16.msra.mxu0 %v1036_v9  ;;  %1013 = vmatpush1.bf16.msra.mxu1 %v1036_v9 }
  0x26   : > { %496 = vmatprep.subr.bf16.mxu0 %v1094_v1  ;;  %1002 = vmatprep.subr.bf16.mxu1 %v1094_v1 }
  0x29   : > { %497 = vmatpush1.bf16.msra.mxu0 %v1037_v10  ;;  %1014 = vmatpush1.bf16.msra.mxu1 %v1037_v10 }
  0x2a   : > { %506 = vmatprep.subr.bf16.mxu0 %v1094_v1  ;;  %1003 = vmatprep.subr.bf16.mxu1 %v1094_v1 }
  0x2d   : > { %507 = vmatpush2.bf16.msra.mxu0 %v1038_v11  ;;  %1015 = vmatpush2.bf16.msra.mxu1 %v1038_v11 }
  0x2e   : > { %508 = vmatprep.subr.bf16.mxu0 %v1094_v1  ;;  %1004 = vmatprep.subr.bf16.mxu1 %v1094_v1 }
  0x31   : > { %509 = vmatpush2.bf16.msra.mxu0 %v1039_v12  ;;  %1016 = vmatpush2.bf16.msra.mxu1 %v1039_v12 }
  0x32   : > { %510 = vmatprep.subr.bf16.mxu0 %v1094_v1  ;;  %1005 = vmatprep.subr.bf16.mxu1 %v1094_v1 }
  0x35   : > { %511 = vmatpush2.bf16.msra.mxu0 %v1040_v13  ;;  %1017 = vmatpush2.bf16.msra.mxu1 %v1040_v13 }
  0x36   : > { %512 = vmatprep.subr.bf16.mxu0 %v1094_v1  ;;  %1006 = vmatprep.subr.bf16.mxu1 %v1094_v1 }
  0x39   : > { %513 = vmatpush2.bf16.msra.mxu0 %v1041_v14  ;;  %1018 = vmatpush2.bf16.msra.mxu1 %v1041_v14 }
  0x3c   : > { %515 = vmatmul.mubr.bf16.vlgmr.msra.gmra.mxu0 %v1042_v15  ;;  %579 = vmatmul.mubr.bf16.vlgmr.msra.gmra.mxu1 %v1045_v16 }
  0x3d   : > { %921 = vmatprep.mubr.msk.bf16.mxu0 %vm436_vm0, %v1048_v17  ;;  %929 = vmatprep.mubr.msk.bf16.mxu1 %vm436_vm0, %v1051_v18 }
  0x44   : > { %523 = vmatmul.mubr.bf16.gmra.mxu0 %v1050_v19  ;;  %587 = vmatmul.mubr.bf16.gmra.mxu1 %v1053_v20 }
  0x45   : > { %922 = vmatprep.mubr.msk.bf16.mxu0 %vm436_vm0, %v1054_v21  ;;  %930 = vmatprep.mubr.msk.bf16.mxu1 %vm436_vm0, %v1057_v22 }
  0x4c   : > { %531 = vmatmul.mubr.bf16.gmra.mxu0 %v1056_v23  ;;  %595 = vmatmul.mubr.bf16.gmra.mxu1 %v1059_v24 }
  0x4d   : > { %923 = vmatprep.mubr.msk.bf16.mxu0 %vm436_vm0, %v1060_v25  ;;  %931 = vmatprep.mubr.msk.bf16.mxu1 %vm436_vm0, %v1063_v26 }
  0x54   : > { %539 = vmatmul.mubr.bf16.gmra.mxu0 %v1062_v27  ;;  %603 = vmatmul.mubr.bf16.gmra.mxu1 %v1065_v28 }
  0x55   : > { %924 = vmatprep.mubr.msk.bf16.mxu0 %vm436_vm0, %v1066_v29  ;;  %932 = vmatprep.mubr.msk.bf16.mxu1 %vm436_vm0, %v1069_v30 }
  0x5c   : > { %547 = vmatmul.mubr.bf16.gmra.mxu0 %v1068_v31  ;;  %611 = vmatmul.mubr.bf16.gmra.mxu1 %v1071_v32 }
  0x5d   : > { %925 = vmatprep.mubr.msk.bf16.mxu0 %vm436_vm0, %v1072_v33  ;;  %933 = vmatprep.mubr.msk.bf16.mxu1 %vm436_vm0, %v1075_v34 }
  0x64   : > { %555 = vmatmul.mubr.bf16.gmra.mxu0 %v1074_v36  ;;  %619 = vmatmul.mubr.bf16.gmra.mxu1 %v1077_v37 }
  0x65   : > { %926 = vmatprep.mubr.msk.bf16.mxu0 %vm436_vm0, %v1078_v38  ;;  %934 = vmatprep.mubr.msk.bf16.mxu1 %vm436_vm0, %v907_v39 }
  0x6c   : > { %563 = vmatmul.mubr.bf16.gmra.mxu0 %v1080_v40  ;;  %627 = vmatmul.mubr.bf16.gmra.mxu1 %v906_v41 }
  0x6d   : > { %927 = vmatprep.mubr.msk.bf16.mxu0 %vm436_vm0, %v1083_v42 }
  0x74   : > { %571 = vmatmul.mubr.bf16.gmra.mxu0 %v1085_v43 }
  0xfc   : > { %v516_v45 = vpop.f32.mrf.mxu0  ;;  %v580_v46 = vpop.f32.mrf.mxu1 }
  0xfd   : > { %v517_v47 = vadd.f32 %v1238_v44, %v516_v45  ;;  %v581_v48 = vadd.f32 %v1238_v44, %v580_v46 }
  0xfe   : > { %v518_v49 = vpop.f32.mrf.mxu0  ;;  %v582_v50 = vpop.f32.mrf.mxu1 }
  0xff   : > { %v634_v51 = vmax.f32 %v517_v47, 0.0  ;;  %v650_v52 = vmax.f32 %v581_v48, 0.0 }
 0x100   : > { %v519_v53 = vpop.f32.mrf.mxu0  ;;  %v583_v54 = vpop.f32.mrf.mxu1 }
 0x101   : > { %v966_v55 = vpack.c.bf16 %v634_v51, %v634_v51  ;;  %v520_v56 = vadd.f32 %v1238_v44, %v519_v53  ;;  %v982_v57 = vpack.c.bf16 %v650_v52, %v650_v52  ;;  %v584_v58 = vadd.f32 %v1238_v44, %v583_v54 }
 0x102   : > { %v521_v59 = vpop.f32.mrf.mxu0  ;;  %v585_v60 = vpop.f32.mrf.mxu1 }
 0x103   : > { %781 = vst.msk [vmem:[%s1246_s22] sm:$0xf] %vm780_vm1, %v966_v55  ;;  %v635_v61 = vmax.f32 %v520_v56, 0.0  ;;  %797 = vst.msk [vmem:[%s1246_s22 + $0x40] sm:$0xf] %vm780_vm1, %v982_v57  ;;  %v651_v62 = vmax.f32 %v584_v58, 0.0 }
 0x104   : > { %v524_v63 = vpop.f32.mrf.mxu0  ;;  %v588_v0 = vpop.f32.mrf.mxu1 }
 0x105   : > { %v967_v1 = vpack.c.bf16 %v635_v61, %v635_v61  ;;  %v525_v2 = vadd.f32 %v1238_v44, %v524_v63  ;;  %v983_v3 = vpack.c.bf16 %v651_v62, %v651_v62  ;;  %v589_v4 = vadd.f32 %v1238_v44, %v588_v0 }
 0x106   : > { %v526_v5 = vpop.f32.mrf.mxu0  ;;  %v590_v6 = vpop.f32.mrf.mxu1 }
 0x107   : > { %782 = vst.msk [vmem:[%s1246_s22 + $0x4] sm:$0xf] %vm780_vm1, %v967_v1  ;;  %v636_v7 = vmax.f32 %v525_v2, 0.0  ;;  %798 = vst.msk [vmem:[%s1246_s22 + $0x44] sm:$0xf] %vm780_vm1, %v983_v3  ;;  %v652_v8 = vmax.f32 %v589_v4, 0.0 }
 0x108   : > { %v527_v9 = vpop.f32.mrf.mxu0  ;;  %v591_v10 = vpop.f32.mrf.mxu1 }
 0x109   : > { %v968_v11 = vpack.c.bf16 %v636_v7, %v636_v7  ;;  %v528_v12 = vadd.f32 %v1238_v44, %v527_v9  ;;  %v984_v13 = vpack.c.bf16 %v652_v8, %v652_v8  ;;  %v592_v14 = vadd.f32 %v1238_v44, %v591_v10 }
 0x10a   : > { %v529_v15 = vpop.f32.mrf.mxu0  ;;  %v593_v16 = vpop.f32.mrf.mxu1 }
 0x10b   : > { %783 = vst.msk [vmem:[%s1246_s22 + $0x8] sm:$0xf] %vm780_vm1, %v968_v11  ;;  %v637_v17 = vmax.f32 %v528_v12, 0.0  ;;  %799 = vst.msk [vmem:[%s1246_s22 + $0x48] sm:$0xf] %vm780_vm1, %v984_v13  ;;  %v653_v18 = vmax.f32 %v592_v14, 0.0 }
 0x10c   : > { %v532_v19 = vpop.f32.mrf.mxu0  ;;  %v596_v20 = vpop.f32.mrf.mxu1 }
 0x10d   : > { %v969_v21 = vpack.c.bf16 %v637_v17, %v637_v17  ;;  %v533_v22 = vadd.f32 %v1238_v44, %v532_v19  ;;  %v985_v23 = vpack.c.bf16 %v653_v18, %v653_v18  ;;  %v597_v24 = vadd.f32 %v1238_v44, %v596_v20 }
 0x10e   : > { %v534_v25 = vpop.f32.mrf.mxu0  ;;  %v598_v26 = vpop.f32.mrf.mxu1 }
 0x10f   : > { %784 = vst.msk [vmem:[%s1246_s22 + $0xc] sm:$0xf] %vm780_vm1, %v969_v21  ;;  %v638_v27 = vmax.f32 %v533_v22, 0.0  ;;  %800 = vst.msk [vmem:[%s1246_s22 + $0x4c] sm:$0xf] %vm780_vm1, %v985_v23  ;;  %v654_v28 = vmax.f32 %v597_v24, 0.0 }
 0x110   : > { %v535_v29 = vpop.f32.mrf.mxu0  ;;  %v599_v30 = vpop.f32.mrf.mxu1 }
 0x111   : > { %v970_v31 = vpack.c.bf16 %v638_v27, %v638_v27  ;;  %v536_v32 = vadd.f32 %v1238_v44, %v535_v29  ;;  %v986_v33 = vpack.c.bf16 %v654_v28, %v654_v28  ;;  %v600_v34 = vadd.f32 %v1238_v44, %v599_v30 }
 0x112   : > { %v537_v35 = vpop.f32.mrf.mxu0  ;;  %v601_v36 = vpop.f32.mrf.mxu1 }
 0x113   : > { %785 = vst.msk [vmem:[%s1246_s22 + $0x10] sm:$0xf] %vm780_vm1, %v970_v31  ;;  %v639_v37 = vmax.f32 %v536_v32, 0.0  ;;  %801 = vst.msk [vmem:[%s1246_s22 + $0x50] sm:$0xf] %vm780_vm1, %v986_v33  ;;  %v655_v38 = vmax.f32 %v600_v34, 0.0 }
 0x114   : > { %v540_v39 = vpop.f32.mrf.mxu0  ;;  %v604_v40 = vpop.f32.mrf.mxu1 }
 0x115   : > { %v971_v41 = vpack.c.bf16 %v639_v37, %v639_v37  ;;  %v541_v42 = vadd.f32 %v1238_v44, %v540_v39  ;;  %v987_v43 = vpack.c.bf16 %v655_v38, %v655_v38  ;;  %v605_v45 = vadd.f32 %v1238_v44, %v604_v40 }
 0x116   : > { %v542_v46 = vpop.f32.mrf.mxu0  ;;  %v606_v47 = vpop.f32.mrf.mxu1 }
 0x117   : > { %786 = vst.msk [vmem:[%s1246_s22 + $0x14] sm:$0xf] %vm780_vm1, %v971_v41  ;;  %v640_v48 = vmax.f32 %v541_v42, 0.0  ;;  %802 = vst.msk [vmem:[%s1246_s22 + $0x54] sm:$0xf] %vm780_vm1, %v987_v43  ;;  %v656_v49 = vmax.f32 %v605_v45, 0.0 }
 0x118   : > { %v543_v50 = vpop.f32.mrf.mxu0  ;;  %v607_v51 = vpop.f32.mrf.mxu1 }
 0x119   : > { %v972_v52 = vpack.c.bf16 %v640_v48, %v640_v48  ;;  %v544_v53 = vadd.f32 %v1238_v44, %v543_v50  ;;  %v988_v54 = vpack.c.bf16 %v656_v49, %v656_v49  ;;  %v608_v55 = vadd.f32 %v1238_v44, %v607_v51  ;;  %v812_v48 = vld [vmem:[%s1246_s22 + $0x70] sm:$0x1] }
 0x11a   : > { %v545_v56 = vpop.f32.mrf.mxu0  ;;  %v609_v57 = vpop.f32.mrf.mxu1 }
 0x11b   : > { %787 = vst.msk [vmem:[%s1246_s22 + $0x18] sm:$0xf] %vm780_vm1, %v972_v52  ;;  %v641_v58 = vmax.f32 %v544_v53, 0.0  ;;  %803 = vst.msk [vmem:[%s1246_s22 + $0x58] sm:$0xf] %vm780_vm1, %v988_v54  ;;  %v657_v59 = vmax.f32 %v608_v55, 0.0 }
 0x11c   : > { %v548_v60 = vpop.f32.mrf.mxu0  ;;  %v612_v61 = vpop.f32.mrf.mxu1 }
 0x11d   : > { %v973_v62 = vpack.c.bf16 %v641_v58, %v641_v58  ;;  %v549_v63 = vadd.f32 %v1238_v44, %v548_v60  ;;  %v989_v0 = vpack.c.bf16 %v657_v59, %v657_v59  ;;  %v613_v1 = vadd.f32 %v1238_v44, %v612_v61 }
 0x11e   : > { %v550_v2 = vpop.f32.mrf.mxu0  ;;  %v614_v3 = vpop.f32.mrf.mxu1 }
 0x11f   : > { %788 = vst.msk [vmem:[%s1246_s22 + $0x1c] sm:$0xf] %vm780_vm1, %v973_v62  ;;  %v642_v4 = vmax.f32 %v549_v63, 0.0  ;;  %804 = vst.msk [vmem:[%s1246_s22 + $0x5c] sm:$0xf] %vm780_vm1, %v989_v0  ;;  %v658_v5 = vmax.f32 %v613_v1, 0.0 }
 0x120   : > { %v551_v6 = vpop.f32.mrf.mxu0  ;;  %v615_v7 = vpop.f32.mrf.mxu1 }
 0x121   : > { %v974_v8 = vpack.c.bf16 %v642_v4, %v642_v4  ;;  %v552_v9 = vadd.f32 %v1238_v44, %v551_v6  ;;  %v990_v10 = vpack.c.bf16 %v658_v5, %v658_v5  ;;  %v616_v11 = vadd.f32 %v1238_v44, %v615_v7 }
 0x122   : > { %v553_v12 = vpop.f32.mrf.mxu0  ;;  %v617_v13 = vpop.f32.mrf.mxu1 }
 0x123   : > { %789 = vst.msk [vmem:[%s1246_s22 + $0x20] sm:$0xf] %vm780_vm1, %v974_v8  ;;  %v643_v14 = vmax.f32 %v552_v9, 0.0  ;;  %805 = vst.msk [vmem:[%s1246_s22 + $0x60] sm:$0xf] %vm780_vm1, %v990_v10  ;;  %v659_v15 = vmax.f32 %v616_v11, 0.0 }
 0x124   : > { %v556_v16 = vpop.f32.mrf.mxu0  ;;  %v620_v17 = vpop.f32.mrf.mxu1 }
 0x125   : > { %v975_v18 = vpack.c.bf16 %v643_v14, %v643_v14  ;;  %v557_v19 = vadd.f32 %v1238_v44, %v556_v16  ;;  %v991_v20 = vpack.c.bf16 %v659_v15, %v659_v15  ;;  %v621_v21 = vadd.f32 %v1238_v44, %v620_v17 }
 0x126   : > { %v558_v22 = vpop.f32.mrf.mxu0  ;;  %v622_v23 = vpop.f32.mrf.mxu1 }
 0x127   : > { %790 = vst.msk [vmem:[%s1246_s22 + $0x24] sm:$0xf] %vm780_vm1, %v975_v18  ;;  %v644_v24 = vmax.f32 %v557_v19, 0.0  ;;  %806 = vst.msk [vmem:[%s1246_s22 + $0x64] sm:$0xf] %vm780_vm1, %v991_v20  ;;  %v660_v25 = vmax.f32 %v621_v21, 0.0 }
 0x128   : > { %v559_v26 = vpop.f32.mrf.mxu0  ;;  %v623_v27 = vpop.f32.mrf.mxu1 }
 0x129   : > { %v976_v28 = vpack.c.bf16 %v644_v24, %v644_v24  ;;  %v560_v29 = vadd.f32 %v1238_v44, %v559_v26  ;;  %v992_v30 = vpack.c.bf16 %v660_v25, %v660_v25  ;;  %v624_v31 = vadd.f32 %v1238_v44, %v623_v27 }
 0x12a   : > { %v561_v32 = vpop.f32.mrf.mxu0  ;;  %v625_v33 = vpop.f32.mrf.mxu1 }
 0x12b   : > { %791 = vst.msk [vmem:[%s1246_s22 + $0x28] sm:$0xf] %vm780_vm1, %v976_v28  ;;  %v645_v34 = vmax.f32 %v560_v29, 0.0  ;;  %807 = vst.msk [vmem:[%s1246_s22 + $0x68] sm:$0xf] %vm780_vm1, %v992_v30  ;;  %v661_v35 = vmax.f32 %v624_v31, 0.0 }
 0x12c   : > { %v564_v36 = vpop.f32.mrf.mxu0  ;;  %v628_v37 = vpop.f32.mrf.mxu1 }
 0x12d   : > { %v977_v38 = vpack.c.bf16 %v645_v34, %v645_v34  ;;  %v565_v39 = vadd.f32 %v1238_v44, %v564_v36  ;;  %v993_v40 = vpack.c.bf16 %v661_v35, %v661_v35  ;;  %v629_v41 = vadd.f32 %v1238_v44, %v628_v37 }
 0x12e   : > { %v566_v42 = vpop.f32.mrf.mxu0  ;;  %v630_v43 = vpop.f32.mrf.mxu1 }
 0x12f   : > { %792 = vst.msk [vmem:[%s1246_s22 + $0x2c] sm:$0xf] %vm780_vm1, %v977_v38  ;;  %v646_v45 = vmax.f32 %v565_v39, 0.0  ;;  %808 = vst.msk [vmem:[%s1246_s22 + $0x6c] sm:$0xf] %vm780_vm1, %v993_v40  ;;  %v662_v46 = vmax.f32 %v629_v41, 0.0 }
 0x130   : > { %v567_v47 = vpop.f32.mrf.mxu0  ;;  %v631_v49 = vpop.f32.mrf.mxu1 }
 0x131   : > { %v978_v50 = vpack.c.bf16 %v646_v45, %v646_v45  ;;  %v568_v51 = vadd.f32 %v1238_v44, %v567_v47  ;;  %v994_v52 = vpack.c.bf16 %v662_v46, %v662_v46 }
 0x132   : > { %v569_v53 = vpop.f32.mrf.mxu0  ;;  %v632_v54 = vpop.f32.mrf.mxu1 }
 0x133   : > { %793 = vst.msk [vmem:[%s1246_s22 + $0x30] sm:$0xf] %vm780_vm1, %v978_v50  ;;  %v647_v55 = vmax.f32 %v568_v51, 0.0  ;;  %v813_v56 = vsel %vm811_vm4, %v994_v52, %v812_v48 }
 0x134   : > { %814 = vst [vmem:[%s1246_s22 + $0x70] sm:$0x1] %v813_v56  ;;  %v572_v57 = vpop.f32.mrf.mxu0 }
 0x135   : > { %v979_v58 = vpack.c.bf16 %v647_v55, %v647_v55  ;;  %v573_v59 = vadd.f32 %v1238_v44, %v572_v57 }
 0x136   : > { %v574_v60 = vpop.f32.mrf.mxu0 }
 0x137   : > { %794 = vst.msk [vmem:[%s1246_s22 + $0x34] sm:$0xf] %vm780_vm1, %v979_v58  ;;  %v648_v61 = vmax.f32 %v573_v59, 0.0 }
 0x138   : > { %v575_v62 = vpop.f32.mrf.mxu0 }
 0x139   : > { %v980_v63 = vpack.c.bf16 %v648_v61, %v648_v61  ;;  %v576_v0 = vadd.f32 %v1238_v44, %v575_v62 }
 0x13a   : > { %v577_v1 = vpop.f32.mrf.mxu0 }
 0x13b   : > { %795 = vst.msk [vmem:[%s1246_s22 + $0x38] sm:$0xf] %vm780_vm1, %v980_v63  ;;  %v649_v2 = vmax.f32 %v576_v0, 0.0 }
 0x13d   : > { %v981_v3 = vpack.c.bf16 %v649_v2, %v649_v2 }
 0x13f   : > { %796 = vst.msk [vmem:[%s1246_s22 + $0x3c] sm:$0xf] %vm780_vm1, %v981_v3 }
 0x140 PF: > { %s13_s12 = sadd.s32 1, %s1092_s12  }
 0x141   : > { %p10_p4 = scmp.ge.s32.totalorder %s13_s12, 4  }
 0x143   :  { %12 = sbr.rel (!%p10_p4) target bundleno = 1 (0x1), region = 62 }

// kernel: aimas_cnn_forward.5
= control target key start
LH: loop header
LB: loop body
LE: loop exit
PB: predicated region body
PF: predicated region fallthrough
CT: control target
= control target key end

     0   :  { %v175_v27 = vlaneseq  ;;  %v1182_v35 = vmov 1966171168   ;;  %s1448_s0 = inlined_call_operand.vmem [shape: bf16[2,1152], index: 0, kind: input, shape index: {}]   ;;  %s1449_s1 = inlined_call_operand.vmem [shape: bf16[1152,32], index: 1, kind: input, shape index: {}]   ;;  %s1450_s2 = inlined_call_operand.vmem [shape: f32[1,32], index: 2, kind: input, shape index: {}]   ;;  %s1451_s3 = inlined_call_operand.hbm [shape: f32[2,32], index: 3, kind: output, shape index: {}]  }
   0x1   :  { %v1087_v0 = vld [vmem:[%s1449_s1 + $0x78] sm:$0xff]   ;;  %v1091_v4 = vld [vmem:[%s1449_s1 + $0x70] sm:$0xff]   ;;  %v1095_v8 = vld [vmem:[%s1449_s1 + $0x68] sm:$0xff]   ;;  %v173_v36 = vunpack.c.l.s4 %v1182_v35 }
   0x2   :  { %v1088_v1 = vld [vmem:[%s1449_s1 + $0x38] sm:$0xff]   ;;  %966 = vmatprep.subr.bf16.mxu0 %v1087_v0  ;;  %v1092_v5 = vld [vmem:[%s1449_s1 + $0x30] sm:$0xff]   ;;  %v1096_v9 = vld [vmem:[%s1449_s1 + $0x28] sm:$0xff]   ;;  %v176_v32 = vshrl.u32 %v175_v27, 7 }
   0x3   :  { %v1089_v2 = vld [vmem:[%s1449_s1 + $0xf8] sm:$0xff]   ;;  %967 = vmatpush3.bf16.msra.mxu0 %v1088_v1  ;;  %v1093_v6 = vld [vmem:[%s1449_s1 + $0xf0] sm:$0xff]   ;;  %v1097_v10 = vld [vmem:[%s1449_s1 + $0xe8] sm:$0xff]   ;;  %v174_v39 = vunpack.c.0.s8 %v173_v36 }
   0x4   :  { %v1090_v3 = vld [vmem:[%s1449_s1 + $0xb8] sm:$0xff]   ;;  %988 = vmatprep.subr.bf16.mxu1 %v1089_v2  ;;  %968 = vmatprep.subr.bf16.mxu0 %v1091_v4  ;;  %v1094_v7 = vld [vmem:[%s1449_s1 + $0xb0] sm:$0xff]   ;;  %v1098_v11 = vld [vmem:[%s1449_s1 + $0xa8] sm:$0xff]  }
   0x5   :  { %989 = vmatpush3.bf16.msra.mxu1 %v1090_v3  ;;  %v1099_v12 = vld [vmem:[%s1449_s1 + $0x60] sm:$0xff]   ;;  %v1103_v16 = vld [vmem:[%s1449_s1 + $0x58] sm:$0xff]   ;;  %v1107_v20 = vld [vmem:[%s1449_s1 + $0x50] sm:$0xff]   ;;  %v1311_v41 = vsub.s32 %v174_v39, %v176_v32 }
   0x6   :  { %990 = vmatprep.subr.bf16.mxu1 %v1093_v6  ;;  %v1100_v13 = vld [vmem:[%s1449_s1 + $0x20] sm:$0xff]   ;;  %v1104_v17 = vld [vmem:[%s1449_s1 + $0x18] sm:$0xff]   ;;  %v1108_v21 = vld [vmem:[%s1449_s1 + $0x10] sm:$0xff]  }
   0x7   :  { %969 = vmatpush3.bf16.msra.mxu0 %v1092_v5  ;;  %v1101_v14 = vld [vmem:[%s1449_s1 + $0xe0] sm:$0xff]   ;;  %v1105_v18 = vld [vmem:[%s1449_s1 + $0xd8] sm:$0xff]   ;;  %v1109_v22 = vld [vmem:[%s1449_s1 + $0xd0] sm:$0xff]  }
   0x8   :  { %970 = vmatprep.subr.bf16.mxu0 %v1095_v8  ;;  %v1102_v15 = vld [vmem:[%s1449_s1 + $0xa0] sm:$0xff]   ;;  %v1106_v19 = vld [vmem:[%s1449_s1 + $0x98] sm:$0xff]   ;;  %v1110_v23 = vld [vmem:[%s1449_s1 + $0x90] sm:$0xff]  }
   0x9   :  { %991 = vmatpush3.bf16.msra.mxu1 %v1094_v7  ;;  %v1111_v24 = vld [vmem:[%s1449_s1 + $0x48] sm:$0xff]   ;;  %v1115_v29 = vld [vmem:[%s1449_s1 + $0x40] sm:$0xff]   ;;  %v1120_v37 = vld [vmem:[%s1449_s1 + $0x178] sm:$0xff]  }
   0xa   :  { %992 = vmatprep.subr.bf16.mxu1 %v1097_v10  ;;  %v1112_v25 = vld [vmem:[%s1449_s1 + $0x8] sm:$0xff]   ;;  %v1116_v30 = vld [vmem:[%s1449_s1] sm:$0xff]   ;;  %v1122_v40 = vld [vmem:[%s1449_s1 + $0x1f8] sm:$0xff]  }
   0xb   :  { %971 = vmatpush3.bf16.msra.mxu0 %v1096_v9  ;;  %v1113_v26 = vld [vmem:[%s1449_s1 + $0xc8] sm:$0xff]   ;;  %v1117_v31 = vld [vmem:[%s1449_s1 + $0xc0] sm:$0xff]   ;;  %v1121_v48 = vld [vmem:[%s1449_s1 + $0x138] sm:$0xff]  }
   0xc   :  { %972 = vmatprep.subr.bf16.mxu0 %v1099_v12  ;;  %v1114_v28 = vld [vmem:[%s1449_s1 + $0x88] sm:$0xff]   ;;  %v16_v33 = vld [vmem:[%s1448_s0] sm:$0xff]  ;;  %v1124_v51 = vld [vmem:[%s1449_s1 + $0x170] sm:$0xff]  }
   0xd   :  { %993 = vmatpush3.bf16.msra.mxu1 %v1098_v11  ;;  %v1119_v34 = vld [vmem:[%s1449_s1 + $0x80] sm:$0xff]   ;;  %v171_v38 = vcombine.high %v16_v33, %v16_v33  ;;  %v178_v42 = vrot.slane %v16_v33, %v1311_v41  ;;  %v1123_v53 = vld [vmem:[%s1449_s1 + $0x1b8] sm:$0xff]   ;;  %v1126_v54 = vld [vmem:[%s1449_s1 + $0x1f0] sm:$0xff]  }
   0xe   :  { %994 = vmatprep.subr.bf16.mxu1 %v1101_v14  ;;  %v1125_v56 = vld [vmem:[%s1449_s1 + $0x130] sm:$0xff]   ;;  %v1128_v57 = vld [vmem:[%s1449_s1 + $0x168] sm:$0xff]   ;;  %v1132_v61 = vld [vmem:[%s1449_s1 + $0x160] sm:$0xff]  }
   0xf   :  { %973 = vmatpush3.bf16.msra.mxu0 %v1100_v13  ;;  %v1315_v43 = vrot.slane %v171_v38, %v1311_v41  ;;  %v186_v44 = vcombine.high %v178_v42, %v178_v42  ;;  %v194_v45 = vrot.slane %v178_v42, %v1311_v41  ;;  %v1127_v58 = vld [vmem:[%s1449_s1 + $0x1b0] sm:$0xff]   ;;  %v1130_v59 = vld [vmem:[%s1449_s1 + $0x1e8] sm:$0xff]   ;;  %v1134_v63 = vld [vmem:[%s1449_s1 + $0x1e0] sm:$0xff]  }
  0x10   :  { %974 = vmatprep.subr.bf16.mxu0 %v1103_v16  ;;  %v1129_v60 = vld [vmem:[%s1449_s1 + $0x128] sm:$0xff]   ;;  %v1133_v0 = vld [vmem:[%s1449_s1 + $0x120] sm:$0xff]   ;;  %v1136_v1 = vld [vmem:[%s1449_s1 + $0x158] sm:$0xff]  }
  0x11   :  { %995 = vmatpush3.bf16.msra.mxu1 %v1102_v15  ;;  %v187_v46 = vcombine.high %v1315_v43, %v1315_v43  ;;  %v208_v47 = vrot.slane %v186_v44, %v1311_v41  ;;  %v216_v50 = vcombine.high %v194_v45, %v194_v45  ;;  %v1131_v62 = vld [vmem:[%s1449_s1 + $0x1a8] sm:$0xff]   ;;  %v1135_v2 = vld [vmem:[%s1449_s1 + $0x1a0] sm:$0xff]   ;;  %v1138_v3 = vld [vmem:[%s1449_s1 + $0x1d8] sm:$0xff]  }
  0x12   :  { %996 = vmatprep.subr.bf16.mxu1 %v1105_v18  ;;  %v1137_v4 = vld [vmem:[%s1449_s1 + $0x118] sm:$0xff]   ;;  %v1140_v5 = vld [vmem:[%s1449_s1 + $0x150] sm:$0xff]   ;;  %v1144_v9 = vld [vmem:[%s1449_s1 + $0x148] sm:$0xff]  }
  0x13   :  { %975 = vmatpush3.bf16.msra.mxu0 %v1104_v17  ;;  %v215_v49 = vrot.slane %v187_v46, %v1311_v41  ;;  %707 = vmatprep.mubr.bf16.mxu0 %v208_v47  ;;  %v218_v52 = vcombine.high %v208_v47, %v208_v47  ;;  %v1139_v6 = vld [vmem:[%s1449_s1 + $0x198] sm:$0xff]   ;;  %v1142_v7 = vld [vmem:[%s1449_s1 + $0x1d0] sm:$0xff]   ;;  %v1146_v11 = vld [vmem:[%s1449_s1 + $0x1c8] sm:$0xff]   ;;  %v201_v17 = vrot.slane %v1315_v43, %v1311_v41 }
  0x14   :  { %976 = vmatprep.subr.bf16.mxu0 %v1107_v20  ;;  %v1141_v8 = vld [vmem:[%s1449_s1 + $0x110] sm:$0xff]   ;;  %v1145_v12 = vld [vmem:[%s1449_s1 + $0x108] sm:$0xff]   ;;  %v1148_v13 = vld [vmem:[%s1449_s1 + $0x140] sm:$0xff]  }
  0x15   :  { %997 = vmatpush3.bf16.msra.mxu1 %v1106_v19  ;;  %v219_v55 = vcombine.high %v215_v49, %v215_v49  ;;  %747 = vmatprep.mubr.bf16.mxu1 %v218_v52  ;;  %v1143_v10 = vld [vmem:[%s1449_s1 + $0x190] sm:$0xff]   ;;  %v1147_v14 = vld [vmem:[%s1449_s1 + $0x188] sm:$0xff]   ;;  %v1150_v15 = vld [vmem:[%s1449_s1 + $0x1c0] sm:$0xff]  }
  0x16   :  { %998 = vmatprep.subr.bf16.mxu1 %v1109_v22  ;;  %v1149_v16 = vld [vmem:[%s1449_s1 + $0x100] sm:$0xff]  }
  0x17   :  { %977 = vmatpush3.bf16.msra.mxu0 %v1108_v21  ;;  %v1151_v18 = vld [vmem:[%s1449_s1 + $0x180] sm:$0xff]  }
  0x18   :  { %978 = vmatprep.subr.bf16.mxu0 %v1111_v24 }
  0x19   :  { %999 = vmatpush3.bf16.msra.mxu1 %v1110_v23 }
  0x1a   :  { %1000 = vmatprep.subr.bf16.mxu1 %v1113_v26 }
  0x1b   :  { %979 = vmatpush3.bf16.msra.mxu0 %v1112_v25 }
  0x1c   :  { %980 = vmatprep.subr.bf16.mxu0 %v1115_v29 }
  0x1d   :  { %1001 = vmatpush3.bf16.msra.mxu1 %v1114_v28 }
  0x1e   :  { %1002 = vmatprep.subr.bf16.mxu1 %v1117_v31 }
  0x1f   :  { %981 = vmatpush3.bf16.msra.mxu0 %v1116_v30 }
  0x20   :  { %1010 = vmatprep.subr.bf16.mxu0 %v1120_v37 }
  0x21   :  { %1003 = vmatpush3.bf16.msra.mxu1 %v1119_v34 }
  0x22   :  { %1032 = vmatprep.subr.bf16.mxu1 %v1122_v40  ;;  %708 = vmatmul.mubr.bf16.vlgmr.msra.gmra.mxu0 %v194_v45 }
  0x23   :  { %1011 = vmatpush3.bf16.msra.mxu0 %v1121_v48  ;;  %787 = vmatprep.mubr.bf16.mxu0 %v215_v49 }
  0x24   :  { %748 = vmatmul.mubr.bf16.vlgmr.msra.gmra.mxu1 %v216_v50  ;;  %1012 = vmatprep.subr.bf16.mxu0 %v1124_v51 }
  0x25   :  { %1033 = vmatpush3.bf16.msra.mxu1 %v1123_v53  ;;  %827 = vmatprep.mubr.bf16.mxu1 %v219_v55 }
  0x26   :  { %1034 = vmatprep.subr.bf16.mxu1 %v1126_v54 }
  0x27   :  { %1013 = vmatpush3.bf16.msra.mxu0 %v1125_v56 }
  0x28   :  { %1014 = vmatprep.subr.bf16.mxu0 %v1128_v57 }
  0x29   :  { %1035 = vmatpush3.bf16.msra.mxu1 %v1127_v58 }
  0x2a   :  { %1036 = vmatprep.subr.bf16.mxu1 %v1130_v59 }
  0x2b   :  { %1015 = vmatpush3.bf16.msra.mxu0 %v1129_v60 }
  0x2c   :  { %1016 = vmatprep.subr.bf16.mxu0 %v1132_v61 }
  0x2d   :  { %1037 = vmatpush3.bf16.msra.mxu1 %v1131_v62 }
  0x2e   :  { %1038 = vmatprep.subr.bf16.mxu1 %v1134_v63 }
  0x2f   :  { %1017 = vmatpush3.bf16.msra.mxu0 %v1133_v0 }
  0x30   :  { %1018 = vmatprep.subr.bf16.mxu0 %v1136_v1 }
  0x31   :  { %1039 = vmatpush3.bf16.msra.mxu1 %v1135_v2 }
  0x32   :  { %1040 = vmatprep.subr.bf16.mxu1 %v1138_v3 }
  0x33   :  { %1019 = vmatpush3.bf16.msra.mxu0 %v1137_v4 }
  0x34   :  { %1020 = vmatprep.subr.bf16.mxu0 %v1140_v5 }
  0x35   :  { %1041 = vmatpush3.bf16.msra.mxu1 %v1139_v6 }
  0x36   :  { %1042 = vmatprep.subr.bf16.mxu1 %v1142_v7 }
  0x37   :  { %1021 = vmatpush3.bf16.msra.mxu0 %v1141_v8 }
  0x38   :  { %1022 = vmatprep.subr.bf16.mxu0 %v1144_v9 }
  0x39   :  { %1043 = vmatpush3.bf16.msra.mxu1 %v1143_v10 }
  0x3a   :  { %1044 = vmatprep.subr.bf16.mxu1 %v1146_v11 }
  0x3b   :  { %1023 = vmatpush3.bf16.msra.mxu0 %v1145_v12 }
  0x3c   :  { %1024 = vmatprep.subr.bf16.mxu0 %v1148_v13 }
  0x3d   :  { %1045 = vmatpush3.bf16.msra.mxu1 %v1147_v14 }
  0x3e   :  { %1046 = vmatprep.subr.bf16.mxu1 %v1150_v15 }
  0x3f   :  { %8 = vsyncpa [#allocation3], 0  ;;  %1025 = vmatpush3.bf16.msra.mxu0 %v1149_v16  ;;  %v1152_v19 = vld [vmem:[%s1449_s1 + $0x238] sm:$0xff]   ;;  %v1183_v20 = vmov 0.0   ;;  %v217_v21 = vcombine.high %v201_v17, %v201_v17  ;;  %v1153_v22 = vld [vmem:[%s1449_s1 + $0x230] sm:$0xff]   ;;  %vm1184_vm0 = vmmov 0  }
  0x40   :  { %1063 = vmatprep.subr.bf16.mxu0 %v1183_v20  ;;  %v1154_v23 = vld [vmem:[%s1449_s1 + $0x228] sm:$0xff]   ;;  %v1155_v24 = vld [vmem:[%s1449_s1 + $0x220] sm:$0xff]   ;;  %v1156_v25 = vld [vmem:[%s1449_s1 + $0x218] sm:$0xff]   ;;  %s1185_s25 = smov [#allocation2]   ;;  %vm876_vm1 = vcmask 254976  }
  0x41   :  { %1047 = vmatpush3.bf16.msra.mxu1 %v1151_v18  ;;  %v1157_v26 = vld [vmem:[%s1449_s1 + $0x210] sm:$0xff]   ;;  %v1158_v27 = vld [vmem:[%s1449_s1 + $0x208] sm:$0xff]   ;;  %v1159_v28 = vld [vmem:[%s1449_s1 + $0x200] sm:$0xff]   ;;  %s884_s26 = sshll.u32 %s1185_s25, 4  ;;  %s885_s26 = int_to_ptr.vmem [resolvable:$true] %s884_s26 }
  0x42   :  { %788 = vmatmul.mubr.bf16.vlgmr.msra.gmra.mxu0 %v201_v17  ;;  %v893_v29 = vld.sshfl [vmem:[%s1448_s0 + $0x8] sm:$0x1 pattern:$0x75316420]  ;;  %s1160_s27 = scalar_lea.vmem %s885_s26, 32  ;;  %p1165_p1 = scmp.lt.s32.totalorder %s885_s26, %s885_s26 }
  0x43   :  { %1064 = vmatpush3.bf16.msra.mxu0 %v1152_v19  ;;  %1079 = vmatprep.mubr.msk.bf16.mxu0 %vm1184_vm0, %v1183_v20  ;;  %v233_v30 = vrot.slane %v893_v29, %v1311_v41  ;;  %v892_v41 = vld [vmem:[%s1450_s2] ss:$0 sm:$0xff]  ;;  %p1161_p0 = scmp.ne.s32.totalorder %s885_s26, %s1160_s27  ;;  %p1166_p2 = scmp.lt.s32.totalorder %s1160_s27, %s1160_s27 }
  0x44   :  { %828 = vmatmul.mubr.bf16.vlgmr.msra.gmra.mxu1 %v217_v21  ;;  %1065 = vmatprep.subr.bf16.mxu0 %v1183_v20 }
  0x45   :  { %p1167_p3 = por %p1166_p2, %p1165_p1 }
  0x47   :  { %1066 = vmatpush3.bf16.msra.mxu0 %v1153_v22  ;;  %p1168_p4 = pnand %p1167_p3, %p1161_p0 }
  0x48   :  { %1067 = vmatprep.subr.bf16.mxu0 %v1183_v20 }
  0x4b   :  { %1068 = vmatpush3.bf16.msra.mxu0 %v1154_v23 }
  0x4c   :  { %1069 = vmatprep.subr.bf16.mxu0 %v1183_v20 }
  0x4f   :  { %1070 = vmatpush3.bf16.msra.mxu0 %v1155_v24 }
  0x50   :  { %1071 = vmatprep.subr.bf16.mxu0 %v1183_v20 }
  0x53   :  { %1072 = vmatpush3.bf16.msra.mxu0 %v1156_v25 }
  0x54   :  { %1073 = vmatprep.subr.bf16.mxu0 %v1183_v20 }
  0x57   :  { %1074 = vmatpush3.bf16.msra.mxu0 %v1157_v26 }
  0x58   :  { %1075 = vmatprep.subr.bf16.mxu0 %v1183_v20 }
  0x5b   :  { %1076 = vmatpush3.bf16.msra.mxu0 %v1158_v27 }
  0x5c   :  { %1077 = vmatprep.subr.bf16.mxu0 %v1183_v20 }
  0x5f   :  { %1078 = vmatpush3.bf16.msra.mxu0 %v1159_v28 }
  0x62   :  { %1080 = vmatmul.mubr.bf16.vlgmr.msra.gmra.mxu0 %v233_v30 }
  0xe2   :  { %v982_v31 = vpop.f32.mrf.mxu0 }
  0xe4   :  { %v983_v32 = vpop.f32.mrf.mxu0  ;;  %v1004_v33 = vpop.f32.mrf.mxu1 }
  0xe5   :  { %v984_v48 = vadd.f32 %v983_v32, %v982_v31 }
  0xe6   :  { %v985_v34 = vpop.f32.mrf.mxu0  ;;  %v1005_v35 = vpop.f32.mrf.mxu1 }
  0xe7   :  { %v710_v49 = vadd.f32 %v984_v48, %v892_v41  ;;  %v1006_v50 = vadd.f32 %v1005_v35, %v1004_v33 }
  0xe8   :  { %v986_v36 = vpop.f32.mrf.mxu0  ;;  %v1007_v37 = vpop.f32.mrf.mxu1 }
  0xe9   :  { %v750_v52 = vadd.f32 %v1006_v50, %v710_v49 }
  0xea   :  { %v1008_v38 = vpop.f32.mrf.mxu1 }
 0x102   :  { %v1026_v39 = vpop.f32.mrf.mxu0 }
 0x104   :  { %v1027_v40 = vpop.f32.mrf.mxu0  ;;  %v1048_v42 = vpop.f32.mrf.mxu1 }
 0x105   :  { %v1028_v51 = vadd.f32 %v1027_v40, %v1026_v39 }
 0x106   :  { %v1029_v43 = vpop.f32.mrf.mxu0  ;;  %v1049_v44 = vpop.f32.mrf.mxu1 }
 0x107   :  { %v790_v53 = vadd.f32 %v1028_v51, %v750_v52  ;;  %v1050_v54 = vadd.f32 %v1049_v44, %v1048_v42 }
 0x108   :  { %v1030_v45 = vpop.f32.mrf.mxu0  ;;  %v1051_v46 = vpop.f32.mrf.mxu1 }
 0x109   :  { %v830_v55 = vadd.f32 %v1050_v54, %v790_v53 }
 0x10a   :  { %v1052_v47 = vpop.f32.mrf.mxu1 }
 0x122   :  { %v869_v56 = vpop.f32.mrf.mxu0 }
 0x123   :  { %v870_v57 = vadd.f32 %v869_v56, %v830_v55 }
 0x124   :  { %v1081_v58 = vpop.f32.mrf.mxu0 }
 0x125   :  { %v875_v59 = vmax.f32 %v870_v57, 0.0 }
 0x126   :  { %v872_v60 = vpop.f32.mrf.mxu0 }
 0x127   :  { %877 = vst.msk [vmem:[#allocation2] sm:$0x3] %vm876_vm1, %v875_v59 }
 0x128   :  { %v1082_v61 = vpop.f32.mrf.mxu0 }
 0x129   :  { %1171 = shalt.err (!%p1168_p4)
}
 0x12a   :  { %887 = dma.vmem_to_hbm [thread:$0]  %s885_s26, 32, %s1451_s3, [#allocation3]  }
 0x12b   :  { %1180 = dma.done.wait [#allocation3], 32  }
 0x12c   :  { %1181 = vsyncadd [#allocation3], 4294967264 }
 0x12d   :  { %891 = vsyncpa [#allocation3], 1 }

// kernel: aimas_cnn_forward.4
= control target key start
LH: loop header
LB: loop body
LE: loop exit
PB: predicated region body
PF: predicated region fallthrough
CT: control target
= control target key end

     0   :  { %s6192_s21 = smov 0   ;;  %s7282_s0 = inlined_call_operand.vmem [shape: bf16[2,36,512], index: 0, kind: input, shape index: {}]   ;;  %s7283_s1 = inlined_call_operand.vmem [shape: bf16[2,64,85], index: 1, kind: input, shape index: {}]   ;;  %s7284_s2 = inlined_call_operand.vmem [shape: bf16[2,1,4], index: 2, kind: input, shape index: {}]   ;;  %s7285_s3 = inlined_call_operand.vmem [shape: bf16[512,64], index: 3, kind: input, shape index: {}]   ;;  %s7286_s4 = inlined_call_operand.vmem [shape: f32[1,64], index: 4, kind: input, shape index: {}]   ;;  %s7287_s5 = inlined_call_operand.vmem [shape: bf16[85,64], index: 5, kind: input, shape index: {}]   ;;  %s7288_s6 = inlined_call_operand.vmem [shape: f32[1,64], index: 6, kind: input, shape index: {}]   ;;  %s7289_s7 = inlined_call_operand.vmem [shape: bf16[4,64], index: 7, kind: input, shape index: {}]   ;;  %s7290_s8 = inlined_call_operand.vmem [shape: bf16[9,128,128], index: 8, kind: input, shape index: {}]   ;;  %s7291_s9 = inlined_call_operand.vmem [shape: f32[1,128], index: 9, kind: input, shape index: {}]   ;;  %s7292_s10 = inlined_call_operand.vmem [shape: bf16[128,32], index: 10, kind: input, shape index: {}]   ;;  %s7293_s11 = inlined_call_operand.vmem [shape: f32[1,32], index: 11, kind: input, shape index: {}]   ;;  %s7294_s12 = inlined_call_operand.vmem [shape: bf16[2,36,32], index: 12, kind: output, shape index: {}]  }
   0x1 LB: > { %s5169_s22 = sadd.s32 4294967295, %s6119_s21   ;;  %p5173_p0 = scmp.ge.s32.totalorder %s6119_s21, 1  ;;  %s6119_s21 = sphi %s6192_s21, %s22_s21  }
   0x2   : > { %p380_p1 = scmp.lt.s32.totalorder %s6119_s21, 3 }
   0x4   : > { %p381_p2 = pnand %p5173_p0, %p380_p1 }
   0x5   : > { %p430_p3 = scmp.lt.s32.totalorder (!%p381_p2), %s5169_s22, 1  ;;  %s6125_s16 = smov (!%p381_p2), 64  }
   0x6   : > { %384 = sbr.rel (%p381_p2) target bundleno = 954 (0x3ba), region = 68 }
   0xb   : > { %v5974_v0 = vld [vmem:[%s7285_s3 + $0x78] sm:$0xff]   ;;  %v5978_v4 = vld [vmem:[%s7285_s3 + $0x70] sm:$0xff]   ;;  %v5982_v8 = vld [vmem:[%s7285_s3 + $0x68] sm:$0xff]   ;;  %v6121_v10 = vmov 0.0   ;;  %s7296_s22 = smov (!%p430_p3, %s5169_s22), 1  ;;  %vm899_vm0 = vcmask 1041408  }
   0xc   : > { %v5975_v1 = vld [vmem:[%s7285_s3 + $0xf8] sm:$0xff]   ;;  %5462 = vmatprep.subr.bf16.mxu0 %v5974_v0  ;;  %v5979_v5 = vld [vmem:[%s7285_s3 + $0xf0] sm:$0xff]   ;;  %v5983_v9 = vld [vmem:[%s7285_s3 + $0xe8] sm:$0xff]   ;;  %1126 = vst [vmem:[#allocation2] sm:$0xff] %v6121_v10  ;;  %s5958_s27 = smul.u32 80, %s7296_s22  ;;  %vm1032_vm1 = vcmask 1042432   ;;  %s442_s29 = scalar_lea.vmem %s7284_s2, %s7296_s22 }
   0xd   : > { %v5976_v2 = vld [vmem:[%s7285_s3 + $0x38] sm:$0xff]   ;;  %5496 = vmatprep.subr.bf16.mxu1 %v5975_v1  ;;  %v5980_v6 = vld [vmem:[%s7285_s3 + $0x30] sm:$0xff]   ;;  %1127 = vst [vmem:[#allocation2 + $0x8] sm:$0xff] %v6121_v10  ;;  %1128 = vst [vmem:[#allocation2 + $0x10] sm:$0xff] %v6121_v10  ;;  %v6122_v37 = vmov 65535   ;;  %s5456_s15 = sshll.u32 %s7296_s22, 5 }
   0xe   : > { %v5977_v3 = vld [vmem:[%s7285_s3 + $0xb8] sm:$0xff]   ;;  %5463 = vmatpush3.bf16.msra.mxu0 %v5976_v2  ;;  %v5981_v7 = vld [vmem:[%s7285_s3 + $0xb0] sm:$0xff]   ;;  %1129 = vst [vmem:[#allocation2 + $0x18] sm:$0xff] %v6121_v10  ;;  %1130 = vst [vmem:[#allocation2 + $0x20] sm:$0xff] %v6121_v10  ;;  %s434_s20 = scalar_lea.vmem %s7282_s0, %s5958_s27  ;;  %v1033_v38 = vsel %vm899_vm0, 4294967295, %v6122_v37  ;;  %s6330_s18 = scalar_lea.vmem %s7283_s1, %s5456_s15  ;;  %vm1019_vm2 = vcmask 695296   ;;  %v962_v2 = vlaneseq }
   0xf   : > { %5497 = vmatpush3.bf16.msra.mxu1 %v5977_v3  ;;  %5464 = vmatprep.subr.bf16.mxu0 %v5978_v4  ;;  %1131 = vst [vmem:[#allocation2 + $0x28] sm:$0xff] %v6121_v10  ;;  %1132 = vst [vmem:[#allocation2 + $0x30] sm:$0xff] %v6121_v10  ;;  %v5984_v11 = vld [vmem:[%s7285_s3 + $0x28] sm:$0xff]   ;;  %v5986_v13 = vld [vmem:[%s7285_s3 + $0x60] sm:$0xff]   ;;  %v1034_v43 = vsel %vm1032_vm1, %v1033_v38, 0  ;;  %vm895_vm3 = vcmask 31744  }
  0x10   : > { %5498 = vmatprep.subr.bf16.mxu1 %v5979_v5  ;;  %1133 = vst [vmem:[#allocation2 + $0x38] sm:$0xff] %v6121_v10  ;;  %v5985_v12 = vld [vmem:[%s7285_s3 + $0xa8] sm:$0xff]   ;;  %v5987_v14 = vld [vmem:[%s7285_s3 + $0xe0] sm:$0xff]   ;;  %v5990_v17 = vld [vmem:[%s7285_s3 + $0x58] sm:$0xff]   ;;  %vm6123_vm4 = vmmov 0   ;;  %vm1134_vm5 = vcmask 523264  }
  0x11   : > { %v5988_v15 = vld [vmem:[%s7285_s3 + $0x20] sm:$0xff]   ;;  %v5991_v18 = vld [vmem:[%s7285_s3 + $0xd8] sm:$0xff]   ;;  %v5994_v21 = vld [vmem:[%s7285_s3 + $0x50] sm:$0xff]   ;;  %v6124_v3 = vmov 1983009808   ;;  %vm1339_vm6 = vcmask 1046016  }
  0x12   : > { %5465 = vmatpush3.bf16.msra.mxu0 %v5980_v6  ;;  %v5989_v16 = vld [vmem:[%s7285_s3 + $0xa0] sm:$0xff]   ;;  %v5992_v19 = vld [vmem:[%s7285_s3 + $0x18] sm:$0xff]   ;;  %v5995_v22 = vld [vmem:[%s7285_s3 + $0xd0] sm:$0xff]   ;;  %v1150_v4 = vunpack.c.l.s4 %v6124_v3  ;;  %s5959_s23 = smul.u32 20, %s7296_s22  ;;  %vm5086_vm7 = vcmask 257024   ;;  %vm5091_vm8 = vcmask 254976  }
  0x13   : > { %5499 = vmatpush3.bf16.msra.mxu1 %v5981_v7  ;;  %5466 = vmatprep.subr.bf16.mxu0 %v5982_v8  ;;  %v5993_v20 = vld [vmem:[%s7285_s3 + $0x98] sm:$0xff]   ;;  %v5996_v23 = vld [vmem:[%s7285_s3 + $0x10] sm:$0xff]   ;;  %v5998_v25 = vld [vmem:[%s7285_s3 + $0x48] sm:$0xff]  }
  0x14   : > { %5500 = vmatprep.subr.bf16.mxu1 %v5983_v9  ;;  %v5997_v24 = vld [vmem:[%s7285_s3 + $0x90] sm:$0xff]   ;;  %v5999_v26 = vld [vmem:[%s7285_s3 + $0xc8] sm:$0xff]   ;;  %v6002_v29 = vld [vmem:[%s7285_s3 + $0x40] sm:$0xff]   ;;  %s447_s28 = scalar_lea.vmem %s7294_s12, %s5959_s23 }
  0x15   : > { %v6000_v27 = vld [vmem:[%s7285_s3 + $0x8] sm:$0xff]   ;;  %v6003_v30 = vld [vmem:[%s7285_s3 + $0xc0] sm:$0xff]   ;;  %v6024_v53 = vld [vmem:[%s7287_s5 + $0x18] sm:$0xff]  }
  0x16   : > { %5467 = vmatpush3.bf16.msra.mxu0 %v5984_v11  ;;  %v6001_v28 = vld [vmem:[%s7285_s3 + $0x88] sm:$0xff]   ;;  %v6004_v31 = vld [vmem:[%s7285_s3] sm:$0xff]   ;;  %v6025_v54 = vld [vmem:[%s7287_s5 + $0x10] sm:$0xff]  }
  0x17   : > { %5501 = vmatpush3.bf16.msra.mxu1 %v5985_v12  ;;  %5468 = vmatprep.subr.bf16.mxu0 %v5986_v13  ;;  %v6005_v32 = vld [vmem:[%s7285_s3 + $0x80] sm:$0xff]   ;;  %v6009_v35 = vld [vmem:[%s434_s20 + $0x8] ss:$16 sps:$4 sm:$0xff]   ;;  %v6011_v36 = vld [vmem:[%s434_s20 + $0xc] ss:$16 sps:$4 sm:$0xff]   ;;  %v6378_v12 = vshrl.u32 %v962_v2, 7  ;;  %v1151_v13 = vunpack.c.0.s8 %v1150_v4 }
  0x18   : > { %5502 = vmatprep.subr.bf16.mxu1 %v5987_v14  ;;  %v6006_v33 = vld [vmem:[%s434_s20] ss:$16 sps:$4 sm:$0xff]   ;;  %v6008_v34 = vld [vmem:[%s434_s20 + $0x4] ss:$16 sps:$4 sm:$0xff]   ;;  %864 = vmatprep.mubr.bf16.mxu1 %v6011_v36  ;;  %v6015_v40 = vld [vmem:[%s434_s20 + $0x2c] ss:$16 sps:$4 sm:$0xff]  }
  0x19   : > { %808 = vmatprep.mubr.bf16.mxu0 %v6008_v34  ;;  %v6012_v39 = vld [vmem:[%s434_s20 + $0x24] ss:$16 sps:$4 sm:$0xff]   ;;  %v458_v42 = vld [vmem:[%s434_s20 + $0x48] sm:$0x33]  ;;  %v6014_v44 = vld [vmem:[%s434_s20 + $0x20] ss:$16 sps:$4 sm:$0xff]  }
  0x1a   : > { %5469 = vmatpush3.bf16.msra.mxu0 %v5988_v15  ;;  %v457_v41 = vld [vmem:[%s434_s20 + $0x40] sm:$0x33]  ;;  %v6022_v45 = vld [vmem:[%s7287_s5 + $0x28] ss:$0 sps:$4 sm:$0x77]   ;;  %v5190_v52 = vcombine.high %v458_v42, %v458_v42  ;;  %v5189_v57 = vcombine.low %v458_v42, %v458_v42  ;;  %v6030_v62 = vld [vmem:[%s6330_s18 + $0x10] sm:$0xff]  }
  0x1b   : > { %5503 = vmatpush3.bf16.msra.mxu1 %v5989_v16  ;;  %5470 = vmatprep.subr.bf16.mxu0 %v5990_v17  ;;  %v6017_v46 = vld [vmem:[%s434_s20 + $0x28] ss:$16 sps:$4 sm:$0xff]   ;;  %v1036_v47 = vand.u32 %v6022_v45, %v1034_v43  ;;  %v6023_v48 = vld [vmem:[%s7287_s5 + $0x20] sm:$0xff]   ;;  %v5188_v50 = vcombine.high %v457_v41, %v457_v41  ;;  %v5187_v55 = vcombine.low %v457_v41, %v457_v41 }
  0x1c   : > { %5504 = vmatprep.subr.bf16.mxu1 %v5991_v18  ;;  %v894_v49 = vld [vmem:[%s7289_s7] sm:$0x3]  ;;  %v6026_v58 = vld [vmem:[%s7287_s5 + $0x8] sm:$0xff]   ;;  %v6031_v63 = vld [vmem:[%s6330_s18 + $0x18] sm:$0xff]  }
  0x1d   : > { %v901_v51 = vsel %vm899_vm0, %v894_v49, 0  ;;  %v6028_v56 = vld [vmem:[%s6330_s18] sm:$0xff]   ;;  %v6029_v61 = vld [vmem:[%s6330_s18 + $0x8] sm:$0xff]   ;;  %v6032_v0 = vld [vmem:[%s7290_s8 + $0x78] sm:$0xff]  }
  0x1e   : > { %5471 = vmatpush3.bf16.msra.mxu0 %v5992_v19  ;;  %v6027_v59 = vld [vmem:[%s7287_s5] sm:$0xff]   ;;  %v6033_v1 = vld [vmem:[%s7290_s8 + $0x38] sm:$0xff]   ;;  %v6036_v49 = vld [vmem:[%s7290_s8 + $0x68] sm:$0xff]  }
  0x1f   : > { %5505 = vmatpush3.bf16.msra.mxu1 %v5993_v20  ;;  %5472 = vmatprep.subr.bf16.mxu0 %v5994_v21  ;;  %v893_v60 = vld [vmem:[%s442_s29] sm:$0x1]  ;;  %v6382_v20 = vsub.s32 %v1151_v13, %v6378_v12 }
  0x20   : > { %5506 = vmatprep.subr.bf16.mxu1 %v5995_v22  ;;  %v6376_v7 = vld [vmem:[%s7286_s4] ss:$0 sm:$0xff] }
  0x22   : > { %5473 = vmatpush3.bf16.msra.mxu0 %v5996_v23 }
  0x23   : > { %5507 = vmatpush3.bf16.msra.mxu1 %v5997_v24  ;;  %5474 = vmatprep.subr.bf16.mxu0 %v5998_v25 }
  0x24   : > { %5508 = vmatprep.subr.bf16.mxu1 %v5999_v26 }
  0x26   : > { %5475 = vmatpush3.bf16.msra.mxu0 %v6000_v27 }
  0x27   : > { %5509 = vmatpush3.bf16.msra.mxu1 %v6001_v28  ;;  %5476 = vmatprep.subr.bf16.mxu0 %v6002_v29  ;;  %v6034_v28 = vld [vmem:[%s7290_s8 + $0x70] sm:$0xff]  }
  0x28   : > { %5510 = vmatprep.subr.bf16.mxu1 %v6003_v30  ;;  %v6035_v29 = vld [vmem:[%s7290_s8 + $0x30] sm:$0xff]  }
  0x2a   : > { %5477 = vmatpush3.bf16.msra.mxu0 %v6004_v31 }
  0x2b   : > { %5511 = vmatpush3.bf16.msra.mxu1 %v6005_v32  ;;  %5652 = vmatprep.subr.bf16.mxu0 %v6121_v10 }
  0x2c   : > { %5658 = vmatprep.subr.bf16.mxu1 %v1036_v47 }
  0x2d   : > { %809 = vmatmul.mubr.bf16.vlgmr.msra.gmra.mxu0 %v6006_v33 }
  0x2e   : > { %865 = vmatmul.mubr.bf16.vlgmr.msra.gmra.mxu1 %v6009_v35  ;;  %816 = vmatprep.mubr.bf16.mxu0 %v6012_v39 }
  0x2f   : > { %872 = vmatprep.mubr.bf16.mxu1 %v6015_v40  ;;  %5653 = vmatpush3.bf16.msra.mxu0 %v901_v51 }
  0x30   : > { %5659 = vmatpush3.bf16.msra.mxu1 %v1036_v47  ;;  %5678 = vmatprep.subr.bf16.mxu0 %v6121_v10 }
  0x31   : > { %5660 = vmatprep.subr.bf16.mxu1 %v6023_v48 }
  0x34   : > { %5661 = vmatpush3.bf16.msra.mxu1 %v6023_v48 }
  0x35   : > { %817 = vmatmul.mubr.bf16.gmra.mxu0 %v6014_v44  ;;  %5662 = vmatprep.subr.bf16.mxu1 %v6024_v53 }
  0x36   : > { %873 = vmatmul.mubr.bf16.gmra.mxu1 %v6017_v46  ;;  %824 = vmatprep.mubr.bf16.mxu0 %v5188_v50  ;;  %v6037_v50 = vld [vmem:[%s7290_s8 + $0x28] sm:$0xff]  }
  0x37   : > { %880 = vmatprep.mubr.bf16.mxu1 %v5190_v52 }
  0x38   : > { %5663 = vmatpush3.bf16.msra.mxu1 %v6024_v53 }
  0x39   : > { %5664 = vmatprep.subr.bf16.mxu1 %v6025_v54 }
  0x3c   : > { %5665 = vmatpush3.bf16.msra.mxu1 %v6025_v54 }
  0x3d   : > { %825 = vmatmul.mubr.bf16.gmra.mxu0 %v5187_v55  ;;  %5666 = vmatprep.subr.bf16.mxu1 %v6026_v58 }
  0x3e   : > { %881 = vmatmul.mubr.bf16.gmra.mxu1 %v5189_v57  ;;  %5654 = vmatprep.mubr.msk.bf16.mxu0 %vm6123_vm4, %v6121_v10 }
  0x3f   : > { %5670 = vmatprep.mubr.msk.bf16.mxu1 %vm1019_vm2, %v6028_v56 }
  0x40   : > { %5667 = vmatpush3.bf16.msra.mxu1 %v6026_v58 }
  0x41   : > { %5668 = vmatprep.subr.bf16.mxu1 %v6027_v59 }
  0x44   : > { %5669 = vmatpush3.bf16.msra.mxu1 %v6027_v59 }
  0x45   : > { %5655 = vmatmul.mubr.msk.bf16.vlgmr.msra.gmra.mxu0 %vm895_vm3, %v893_v60  ;;  %5706 = vmatprep.subr.bf16.mxu1 %v6121_v10 }
  0x46   : > { %5694 = vmatprep.mubr.msk.bf16.mxu0 %vm6123_vm4, %v6121_v10  ;;  %5679 = vmatpush3.bf16.msra.mxu0 %v6032_v0 }
  0x47   : > { %5671 = vmatmul.mubr.msk.bf16.vlgmr.msra.gmra.mxu1 %vm1019_vm2, %v6029_v61  ;;  %5680 = vmatprep.subr.bf16.mxu0 %v6121_v10 }
  0x48   : > { %5674 = vmatprep.mubr.msk.bf16.mxu1 %vm1019_vm2, %v6030_v62  ;;  %5707 = vmatpush3.bf16.msra.mxu1 %v6033_v1 }
  0x49   : > { %5708 = vmatprep.subr.bf16.mxu1 %v6121_v10 }
  0x4a   : > { %5681 = vmatpush3.bf16.msra.mxu0 %v6034_v28 }
  0x4b   : > { %5682 = vmatprep.subr.bf16.mxu0 %v6121_v10 }
  0x4c   : > { %5709 = vmatpush3.bf16.msra.mxu1 %v6035_v29  ;;  %v6041_v29 = vld [vmem:[%s7290_s8 + $0x18] sm:$0xff]  }
  0x4d   : > { %5710 = vmatprep.subr.bf16.mxu1 %v6121_v10 }
  0x4e   : > { %5683 = vmatpush3.bf16.msra.mxu0 %v6036_v49 }
  0x4f   : > { %5675 = vmatmul.mubr.msk.bf16.gmra.mxu1 %vm1019_vm2, %v6031_v63  ;;  %5684 = vmatprep.subr.bf16.mxu0 %v6121_v10 }
  0x50   : > { %5722 = vmatprep.mubr.msk.bf16.mxu1 %vm6123_vm4, %v6121_v10  ;;  %5711 = vmatpush3.bf16.msra.mxu1 %v6037_v50 }
  0x51   : > { %5712 = vmatprep.subr.bf16.mxu1 %v6121_v10 }
  0xed   : > { %v5478_v5 = vpop.f32.mrf.mxu0 }
  0xee   : > { %v5512_v6 = vpop.f32.mrf.mxu1 }
  0xef   : > { %v5479_v8 = vpop.f32.mrf.mxu0 }
  0xf0   : > { %v5480_v9 = vadd.f32 %v5479_v8, %v5478_v5  ;;  %v5513_v11 = vpop.f32.mrf.mxu1  ;;  %v6038_v5 = vld [vmem:[%s7290_s8 + $0x60] sm:$0xff]  }
  0xf1   : > { %v5481_v14 = vpop.f32.mrf.mxu0  ;;  %v5514_v16 = vadd.f32 %v5513_v11, %v5512_v6  ;;  %v6039_v6 = vld [vmem:[%s7290_s8 + $0x20] sm:$0xff]   ;;  %5685 = vmatpush3.bf16.msra.mxu0 %v6038_v5 }
  0xf2   : > { %v811_v15 = vadd.f32 %v5480_v9, %v6376_v7  ;;  %v5515_v17 = vpop.f32.mrf.mxu1  ;;  %5713 = vmatpush3.bf16.msra.mxu1 %v6039_v6  ;;  %5686 = vmatprep.subr.bf16.mxu0 %v6121_v10  ;;  %v6047_v5 = vld [vmem:[%s7290_s8] sm:$0xff]  }
  0xf3   : > { %v5482_v18 = vpop.f32.mrf.mxu0  ;;  %5714 = vmatprep.subr.bf16.mxu1 %v6121_v10 }
  0xf4   : > { %v867_v19 = vadd.f32 %v5514_v16, %v811_v15  ;;  %v5483_v21 = vadd.f32 %v5482_v18, %v5481_v14  ;;  %v5516_v22 = vpop.f32.mrf.mxu1 }
  0xf5   : > { %v5484_v23 = vpop.f32.mrf.mxu0  ;;  %v5517_v26 = vadd.f32 %v5516_v22, %v5515_v17 }
  0xf6   : > { %v888_v24 = vmax.f32 %v867_v19, 0.0  ;;  %v814_v25 = vadd.f32 %v5483_v21, %v6376_v7  ;;  %v5518_v27 = vpop.f32.mrf.mxu1  ;;  %5715 = vmatpush3.bf16.msra.mxu1 %v6041_v29 }
  0xf7   : > { %v5485_v30 = vpop.f32.mrf.mxu0  ;;  %5716 = vmatprep.subr.bf16.mxu1 %v6121_v10 }
  0xf8   : > { %v1148_v31 = vcombine.high %v888_v24, %v888_v24  ;;  %v1155_v32 = vrot.slane %v888_v24, %v6382_v20  ;;  %v870_v33 = vadd.f32 %v5517_v26, %v814_v25  ;;  %v5486_v34 = vadd.f32 %v5485_v30, %v5484_v23  ;;  %v5519_v35 = vpop.f32.mrf.mxu1 }
  0xf9   : > { %v5487_v36 = vpop.f32.mrf.mxu0  ;;  %v5520_v37 = vadd.f32 %v5519_v35, %v5518_v27  ;;  %v964_v23 = vsub.s32 0, %v6378_v12 }
  0xfa   : > { %v1163_v38 = vcombine.high %v1155_v32, %v1155_v32  ;;  %v889_v39 = vmax.f32 %v870_v33, 0.0  ;;  %v819_v40 = vadd.f32 %v5486_v34, %v6376_v7  ;;  %v5521_v41 = vpop.f32.mrf.mxu1  ;;  %v1162_v42 = vrot.slane %v1148_v31, %v6382_v20 }
  0xfb   : > { %v5488_v43 = vpop.f32.mrf.mxu0 }
  0xfc   : > { %v1165_v44 = vcombine.high %v889_v39, %v889_v39  ;;  %v1172_v45 = vrot.slane %v889_v39, %v6382_v20  ;;  %v875_v46 = vadd.f32 %v5520_v37, %v819_v40  ;;  %v5489_v47 = vadd.f32 %v5488_v43, %v5487_v36  ;;  %v5522_v48 = vpop.f32.mrf.mxu1  ;;  %v6043_v39 = vld [vmem:[%s7290_s8 + $0x10] sm:$0xff]  }
  0xfd   : > { %v5490_v51 = vpop.f32.mrf.mxu0  ;;  %v5523_v52 = vadd.f32 %v5522_v48, %v5521_v41  ;;  %v1224_v53 = vcombine.low %v1155_v32, %v1163_v38  ;;  %v1164_v54 = vcombine.high %v1162_v42, %v1162_v42  ;;  %v1238_v59 = vrot.slane %v1162_v42, %v6382_v20  ;;  %v6042_v38 = vld [vmem:[%s7290_s8 + $0x50] sm:$0xff]   ;;  %5717 = vmatpush3.bf16.msra.mxu1 %v6043_v39 }
  0xfe   : > { %v1180_v55 = vcombine.high %v1172_v45, %v1172_v45  ;;  %v890_v56 = vmax.f32 %v875_v46, 0.0  ;;  %v822_v57 = vadd.f32 %v5489_v47, %v6376_v7  ;;  %v5524_v58 = vpop.f32.mrf.mxu1  ;;  %v1179_v60 = vrot.slane %v1165_v44, %v6382_v20 }
  0xff   : > { %v5491_v61 = vpop.f32.mrf.mxu0  ;;  %v1231_v62 = vrot.slane %v1224_v53, %v6382_v20  ;;  %v1240_v63 = vcombine.low %v1164_v54, %v1172_v45  ;;  %v6044_v54 = vld [vmem:[%s7290_s8 + $0x48] sm:$0xff]  }
 0x100   : > { %v1182_v0 = vcombine.high %v890_v56, %v890_v56  ;;  %v1189_v1 = vrot.slane %v890_v56, %v6382_v20  ;;  %v878_v2 = vadd.f32 %v5523_v52, %v822_v57  ;;  %v5492_v3 = vadd.f32 %v5491_v61, %v5490_v51  ;;  %v5525_v4 = vpop.f32.mrf.mxu1 }
 0x101   : > { %v5526_v8 = vadd.f32 %v5525_v4, %v5524_v58  ;;  %v1239_v9 = vcombine.low %v1231_v62, %v1238_v59  ;;  %v1247_v11 = vrot.slane %v1240_v63, %v6382_v20  ;;  %v1254_v13 = vrot.slane %v1180_v55, %v6382_v20  ;;  %v5493_v14 = vpop.f32.mrf.mxu0  ;;  %v6045_v58 = vld [vmem:[%s7290_s8 + $0x8] sm:$0xff]   ;;  %v6461_v63 = vld [vmem:[#allocation2] sm:$0xff] }
 0x102   : > { %v1196_v15 = vrot.slane %v1182_v0, %v6382_v20  ;;  %v1197_v16 = vcombine.high %v1189_v1, %v1189_v1  ;;  %v891_v17 = vmax.f32 %v878_v2, 0.0  ;;  %v827_v18 = vadd.f32 %v5492_v3, %v6376_v7  ;;  %v5527_v19 = vpop.f32.mrf.mxu1  ;;  %v6040_v7 = vld [vmem:[%s7290_s8 + $0x58] sm:$0xff]   ;;  %5718 = vmatprep.subr.bf16.mxu1 %v6461_v63 }
 0x103   : > { %1320 = vrot.lane.b32.xlu0 %v1239_v9, %s6125_s16  ;;  %v1181_v21 = vcombine.high %v1179_v60, %v1179_v60  ;;  %v5494_v22 = vpop.f32.mrf.mxu0  ;;  %v1255_v30 = vcombine.low %v1247_v11, %v1254_v13  ;;  %v1270_v32 = vrot.slane %v1189_v1, %v6382_v20  ;;  %5687 = vmatpush3.bf16.msra.mxu0 %v6040_v7 }
 0x104   : > { %v1199_v24 = vcombine.high %v891_v17, %v891_v17  ;;  %v1206_v25 = vrot.slane %v891_v17, %v6382_v20  ;;  %v883_v26 = vadd.f32 %v5526_v8, %v827_v18  ;;  %v1198_v27 = vcombine.high %v1196_v15, %v1196_v15  ;;  %v5528_v28 = vpop.f32.mrf.mxu1  ;;  %5688 = vmatprep.subr.bf16.mxu0 %v6121_v10 }
 0x105   : > { %v1256_v31 = vcombine.low %v1179_v60, %v1181_v21  ;;  %v1272_v33 = vcombine.low %v1197_v16, %v1196_v15  ;;  %v937_v34 = vpop.f32.mrf.mxu0  ;;  %5719 = vmatpush3.bf16.msra.mxu1 %v6045_v58 }
 0x106   : > { %v1213_v35 = vrot.slane %v1199_v24, %v6382_v20  ;;  %v1214_v36 = vcombine.high %v1206_v25, %v1206_v25  ;;  %v892_v37 = vmax.f32 %v883_v26, 0.0  ;;  %v1286_v42 = vrot.slane %v1198_v27, %v6382_v20  ;;  %5720 = vmatprep.subr.bf16.mxu1 %v6461_v63 }
 0x107   : > { %1322 = vrot.lane.b32.xlu0 %v1255_v30, %s6125_s16  ;;  %v1263_v40 = vrot.slane %v1256_v31, %v6382_v20  ;;  %v1279_v41 = vrot.slane %v1272_v33, %v6382_v20  ;;  %v5656_v43 = vpop.f32.mrf.mxu0  ;;  %v6447_v49 = vrot.slane %v937_v34, %v964_v23  ;;  %5689 = vmatpush3.bf16.msra.mxu0 %v6042_v38  ;;  %v5672_v56 = vpop.f32.mrf.mxu1 }
 0x108   : > { %v1288_v44 = vcombine.low %v1206_v25, %v1214_v36  ;;  %v1215_v45 = vcombine.high %v1213_v35, %v1213_v35  ;;  %v1222_v46 = vrot.slane %v892_v37, %v6382_v20  ;;  %v1302_v47 = vrot.slane %v1213_v35, %v6382_v20  ;;  %5690 = vmatprep.subr.bf16.mxu0 %v6121_v10  ;;  %v5238_v10 = vld [vmem:[%s7288_s6] ss:$0 sm:$0xff] }
 0x109   : > { %v1271_v48 = vcombine.low %v1263_v40, %v1270_v32  ;;  %v940_v50 = vpop.f32.mrf.mxu0  ;;  %v1287_v55 = vcombine.low %v1279_v41, %v1286_v42  ;;  %v1081_v62 = vadd.f32 %v5672_v56, %v6447_v49  ;;  %v1072_v0 = vpop.f32.mrf.mxu1  ;;  %5721 = vmatpush3.bf16.msra.mxu1 %v6047_v5  ;;  %v6126_v35 = vmov 1966171168  }
 0x10a   : > { %v1223_v51 = vcombine.high %v1222_v46, %v1222_v46  ;;  %v1304_v52 = vcombine.low %v1215_v45, %v1222_v46  ;;  %v1295_v53 = vrot.slane %v1288_v44, %v6382_v20  ;;  %v1073_v1 = vadd.f32 %v1072_v0, %v6447_v49  ;;  %5762 = vmatprep.subr.bf16.mxu1 %v6461_v63 }
 0x10b   : > { %1324 = vrot.lane.b32.xlu1 %v1271_v48, %s6125_s16  ;;  %v5657_v57 = vpop.f32.mrf.mxu0  ;;  %v1112_v2 = vadd.f32 %v5238_v10, %v1081_v62  ;;  %5691 = vmatpush3.bf16.msra.mxu0 %v6044_v54  ;;  %v5673_v4 = vpop.f32.mrf.mxu1  ;;  %v1365_v36 = vunpack.c.l.s4 %v6126_v35 }
 0x10c   : > { %v1303_v59 = vcombine.low %v1295_v53, %v1302_v47  ;;  %v1311_v60 = vrot.slane %v1304_v52, %v6382_v20  ;;  %v1318_v61 = vrot.slane %v1223_v51, %v6382_v20  ;;  %v6046_v20 = vld [vmem:[%s7290_s8 + $0x40] sm:$0xff]   ;;  %v1084_v6 = vadd.f32 %v5673_v4, %v6447_v49  ;;  %5692 = vmatprep.subr.bf16.mxu0 %v6461_v63 }
 0x10d   : > { %v1110_v8 = vadd.f32 %v5238_v10, %v1073_v1  ;;  %v1120_v9 = vmax.f32 %v1112_v2, 0.0  ;;  %v1075_v11 = vpop.f32.mrf.mxu1  ;;  %v1366_v37 = vunpack.c.0.s8 %v1365_v36 }
 0x10e   : > { %1328 = vrot.lane.b32.xlu0 %v1303_v59, %s6125_s16  ;;  %v1319_v3 = vcombine.low %v1311_v60, %v1318_v61  ;;  %v1113_v13 = vadd.f32 %v5238_v10, %v1084_v6  ;;  %v1076_v15 = vadd.f32 %v1075_v11, %v6447_v49 }
 0x10f   : > { %1326 = vrot.lane.b32.xlu1 %v1287_v55, %s6125_s16  ;;  %v1118_v14 = vmax.f32 %v1110_v8, 0.0  ;;  %1137 = vst.msk [vmem:[#allocation2 + $0x10] sm:$0xff] %vm1134_vm5, %v1120_v9  ;;  %5693 = vmatpush3.bf16.msra.mxu0 %v6046_v20  ;;  %v5676_v16 = vpop.f32.mrf.mxu1  ;;  %v6496_v41 = vsub.s32 %v1366_v37, %v6378_v12 }
 0x110   : > { %v1121_v17 = vmax.f32 %v1113_v13, 0.0  ;;  %v1111_v18 = vadd.f32 %v5238_v10, %v1076_v15  ;;  %v1097_v19 = vadd.f32 %v5676_v16, %v6447_v49  ;;  %5734 = vmatprep.subr.bf16.mxu0 %v6461_v63 }
 0x111   : > { %1135 = vst.msk [vmem:[#allocation2] sm:$0xff] %vm1134_vm5, %v1118_v14  ;;  %v1088_v21 = vpop.f32.mrf.mxu1 }
 0x112   : > { %1138 = vst.msk [vmem:[#allocation2 + $0x18] sm:$0xff] %vm1134_vm5, %v1121_v17  ;;  %v1119_v22 = vmax.f32 %v1111_v18, 0.0  ;;  %v1116_v23 = vadd.f32 %v5238_v10, %v1097_v19  ;;  %v1089_v24 = vadd.f32 %v1088_v21, %v6447_v49 }
 0x113   : > { %1330 = vrot.lane.b32.xlu1 %v1319_v3, %s6125_s16  ;;  %v5677_v25 = vpop.f32.mrf.mxu1 }
 0x114   : > { %1136 = vst.msk [vmem:[#allocation2 + $0x8] sm:$0xff] %vm1134_vm5, %v1119_v22  ;;  %v1124_v26 = vmax.f32 %v1116_v23, 0.0  ;;  %v1114_v27 = vadd.f32 %v5238_v10, %v1089_v24  ;;  %v1100_v28 = vadd.f32 %v5677_v25, %v6447_v49 }
 0x115   : > { %v1091_v7 = vpop.f32.mrf.mxu1 }
 0x116   : > { %1141 = vst.msk [vmem:[#allocation2 + $0x30] sm:$0xff] %vm1134_vm5, %v1124_v26  ;;  %v1122_v29 = vmax.f32 %v1114_v27, 0.0  ;;  %v1117_v30 = vadd.f32 %v5238_v10, %v1100_v28  ;;  %v1092_v31 = vadd.f32 %v1091_v7, %v6447_v49 }
 0x118   : > { %1139 = vst.msk [vmem:[#allocation2 + $0x20] sm:$0xff] %vm1134_vm5, %v1122_v29  ;;  %v1125_v32 = vmax.f32 %v1117_v30, 0.0  ;;  %v1115_v33 = vadd.f32 %v5238_v10, %v1092_v31  ;;  %v1518_v38 = vld [vmem:[#allocation2 + $0x1] sm:$0x3f] }
 0x119   : > { %v1346_v39 = vld [vmem:[#allocation2] sm:$0x3f]  ;;  %v1524_v42 = vpack.c.bf16 %v1518_v38, %v1518_v38 }
 0x11a   : > { %1142 = vst.msk [vmem:[#allocation2 + $0x38] sm:$0xff] %vm1134_vm5, %v1125_v32  ;;  %v1123_v34 = vmax.f32 %v1115_v33, 0.0  ;;  %v2131_v40 = vld [vmem:[#allocation2 + $0x2] sm:$0x3f]  ;;  %v1352_v43 = vpack.c.bf16 %v1346_v39, %v1346_v39 }
 0x11b   : > { %v2137_v45 = vpack.c.bf16 %v2131_v40, %v2131_v40  ;;  %v1542_v48 = vrot.slane %v1524_v42, %v6496_v41 }
 0x11c   : > { %1140 = vst.msk [vmem:[#allocation2 + $0x28] sm:$0xff] %vm1134_vm5, %v1123_v34  ;;  %v1370_v49 = vrot.slane %v1352_v43, %v6496_v41 }
 0x11d   : > { %v2155_v50 = vrot.slane %v2137_v45, %v6496_v41  ;;  %v1543_v53 = vcombine.high %v1542_v48, %v1542_v48  ;;  %v6507_v59 = vrot.slane %v1542_v48, %v6496_v41 }
 0x11e   : > { %v1371_v54 = vcombine.high %v1370_v49, %v1370_v49  ;;  %v6511_v61 = vrot.slane %v1370_v49, %v6496_v41 }
 0x11f   : > { %v2156_v55 = vcombine.high %v2155_v50, %v2155_v50  ;;  %v1557_v60 = vrot.slane %v1543_v53, %v6496_v41  ;;  %v6516_v0 = vrot.slane %v2155_v50, %v6496_v41  ;;  %v1558_v13 = vcombine.high %v6507_v59, %v6507_v59 }
 0x120   : > { %v1385_v62 = vrot.slane %v1371_v54, %v6496_v41  ;;  %v1386_v19 = vcombine.high %v6511_v61, %v6511_v61 }
 0x121   : > { %v3729_v44 = vld [vmem:[#allocation2 + $0x38] sm:$0x3f]  ;;  %v2170_v10 = vrot.slane %v2156_v55, %v6496_v41  ;;  %v1691_v5 = vcombine.low %v6507_v59, %v1557_v60  ;;  %v2171_v23 = vcombine.high %v6516_v0, %v6516_v0 }
 0x122   : > { %v3735_v46 = vpack.c.bf16 %v3729_v44, %v3729_v44  ;;  %v4127_v47 = vld [vmem:[#allocation2 + $0x39] sm:$0x3f]  ;;  %v1911_v6 = vcombine.low %v6511_v61, %v1385_v62 }
 0x123   : > { %v4133_v51 = vpack.c.bf16 %v4127_v47, %v4127_v47  ;;  %v2304_v8 = vcombine.low %v6516_v0, %v2170_v10  ;;  %v6537_v17 = vrot.slane %v1691_v5, %v6496_v41  ;;  %v6552_v34 = vld [vmem:[#allocation2 + $0x3a] sm:$0x3f] }
 0x124   : > { %v3863_v52 = vrot.slane %v3735_v46, %v6496_v41  ;;  %v6542_v21 = vrot.slane %v1911_v6, %v6496_v41  ;;  %v4531_v48 = vpack.c.bf16 %v6552_v34, %v6552_v34  ;;  %v6057_v0 = vld [vmem:[%s7290_s8 + $0xd8] sm:$0xff]   ;;  %v6103_v34 = vld [vmem:[%s7290_s8 + $0x200] sm:$0xff]  }
 0x125   : > { %v4261_v12 = vrot.slane %v4133_v51, %v6496_v41  ;;  %v6548_v27 = vrot.slane %v2304_v8, %v6496_v41 }
 0x126   : > { %v6504_v56 = vrot.slane %v3863_v52, %v6496_v41  ;;  %v3864_v57 = vcombine.high %v3863_v52, %v3863_v52 }
 0x127   : > { %v6520_v1 = vrot.slane %v4261_v12, %v6496_v41  ;;  %v4262_v2 = vcombine.high %v4261_v12, %v4261_v12 }
 0x128   : > { %v3878_v20 = vrot.slane %v3864_v57, %v6496_v41  ;;  %v3879_v3 = vcombine.high %v6504_v56, %v6504_v56 }
 0x129   : > { %v4276_v9 = vrot.slane %v4262_v2, %v6496_v41  ;;  %v4277_v11 = vcombine.high %v6520_v1, %v6520_v1 }
 0x12a   : > { %v6534_v14 = vcombine.low %v3878_v20, %v3879_v3 }
 0x12b   : > { %v6550_v33 = vcombine.low %v4276_v9, %v4277_v11 }
 0x12c   : > { %v4002_v39 = vrot.slane %v6534_v14, %v6496_v41 }
 0x175   : > { %v1321_v58 = vpop.permute.xlu0 %1320 }
 0x176   : > { %1340 = vst.msk [vmem:[#allocation2 + $0x9] sm:$0x3f] %vm1339_vm6, %v1321_v58 }
 0x179   : > { %v1323_v4 = vpop.permute.xlu0 %1322 }
 0x17a   : > { %1341 = vst.msk [vmem:[#allocation2 + $0x11] sm:$0x3f] %vm1339_vm6, %v1323_v4 }
 0x17d   : > { %v1325_v15 = vpop.permute.xlu1 %1324  ;;  %v1519_v16 = vld [vmem:[#allocation2 + $0x9] sm:$0x3f] }
 0x17e   : > { %v1347_v18 = vld [vmem:[#allocation2 + $0x8] sm:$0x3f]  ;;  %1342 = vst.msk [vmem:[#allocation2 + $0x19] sm:$0x3f] %vm1339_vm6, %v1325_v15  ;;  %v1525_v24 = vpack.c.bf16 %v1519_v16, %v1519_v16 }
 0x17f   : > { %v2132_v22 = vld [vmem:[#allocation2 + $0xa] sm:$0x3f]  ;;  %v1353_v25 = vpack.c.bf16 %v1347_v18, %v1347_v18 }
 0x180   : > { %v2138_v26 = vpack.c.bf16 %v2132_v22, %v2132_v22  ;;  %v2529_v28 = vld [vmem:[#allocation2 + $0x8] sm:$0x3f]  ;;  %v1329_v35 = vpop.permute.xlu0 %1328  ;;  %v1565_v36 = vrot.slane %v1525_v24, %v6496_v41 }
 0x181   : > { %v2927_v7 = vld [vmem:[#allocation2 + $0x9] sm:$0x3f]  ;;  %v2535_v30 = vpack.c.bf16 %v2529_v28, %v2529_v28  ;;  %v1393_v37 = vrot.slane %v1353_v25, %v6496_v41  ;;  %v1327_v40 = vpop.permute.xlu1 %1326  ;;  %1344 = vst.msk [vmem:[#allocation2 + $0x29] sm:$0x3f] %vm1339_vm6, %v1329_v35  ;;  %v1520_v42 = vld [vmem:[#allocation2 + $0x11] sm:$0x3f] }
 0x182   : > { %v3325_v29 = vld [vmem:[#allocation2 + $0xa] sm:$0x3f]  ;;  %v2933_v31 = vpack.c.bf16 %v2927_v7, %v2927_v7  ;;  %v6557_v38 = vrot.slane %v2138_v26, %v6496_v41  ;;  %v1348_v43 = vld [vmem:[#allocation2 + $0x10] sm:$0x3f]  ;;  %1343 = vst.msk [vmem:[#allocation2 + $0x21] sm:$0x3f] %vm1339_vm6, %v1327_v40  ;;  %v1526_v49 = vpack.c.bf16 %v1520_v42, %v1520_v42  ;;  %v1566_v50 = vcombine.high %v1565_v36, %v1565_v36 }
 0x183   : > { %v3331_v32 = vpack.c.bf16 %v3325_v29, %v3325_v29  ;;  %v6562_v44 = vld [vmem:[#allocation2 + $0x12] sm:$0x3f]  ;;  %v6565_v45 = vrot.slane %v2535_v30, %v6496_v41  ;;  %v1573_v51 = vrot.slane %v1565_v36, %v6496_v41  ;;  %v1354_v52 = vpack.c.bf16 %v1348_v43, %v1348_v43 }
 0x184   : > { %v6568_v46 = vrot.slane %v2933_v31, %v6496_v41  ;;  %v1394_v53 = vcombine.high %v1393_v37, %v1393_v37  ;;  %v1401_v54 = vrot.slane %v1393_v37, %v6496_v41  ;;  %v2139_v55 = vpack.c.bf16 %v6562_v44, %v6562_v44  ;;  %v6055_v44 = vld [vmem:[%s7290_s8 + $0xe0] sm:$0xff]  }
 0x185   : > { %v6571_v47 = vrot.slane %v3331_v32, %v6496_v41  ;;  %v2179_v12 = vcombine.high %v6557_v38, %v6557_v38  ;;  %v1580_v57 = vrot.slane %v1566_v50, %v6496_v41  ;;  %v1581_v58 = vcombine.high %v1573_v51, %v1573_v51  ;;  %v1331_v61 = vpop.permute.xlu1 %1330  ;;  %v1521_v3 = vld [vmem:[#allocation2 + $0x19] sm:$0x3f] }
 0x186   : > { %v1588_v59 = vrot.slane %v1526_v49, %v6496_v41  ;;  %v1692_v60 = vcombine.low %v1558_v13, %v1573_v51  ;;  %v1408_v62 = vrot.slane %v1394_v53, %v6496_v41  ;;  %v1409_v10 = vcombine.high %v1401_v54, %v1401_v54  ;;  %1345 = vst.msk [vmem:[#allocation2 + $0x31] sm:$0x3f] %vm1339_vm6, %v1331_v61  ;;  %v1349_v30 = vld [vmem:[#allocation2 + $0x18] sm:$0x3f] }
 0x187   : > { %v1416_v2 = vrot.slane %v1354_v52, %v6496_v41  ;;  %v1912_v20 = vcombine.low %v1386_v19, %v1401_v54  ;;  %v1693_v6 = vcombine.low %v1580_v57, %v1581_v58  ;;  %v1527_v24 = vpack.c.bf16 %v1521_v3, %v1521_v3 }
 0x188   : > { %v1589_v4 = vcombine.high %v1588_v59, %v1588_v59  ;;  %v1596_v5 = vrot.slane %v1588_v59, %v6496_v41  ;;  %v1708_v8 = vrot.slane %v1692_v60, %v6496_v41  ;;  %v1913_v13 = vcombine.low %v1408_v62, %v1409_v10  ;;  %v1523_v22 = vld [vmem:[#allocation2 + $0x29] sm:$0x3f] }
 0x189   : > { %v1417_v9 = vcombine.high %v1416_v2, %v1416_v2  ;;  %v6590_v11 = vrot.slane %v1416_v2, %v6496_v41  ;;  %v1928_v15 = vrot.slane %v1912_v20, %v6496_v41  ;;  %v1715_v18 = vrot.slane %v1693_v6, %v6496_v41  ;;  %v1522_v7 = vld [vmem:[#allocation2 + $0x21] sm:$0x3f]  ;;  %v1351_v49 = vld [vmem:[#allocation2 + $0x28] sm:$0x3f] }
 0x18a   : > { %v1603_v16 = vrot.slane %v1589_v4, %v6496_v41  ;;  %v1723_v19 = vcombine.low %v6537_v17, %v1708_v8  ;;  %v1935_v26 = vrot.slane %v1913_v13, %v6496_v41  ;;  %v1529_v29 = vpack.c.bf16 %v1523_v22, %v1523_v22  ;;  %v1350_v31 = vld [vmem:[#allocation2 + $0x20] sm:$0x3f]  ;;  %v6048_v13 = vld [vmem:[%s7290_s8 + $0xb8] sm:$0xff]  }
 0x18b   : > { %v1431_v25 = vrot.slane %v1417_v9, %v6496_v41  ;;  %v1943_v28 = vcombine.low %v6542_v21, %v1928_v15  ;;  %v1528_v36 = vpack.c.bf16 %v1522_v7, %v1522_v7  ;;  %v1604_v37 = vcombine.high %v1596_v5, %v1596_v5  ;;  %v6049_v22 = vld [vmem:[%s7290_s8 + $0xf8] sm:$0xff]  }
 0x18c   : > { %v1694_v32 = vcombine.low %v1596_v5, %v1603_v16  ;;  %v1731_v35 = vrot.slane %v1723_v19, %v6496_v41  ;;  %v1611_v42 = vrot.slane %v1527_v24, %v6496_v41  ;;  %v6604_v43 = vrot.slane %v1529_v29, %v6496_v41 }
 0x18d   : > { %v1914_v40 = vcombine.low %v6590_v11, %v1431_v25  ;;  %v1951_v17 = vrot.slane %v1943_v28, %v6496_v41  ;;  %v1634_v50 = vrot.slane %v1528_v36, %v6496_v41  ;;  %v1355_v51 = vpack.c.bf16 %v1349_v30, %v1349_v30  ;;  %v6050_v36 = vld [vmem:[%s7290_s8 + $0xb0] sm:$0xff]  }
 0x18e   : > { %v1722_v21 = vrot.slane %v1694_v32, %v6496_v41  ;;  %v1356_v52 = vpack.c.bf16 %v1350_v31, %v1350_v31  ;;  %v1612_v54 = vcombine.high %v1611_v42, %v1611_v42  ;;  %v1619_v57 = vrot.slane %v1611_v42, %v6496_v41  ;;  %v6051_v42 = vld [vmem:[%s7290_s8 + $0xf0] sm:$0xff]  }
 0x18f   : > { %v1942_v53 = vrot.slane %v1914_v40, %v6496_v41  ;;  %v6612_v58 = vrot.slane %v6604_v43, %v6496_v41  ;;  %v1635_v60 = vcombine.high %v1634_v50, %v1634_v50  ;;  %v1642_v61 = vrot.slane %v1634_v50, %v6496_v41 }
 0x190   : > { %v1724_v59 = vcombine.low %v1715_v18, %v1722_v21  ;;  %v1357_v62 = vpack.c.bf16 %v1351_v49, %v1351_v49  ;;  %v1626_v2 = vrot.slane %v1612_v54, %v6496_v41  ;;  %v1627_v20 = vcombine.high %v1619_v57, %v1619_v57 }
 0x191   : > { %v1944_v10 = vcombine.low %v1935_v26, %v1942_v53  ;;  %v1740_v3 = vcombine.low %v1604_v37, %v1619_v57  ;;  %v1649_v5 = vrot.slane %v1635_v60, %v6496_v41  ;;  %v1650_v6 = vcombine.high %v1642_v61, %v1642_v61 }
 0x192   : > { %v1738_v4 = vrot.slane %v1724_v59, %v6496_v41  ;;  %v1432_v8 = vcombine.high %v6590_v11, %v6590_v11  ;;  %v1741_v15 = vcombine.low %v1626_v2, %v1627_v20  ;;  %v1439_v18 = vrot.slane %v1355_v51, %v6496_v41 }
 0x193   : > { %v1958_v9 = vrot.slane %v1944_v10, %v6496_v41  ;;  %v1750_v16 = vrot.slane %v1740_v3, %v6496_v41  ;;  %v1742_v24 = vcombine.low %v1642_v61, %v1649_v5  ;;  %v1743_v25 = vcombine.low %v1650_v6, %v6612_v58  ;;  %v6053_v5 = vld [vmem:[%s7290_s8 + $0xe8] sm:$0xff]  }
 0x194   : > { %v1739_v19 = vcombine.low %v1731_v35, %v1738_v4  ;;  %v1462_v11 = vrot.slane %v1356_v52, %v6496_v41  ;;  %v1757_v28 = vrot.slane %v1741_v15, %v6496_v41  ;;  %v1440_v7 = vcombine.high %v1439_v18, %v1439_v18 }
 0x195   : > { %v1959_v26 = vcombine.low %v1951_v17, %v1958_v9  ;;  %v1447_v29 = vrot.slane %v1439_v18, %v6496_v41  ;;  %v1764_v30 = vrot.slane %v1742_v24, %v6496_v41  ;;  %v1771_v31 = vrot.slane %v1743_v25, %v6496_v41 }
 0x196   : > { %5695 = vmatmul.mubr.bf16.vlgmr.msra.gmra.mxu0 %v1739_v19  ;;  %v1463_v32 = vcombine.high %v1462_v11, %v1462_v11  ;;  %v1470_v35 = vrot.slane %v1462_v11, %v6496_v41  ;;  %v1772_v37 = vcombine.low %v1750_v16, %v1757_v28  ;;  %v1454_v40 = vrot.slane %v1440_v7, %v6496_v41  ;;  %v2530_v11 = vld [vmem:[#allocation2 + $0x10] sm:$0x3f] }
 0x197   : > { %5723 = vmatmul.mubr.bf16.vlgmr.msra.gmra.mxu1 %v1959_v26  ;;  %5735 = vmatpush3.bf16.msra.mxu0 %v6048_v13  ;;  %v1455_v17 = vcombine.high %v1447_v29, %v1447_v29  ;;  %v1773_v49 = vcombine.low %v1764_v30, %v1771_v31  ;;  %v1485_v52 = vrot.slane %v1357_v62, %v6496_v41  ;;  %v6052_v62 = vld [vmem:[%s7290_s8 + $0xa8] sm:$0xff]   ;;  %v2531_v26 = vld [vmem:[#allocation2 + $0x18] sm:$0x3f] }
 0x198   : > { %5763 = vmatpush3.bf16.msra.mxu1 %v6049_v22  ;;  %5736 = vmatprep.subr.bf16.mxu0 %v6461_v63  ;;  %v1477_v21 = vrot.slane %v1463_v32, %v6496_v41  ;;  %v1478_v50 = vcombine.high %v1470_v35, %v1470_v35  ;;  %v1780_v51 = vrot.slane %v1772_v37, %v6496_v41  ;;  %v6054_v22 = vld [vmem:[%s7290_s8 + $0xa0] sm:$0xff]  }
 0x199   : > { %5764 = vmatprep.subr.bf16.mxu1 %v6461_v63  ;;  %5698 = vmatprep.mubr.msk.bf16.mxu0 %vm6123_vm4, %v6461_v63  ;;  %v1960_v53 = vcombine.low %v1432_v8, %v1447_v29  ;;  %v1787_v54 = vrot.slane %v1773_v49, %v6496_v41  ;;  %v1961_v57 = vcombine.low %v1454_v40, %v1455_v17 }
 0x19a   : > { %5726 = vmatprep.mubr.msk.bf16.mxu1 %vm6123_vm4, %v6461_v63  ;;  %v1962_v59 = vcombine.low %v1470_v35, %v1477_v21  ;;  %v1658_v60 = vcombine.high %v6604_v43, %v6604_v43  ;;  %v1493_v61 = vrot.slane %v1485_v52, %v6496_v41  ;;  %v1673_v2 = vcombine.high %v6612_v58, %v6612_v58  ;;  %v2134_v21 = vld [vmem:[#allocation2 + $0x1a] sm:$0x3f] }
 0x19b   : > { %5737 = vmatpush3.bf16.msra.mxu0 %v6050_v36  ;;  %v1970_v10 = vrot.slane %v1960_v53, %v6496_v41  ;;  %v1486_v20 = vcombine.high %v1485_v52, %v1485_v52  ;;  %v1788_v3 = vcombine.low %v1780_v51, %v1787_v54  ;;  %v1977_v4 = vrot.slane %v1961_v57, %v6496_v41 }
 0x19c   : > { %5765 = vmatpush3.bf16.msra.mxu1 %v6051_v42  ;;  %5738 = vmatprep.subr.bf16.mxu0 %v6461_v63  ;;  %v1984_v43 = vrot.slane %v1962_v59, %v6496_v41  ;;  %v1963_v6 = vcombine.low %v1478_v50, %v1493_v61  ;;  %v1672_v8 = vrot.slane %v1658_v60, %v6496_v41  ;;  %v6056_v42 = vld [vmem:[%s7290_s8 + $0x98] sm:$0xff]  }
 0x19d   : > { %5766 = vmatprep.subr.bf16.mxu1 %v6461_v63  ;;  %v1500_v58 = vrot.slane %v1486_v20, %v6496_v41  ;;  %v1501_v9 = vcombine.high %v1493_v61, %v1493_v61  ;;  %v1992_v13 = vcombine.low %v1970_v10, %v1977_v4  ;;  %v2186_v15 = vrot.slane %v6557_v38, %v6496_v41 }
 0x19e   : > { %5699 = vmatmul.mubr.bf16.gmra.mxu0 %v1788_v3  ;;  %v2193_v16 = vrot.slane %v2179_v12, %v6496_v41  ;;  %v2201_v18 = vrot.slane %v2139_v55, %v6496_v41  ;;  %v1991_v19 = vrot.slane %v1963_v6, %v6496_v41  ;;  %v1789_v24 = vcombine.low %v1672_v8, %v1673_v2  ;;  %v2136_v6 = vld [vmem:[#allocation2 + $0x2a] sm:$0x3f] }
 0x19f   : > { %5739 = vmatpush3.bf16.msra.mxu0 %v6052_v62  ;;  %5702 = vmatprep.mubr.msk.bf16.mxu0 %vm6123_vm4, %v6461_v63  ;;  %v2009_v25 = vcombine.low %v1500_v58, %v1501_v9  ;;  %v2000_v38 = vrot.slane %v1992_v13, %v6496_v41  ;;  %v2194_v55 = vcombine.high %v2186_v15, %v2186_v15  ;;  %v6058_v62 = vld [vmem:[%s7290_s8 + $0x90] sm:$0xff]  }
 0x1a0   : > { %5767 = vmatpush3.bf16.msra.mxu1 %v6053_v5  ;;  %5740 = vmatprep.subr.bf16.mxu0 %v6461_v63  ;;  %v2202_v12 = vcombine.high %v2201_v18, %v2201_v18  ;;  %v1993_v28 = vcombine.low %v1984_v43, %v1991_v19  ;;  %v1796_v7 = vrot.slane %v1789_v24, %v6496_v41  ;;  %v2135_v5 = vld [vmem:[#allocation2 + $0x22] sm:$0x3f]  ;;  %v6060_v19 = vld [vmem:[%s7290_s8 + $0x88] sm:$0xff]  }
 0x1a1   : > { %5768 = vmatprep.subr.bf16.mxu1 %v6461_v63  ;;  %v2016_v29 = vrot.slane %v2009_v25, %v6496_v41  ;;  %v6696_v30 = vrot.slane %v2201_v18, %v6496_v41  ;;  %v2305_v32 = vcombine.low %v2171_v23, %v2186_v15  ;;  %v2306_v35 = vcombine.low %v2193_v16, %v2194_v55  ;;  %v6061_v55 = vld [vmem:[%s7290_s8 + $0xc8] sm:$0xff]  }
 0x1a2   : > { %v2216_v31 = vrot.slane %v2202_v12, %v6496_v41  ;;  %v2536_v36 = vpack.c.bf16 %v2530_v11, %v2530_v11  ;;  %v2007_v37 = vrot.slane %v1993_v28, %v6496_v41  ;;  %v1803_v40 = vrot.slane %v1796_v7, %v6496_v41 }
 0x1a3   : > { %5741 = vmatpush3.bf16.msra.mxu0 %v6054_v22  ;;  %v6705_v17 = vrot.slane %v2016_v29, %v6496_v41  ;;  %v2537_v49 = vpack.c.bf16 %v2531_v26, %v2531_v26  ;;  %v2321_v50 = vrot.slane %v2305_v32, %v6496_v41  ;;  %v2328_v51 = vrot.slane %v2306_v35, %v6496_v41 }
 0x1a4   : > { %5769 = vmatpush3.bf16.msra.mxu1 %v6055_v44  ;;  %5742 = vmatprep.subr.bf16.mxu0 %v6461_v63  ;;  %v2307_v23 = vcombine.low %v6696_v30, %v2216_v31  ;;  %v2008_v52 = vcombine.low %v2000_v38, %v2007_v37  ;;  %v2554_v53 = vcombine.high %v6565_v45, %v6565_v45  ;;  %v2532_v38 = vld [vmem:[#allocation2 + $0x20] sm:$0x3f]  ;;  %v2533_v44 = vld [vmem:[#allocation2 + $0x28] sm:$0x3f] }
 0x1a5   : > { %5770 = vmatprep.subr.bf16.mxu1 %v6461_v63  ;;  %v2561_v54 = vrot.slane %v6565_v45, %v6496_v41  ;;  %v2576_v57 = vrot.slane %v2536_v36, %v6496_v41  ;;  %v2336_v60 = vcombine.low %v6548_v27, %v2321_v50  ;;  %v2599_v61 = vrot.slane %v2537_v49, %v6496_v41  ;;  %v6059_v27 = vld [vmem:[%s7290_s8 + $0xd0] sm:$0xff]  }
 0x1a6   : > { %5703 = vmatmul.mubr.bf16.gmra.mxu0 %v1803_v40  ;;  %v2335_v59 = vrot.slane %v2307_v23, %v6496_v41  ;;  %v2140_v10 = vpack.c.bf16 %v2134_v21, %v2134_v21  ;;  %5727 = vmatmul.mubr.bf16.gmra.mxu1 %v2008_v52  ;;  %v2568_v2 = vrot.slane %v2554_v53, %v6496_v41  ;;  %v6062_v40 = vld [vmem:[%s7290_s8 + $0x80] sm:$0xff]  }
 0x1a7   : > { %5743 = vmatpush3.bf16.msra.mxu0 %v6056_v42  ;;  %v2569_v20 = vcombine.high %v2561_v54, %v2561_v54  ;;  %v2577_v45 = vcombine.high %v2576_v57, %v2576_v57  ;;  %5730 = vmatprep.mubr.msk.bf16.mxu1 %vm6123_vm4, %v6461_v63  ;;  %v2344_v4 = vrot.slane %v2336_v60, %v6496_v41 }
 0x1a8   : > { %5771 = vmatpush3.bf16.msra.mxu1 %v6057_v0  ;;  %v2337_v3 = vcombine.low %v2328_v51, %v2335_v59  ;;  %v2584_v43 = vrot.slane %v2576_v57, %v6496_v41  ;;  %5744 = vmatprep.subr.bf16.mxu0 %v6461_v63  ;;  %v2600_v58 = vcombine.high %v2599_v61, %v2599_v61  ;;  %v6063_v0 = vld [vmem:[%s7290_s8 + $0xc0] sm:$0xff]   ;;  %v2534_v51 = vld [vmem:[#allocation2 + $0x30] sm:$0x3f] }
 0x1a9   : > { %5772 = vmatprep.subr.bf16.mxu1 %v6461_v63  ;;  %v2591_v8 = vrot.slane %v2577_v45, %v6496_v41  ;;  %v6741_v9 = vrot.slane %v2599_v61, %v6496_v41  ;;  %5750 = vmatprep.mubr.msk.bf16.mxu0 %vm6123_vm4, %v6461_v63  ;;  %v2702_v16 = vcombine.low %v2561_v54, %v2568_v2 }
 0x1aa   : > { %v2351_v13 = vrot.slane %v2337_v3, %v6496_v41  ;;  %v2592_v15 = vcombine.high %v2584_v43, %v2584_v43  ;;  %v2703_v18 = vcombine.low %v2569_v20, %v2584_v43  ;;  %v2614_v22 = vrot.slane %v2600_v58, %v6496_v41 }
 0x1ab   : > { %5745 = vmatpush3.bf16.msra.mxu0 %v6058_v62  ;;  %v2141_v24 = vpack.c.bf16 %v2135_v5, %v2135_v5  ;;  %v2142_v25 = vpack.c.bf16 %v2136_v6, %v2136_v6  ;;  %v2217_v11 = vcombine.high %v6696_v30, %v6696_v30  ;;  %v2712_v28 = vrot.slane %v2702_v16, %v6496_v41  ;;  %v6064_v62 = vld [vmem:[%s7290_s8 + $0x138] sm:$0xff]  }
 0x1ac   : > { %5773 = vmatpush3.bf16.msra.mxu1 %v6059_v27  ;;  %5746 = vmatprep.subr.bf16.mxu0 %v6461_v63  ;;  %v2352_v12 = vcombine.low %v2344_v4, %v2351_v13  ;;  %v2704_v26 = vcombine.low %v2591_v8, %v2592_v15  ;;  %v2705_v7 = vcombine.low %v6741_v9, %v2614_v22  ;;  %v6065_v27 = vld [vmem:[%s7290_s8 + $0x178] sm:$0xff]  }
 0x1ad   : > { %5774 = vmatprep.subr.bf16.mxu1 %v6461_v63  ;;  %v2719_v29 = vrot.slane %v2703_v18, %v6496_v41  ;;  %v2224_v30 = vrot.slane %v2140_v10, %v6496_v41  ;;  %v2247_v31 = vrot.slane %v2141_v24, %v6496_v41  ;;  %v6764_v35 = vrot.slane %v2142_v25, %v6496_v41  ;;  %v6066_v18 = vld [vmem:[%s7290_s8 + $0x130] sm:$0xff]  }
 0x1ae   : > { %v2726_v32 = vrot.slane %v2704_v26, %v6496_v41  ;;  %v2538_v36 = vpack.c.bf16 %v2532_v38, %v2532_v38  ;;  %v2539_v37 = vpack.c.bf16 %v2533_v44, %v2533_v44  ;;  %5731 = vmatmul.mubr.bf16.gmra.mxu1 %v6705_v17  ;;  %v2733_v42 = vrot.slane %v2705_v7, %v6496_v41  ;;  %v6067_v25 = vld [vmem:[%s7290_s8 + $0x170] sm:$0xff]  }
 0x1af   : > { %5747 = vmatpush3.bf16.msra.mxu0 %v6060_v19  ;;  %v2734_v49 = vcombine.low %v2712_v28, %v2719_v29  ;;  %v2225_v21 = vcombine.high %v2224_v30, %v2224_v30  ;;  %v2232_v23 = vrot.slane %v2224_v30, %v6496_v41  ;;  %v2248_v50 = vcombine.high %v2247_v31, %v2247_v31 }
 0x1b0   : > { %5775 = vmatpush3.bf16.msra.mxu1 %v6061_v55  ;;  %5748 = vmatprep.subr.bf16.mxu0 %v6461_v63  ;;  %v2255_v17 = vrot.slane %v2247_v31, %v6496_v41  ;;  %v2735_v52 = vcombine.low %v2726_v32, %v2733_v42  ;;  %v6785_v61 = vrot.slane %v6764_v35, %v6496_v41  ;;  %v2928_v42 = vld [vmem:[#allocation2 + $0x11] sm:$0x3f] }
 0x1b1   : > { %5776 = vmatprep.subr.bf16.mxu1 %v6461_v63  ;;  %5778 = vmatprep.mubr.msk.bf16.mxu1 %vm6123_vm4, %v6461_v63  ;;  %v2742_v53 = vrot.slane %v2734_v49, %v6496_v41  ;;  %v2239_v54 = vrot.slane %v2225_v21, %v6496_v41  ;;  %v2240_v57 = vcombine.high %v2232_v23, %v2232_v23 }
 0x1b2   : > { %v2262_v59 = vrot.slane %v2248_v50, %v6496_v41  ;;  %v2263_v60 = vcombine.high %v2255_v17, %v2255_v17  ;;  %v2749_v10 = vrot.slane %v2735_v52, %v6496_v41  ;;  %v2353_v2 = vcombine.low %v2217_v11, %v2232_v23  ;;  %v2929_v50 = vld [vmem:[#allocation2 + $0x19] sm:$0x3f] }
 0x1b3   : > { %5749 = vmatpush3.bf16.msra.mxu0 %v6062_v40  ;;  %v2540_v20 = vpack.c.bf16 %v2534_v51, %v2534_v51  ;;  %v2615_v45 = vcombine.high %v6741_v9, %v6741_v9  ;;  %v2354_v3 = vcombine.low %v2239_v54, %v2240_v57  ;;  %v2622_v8 = vrot.slane %v2538_v36, %v6496_v41 }
 0x1b4   : > { %5777 = vmatpush3.bf16.msra.mxu1 %v6063_v0  ;;  %5790 = vmatprep.subr.bf16.mxu0 %v6461_v63  ;;  %v2355_v4 = vcombine.low %v2255_v17, %v2262_v59  ;;  %v2356_v43 = vcombine.low %v2263_v60, %v6785_v61  ;;  %v2750_v5 = vcombine.low %v2742_v53, %v2749_v10  ;;  %v6069_v0 = vld [vmem:[%s7290_s8 + $0x168] sm:$0xff]  }
 0x1b5   : > { %5818 = vmatprep.subr.bf16.mxu1 %v6461_v63  ;;  %v2363_v6 = vrot.slane %v2353_v2, %v6496_v41  ;;  %v2645_v58 = vrot.slane %v2539_v37, %v6496_v41  ;;  %v2370_v9 = vrot.slane %v2354_v3, %v6496_v41  ;;  %v2668_v16 = vrot.slane %v2540_v20, %v6496_v41  ;;  %v6068_v37 = vld [vmem:[%s7290_s8 + $0x128] sm:$0xff]   ;;  %v6071_v20 = vld [vmem:[%s7290_s8 + $0x160] sm:$0xff]  }
 0x1b6   : > { %5751 = vmatmul.mubr.bf16.vlgmr.msra.gmra.mxu0 %v2352_v12  ;;  %v2377_v13 = vrot.slane %v2355_v4, %v6496_v41  ;;  %v2384_v15 = vrot.slane %v2356_v43, %v6496_v41  ;;  %v2623_v19 = vcombine.high %v2622_v8, %v2622_v8  ;;  %v2630_v22 = vrot.slane %v2622_v8, %v6496_v41 }
 0x1b7   : > { %5779 = vmatmul.mubr.bf16.vlgmr.msra.gmra.mxu1 %v2750_v5  ;;  %5791 = vmatpush3.bf16.msra.mxu0 %v6064_v62  ;;  %v2646_v24 = vcombine.high %v2645_v58, %v2645_v58  ;;  %v2385_v11 = vcombine.low %v2363_v6, %v2370_v9  ;;  %v2653_v44 = vrot.slane %v2645_v58, %v6496_v41 }
 0x1b8   : > { %5819 = vmatpush3.bf16.msra.mxu1 %v6065_v27  ;;  %5792 = vmatprep.subr.bf16.mxu0 %v6461_v63  ;;  %v2386_v38 = vcombine.low %v2377_v13, %v2384_v15  ;;  %v2637_v55 = vrot.slane %v2623_v19, %v6496_v41  ;;  %v2638_v12 = vcombine.high %v2630_v22, %v2630_v22  ;;  %v6072_v15 = vld [vmem:[%s7290_s8 + $0x118] sm:$0xff]  }
 0x1b9   : > { %5820 = vmatprep.subr.bf16.mxu1 %v6461_v63  ;;  %5754 = vmatprep.mubr.msk.bf16.mxu0 %vm6123_vm4, %v6461_v63  ;;  %v2660_v26 = vrot.slane %v2646_v24, %v6496_v41  ;;  %v2393_v28 = vrot.slane %v2385_v11, %v6496_v41  ;;  %v2661_v29 = vcombine.high %v2653_v44, %v2653_v44  ;;  %v6073_v24 = vld [vmem:[%s7290_s8 + $0x158] sm:$0xff]   ;;  %v3326_v11 = vld [vmem:[#allocation2 + $0x12] sm:$0x3f] }
 0x1ba   : > { %5782 = vmatprep.mubr.msk.bf16.mxu1 %vm6123_vm4, %v6461_v63  ;;  %v2400_v7 = vrot.slane %v2386_v38, %v6496_v41  ;;  %v2676_v30 = vrot.slane %v2668_v16, %v6496_v41  ;;  %v2751_v31 = vcombine.low %v2615_v45, %v2630_v22  ;;  %v2752_v32 = vcombine.low %v2637_v55, %v2638_v12 }
 0x1bb   : > { %5793 = vmatpush3.bf16.msra.mxu0 %v6066_v18  ;;  %v2753_v36 = vcombine.low %v2653_v44, %v2660_v26  ;;  %v2271_v40 = vcombine.high %v6764_v35, %v6764_v35  ;;  %v2286_v23 = vcombine.high %v6785_v61, %v6785_v61  ;;  %v2669_v54 = vcombine.high %v2668_v16, %v2668_v16  ;;  %v6070_v61 = vld [vmem:[%s7290_s8 + $0x120] sm:$0xff]   ;;  %v3327_v26 = vld [vmem:[#allocation2 + $0x1a] sm:$0x3f] }
 0x1bc   : > { %5821 = vmatpush3.bf16.msra.mxu1 %v6067_v25  ;;  %v2401_v49 = vcombine.low %v2393_v28, %v2400_v7  ;;  %v2754_v21 = vcombine.low %v2661_v29, %v2676_v30  ;;  %5794 = vmatprep.subr.bf16.mxu0 %v6461_v63  ;;  %v2761_v17 = vrot.slane %v2751_v31, %v6496_v41 }
 0x1bd   : > { %v2768_v51 = vrot.slane %v2752_v32, %v6496_v41  ;;  %v2775_v35 = vrot.slane %v2753_v36, %v6496_v41  ;;  %5822 = vmatprep.subr.bf16.mxu1 %v6461_v63  ;;  %v2285_v52 = vrot.slane %v2271_v40, %v6496_v41  ;;  %v2684_v57 = vcombine.high %v2676_v30, %v2676_v30  ;;  %v6074_v30 = vld [vmem:[%s7290_s8 + $0x110] sm:$0xff]  }
 0x1be   : > { %5755 = vmatmul.mubr.bf16.gmra.mxu0 %v2401_v49  ;;  %v2782_v53 = vrot.slane %v2754_v21, %v6496_v41  ;;  %v2934_v59 = vpack.c.bf16 %v2928_v42, %v2928_v42  ;;  %v2935_v62 = vpack.c.bf16 %v2929_v50, %v2929_v50  ;;  %v2683_v45 = vrot.slane %v2669_v54, %v6496_v41  ;;  %v2930_v21 = vld [vmem:[#allocation2 + $0x21] sm:$0x3f]  ;;  %v6076_v54 = vld [vmem:[%s7290_s8 + $0x108] sm:$0xff]  }
 0x1bf   : > { %v2783_v60 = vcombine.low %v2761_v17, %v2768_v51  ;;  %5795 = vmatpush3.bf16.msra.mxu0 %v6068_v37  ;;  %5758 = vmatprep.mubr.msk.bf16.mxu0 %vm6123_vm4, %v6461_v63  ;;  %v2402_v10 = vcombine.low %v2285_v52, %v2286_v23  ;;  %v2952_v27 = vcombine.high %v6568_v46, %v6568_v46  ;;  %v6075_v37 = vld [vmem:[%s7290_s8 + $0x150] sm:$0xff]  }
 0x1c0   : > { %v2784_v2 = vcombine.low %v2775_v35, %v2782_v53  ;;  %5823 = vmatpush3.bf16.msra.mxu1 %v6069_v0  ;;  %5796 = vmatprep.subr.bf16.mxu0 %v6461_v63  ;;  %v2959_v43 = vrot.slane %v6568_v46, %v6496_v41  ;;  %v2974_v5 = vrot.slane %v2934_v59, %v6496_v41  ;;  %v2931_v0 = vld [vmem:[#allocation2 + $0x29] sm:$0x3f] }
 0x1c1   : > { %v2791_v3 = vrot.slane %v2783_v60, %v6496_v41  ;;  %5824 = vmatprep.subr.bf16.mxu1 %v6461_v63  ;;  %v2409_v4 = vrot.slane %v2402_v10, %v6496_v41  ;;  %v2800_v8 = vcombine.low %v2683_v45, %v2684_v57  ;;  %v2966_v58 = vrot.slane %v2952_v27, %v6496_v41  ;;  %v2932_v60 = vld [vmem:[#allocation2 + $0x31] sm:$0x3f] }
 0x1c2   : > { %v2798_v6 = vrot.slane %v2784_v2, %v6496_v41  ;;  %v2997_v9 = vrot.slane %v2935_v62, %v6496_v41  ;;  %v2967_v16 = vcombine.high %v2959_v43, %v2959_v43  ;;  %v2975_v18 = vcombine.high %v2974_v5, %v2974_v5 }
 0x1c3   : > { %5797 = vmatpush3.bf16.msra.mxu0 %v6070_v61  ;;  %v2416_v13 = vrot.slane %v2409_v4, %v6496_v41  ;;  %v2982_v46 = vrot.slane %v2974_v5, %v6496_v41  ;;  %v2807_v22 = vrot.slane %v2800_v8, %v6496_v41  ;;  %v3100_v12 = vcombine.low %v2959_v43, %v2966_v58  ;;  %v6078_v58 = vld [vmem:[%s7290_s8 + $0x100] sm:$0xff]  }
 0x1c4   : > { %v2799_v19 = vcombine.low %v2791_v3, %v2798_v6  ;;  %5825 = vmatpush3.bf16.msra.mxu1 %v6071_v20  ;;  %5798 = vmatprep.subr.bf16.mxu0 %v6461_v63  ;;  %v2998_v25 = vcombine.high %v2997_v9, %v2997_v9  ;;  %v2989_v38 = vrot.slane %v2975_v18, %v6496_v41  ;;  %v6079_v18 = vld [vmem:[%s7290_s8 + $0x140] sm:$0xff]  }
 0x1c5   : > { %5826 = vmatprep.subr.bf16.mxu1 %v6461_v63  ;;  %v2990_v44 = vcombine.high %v2982_v46, %v2982_v46  ;;  %v6876_v55 = vrot.slane %v2997_v9, %v6496_v41  ;;  %v2814_v28 = vrot.slane %v2807_v22, %v6496_v41  ;;  %v3101_v29 = vcombine.low %v2967_v16, %v2982_v46  ;;  %v3328_v16 = vld [vmem:[#allocation2 + $0x22] sm:$0x3f] }
 0x1c6   : > { %5783 = vmatmul.mubr.bf16.gmra.mxu1 %v2799_v19  ;;  %5759 = vmatmul.mubr.bf16.gmra.mxu0 %v2416_v13  ;;  %v3012_v7 = vrot.slane %v2998_v25, %v6496_v41  ;;  %v3110_v32 = vrot.slane %v3100_v12, %v6496_v41  ;;  %v3332_v36 = vpack.c.bf16 %v3326_v11, %v3326_v11 }
 0x1c7   : > { %5786 = vmatprep.mubr.msk.bf16.mxu1 %vm6123_vm4, %v6461_v63  ;;  %5799 = vmatpush3.bf16.msra.mxu0 %v6072_v15  ;;  %v3102_v31 = vcombine.low %v2989_v38, %v2990_v44  ;;  %v3117_v42 = vrot.slane %v3101_v29, %v6496_v41  ;;  %v3333_v49 = vpack.c.bf16 %v3327_v26, %v3327_v26 }
 0x1c8   : > { %5827 = vmatpush3.bf16.msra.mxu1 %v6073_v24  ;;  %5800 = vmatprep.subr.bf16.mxu0 %v6461_v63  ;;  %v3103_v40 = vcombine.low %v6876_v55, %v3012_v7  ;;  %v3350_v50 = vcombine.high %v6571_v47, %v6571_v47  ;;  %v3357_v17 = vrot.slane %v6571_v47, %v6496_v41  ;;  %v6077_v47 = vld [vmem:[%s7290_s8 + $0x148] sm:$0xff]  }
 0x1c9   : > { %5828 = vmatprep.subr.bf16.mxu1 %v6461_v63  ;;  %5806 = vmatprep.mubr.msk.bf16.mxu0 %vm6123_vm4, %v6461_v63  ;;  %v3124_v23 = vrot.slane %v3102_v31, %v6496_v41  ;;  %v3132_v35 = vcombine.low %v3110_v32, %v3117_v42  ;;  %v3372_v52 = vrot.slane %v3332_v36, %v6496_v41  ;;  %v3329_v32 = vld [vmem:[#allocation2 + $0x2a] sm:$0x3f]  ;;  %v3330_v42 = vld [vmem:[#allocation2 + $0x32] sm:$0x3f] }
 0x1ca   : > { %v3131_v51 = vrot.slane %v3103_v40, %v6496_v41  ;;  %v3395_v53 = vrot.slane %v3333_v49, %v6496_v41  ;;  %v3364_v57 = vrot.slane %v3350_v50, %v6496_v41  ;;  %v3365_v59 = vcombine.high %v3357_v17, %v3357_v17 }
 0x1cb   : > { %5801 = vmatpush3.bf16.msra.mxu0 %v6074_v30  ;;  %v2936_v61 = vpack.c.bf16 %v2930_v21, %v2930_v21  ;;  %v2937_v10 = vpack.c.bf16 %v2931_v0, %v2931_v0  ;;  %v3140_v2 = vrot.slane %v3132_v35, %v6496_v41  ;;  %v3373_v20 = vcombine.high %v3372_v52, %v3372_v52  ;;  %v6080_v30 = vld [vmem:[%s7290_s8 + $0x1b8] sm:$0xff]  }
 0x1cc   : > { %5829 = vmatpush3.bf16.msra.mxu1 %v6075_v37  ;;  %5802 = vmatprep.subr.bf16.mxu0 %v6461_v63  ;;  %v3133_v62 = vcombine.low %v3124_v23, %v3131_v51  ;;  %v3380_v45 = vrot.slane %v3372_v52, %v6496_v41  ;;  %v3396_v27 = vcombine.high %v3395_v53, %v3395_v53 }
 0x1cd   : > { %5830 = vmatprep.subr.bf16.mxu1 %v6461_v63  ;;  %v6915_v3 = vrot.slane %v3395_v53, %v6496_v41  ;;  %v3498_v4 = vcombine.low %v3357_v17, %v3364_v57  ;;  %v3387_v5 = vrot.slane %v3373_v20, %v6496_v41  ;;  %v2938_v6 = vpack.c.bf16 %v2932_v60, %v2932_v60  ;;  %v6082_v53 = vld [vmem:[%s7290_s8 + $0x1b0] sm:$0xff]  }
 0x1ce   : > { %5787 = vmatmul.mubr.bf16.gmra.mxu1 %v2814_v28  ;;  %v3147_v43 = vrot.slane %v3133_v62, %v6496_v41  ;;  %v3013_v8 = vcombine.high %v6876_v55, %v6876_v55  ;;  %v3388_v9 = vcombine.high %v3380_v45, %v3380_v45  ;;  %v3410_v13 = vrot.slane %v3396_v27, %v6496_v41 }
 0x1cf   : > { %5803 = vmatpush3.bf16.msra.mxu0 %v6076_v54  ;;  %5834 = vmatprep.mubr.msk.bf16.mxu1 %vm6123_vm4, %v6461_v63  ;;  %v3499_v15 = vcombine.low %v3365_v59, %v3380_v45  ;;  %v3508_v19 = vrot.slane %v3498_v4, %v6496_v41  ;;  %v3020_v22 = vrot.slane %v2936_v61, %v6496_v41  ;;  %v6081_v59 = vld [vmem:[%s7290_s8 + $0x1f8] sm:$0xff]  }
 0x1d0   : > { %5831 = vmatpush3.bf16.msra.mxu1 %v6077_v47  ;;  %5804 = vmatprep.subr.bf16.mxu0 %v6461_v63  ;;  %v3148_v46 = vcombine.low %v3140_v2, %v3147_v43  ;;  %v3500_v24 = vcombine.low %v3387_v5, %v3388_v9  ;;  %v3501_v25 = vcombine.low %v6915_v3, %v3410_v13  ;;  %v6083_v9 = vld [vmem:[%s7290_s8 + $0x1f0] sm:$0xff]  }
 0x1d1   : > { %5832 = vmatprep.subr.bf16.mxu1 %v6461_v63  ;;  %v3515_v11 = vrot.slane %v3499_v15, %v6496_v41  ;;  %v3043_v38 = vrot.slane %v2937_v10, %v6496_v41  ;;  %v3021_v44 = vcombine.high %v3020_v22, %v3020_v22  ;;  %v3028_v55 = vrot.slane %v3020_v22, %v6496_v41 }
 0x1d2   : > { %v6939_v12 = vrot.slane %v2938_v6, %v6496_v41  ;;  %v3334_v26 = vpack.c.bf16 %v3328_v16, %v3328_v16  ;;  %v3522_v28 = vrot.slane %v3500_v24, %v6496_v41  ;;  %v3529_v7 = vrot.slane %v3501_v25, %v6496_v41 }
 0x1d3   : > { %5805 = vmatpush3.bf16.msra.mxu0 %v6078_v58  ;;  %v3530_v29 = vcombine.low %v3508_v19, %v3515_v11  ;;  %v3044_v31 = vcombine.high %v3043_v38, %v3043_v38  ;;  %v3035_v36 = vrot.slane %v3021_v44, %v6496_v41  ;;  %v3036_v37 = vcombine.high %v3028_v55, %v3028_v55  ;;  %v6084_v58 = vld [vmem:[%s7290_s8 + $0x1a8] sm:$0xff]  }
 0x1d4   : > { %5833 = vmatpush3.bf16.msra.mxu1 %v6079_v18  ;;  %5846 = vmatprep.subr.bf16.mxu0 %v6461_v63  ;;  %v3051_v40 = vrot.slane %v3043_v38, %v6496_v41  ;;  %v3531_v49 = vcombine.low %v3522_v28, %v3529_v7  ;;  %v6954_v23 = vrot.slane %v6939_v12, %v6496_v41  ;;  %v3724_v7 = vld [vmem:[#allocation2 + $0x10] sm:$0x3f] }
 0x1d5   : > { %v3538_v21 = vrot.slane %v3530_v29, %v6496_v41  ;;  %5874 = vmatprep.subr.bf16.mxu1 %v6461_v63  ;;  %v3058_v0 = vrot.slane %v3044_v31, %v6496_v41  ;;  %v3149_v17 = vcombine.low %v3013_v8, %v3028_v55  ;;  %v3150_v51 = vcombine.low %v3035_v36, %v3036_v37  ;;  %v3725_v29 = vld [vmem:[#allocation2 + $0x18] sm:$0x3f]  ;;  %v6085_v36 = vld [vmem:[%s7290_s8 + $0x1e8] sm:$0xff]   ;;  %v3726_v37 = vld [vmem:[#allocation2 + $0x20] sm:$0x3f] }
 0x1d6   : > { %5807 = vmatmul.mubr.bf16.vlgmr.msra.gmra.mxu0 %v3148_v46  ;;  %v3059_v50 = vcombine.high %v3051_v40, %v3051_v40  ;;  %v3335_v35 = vpack.c.bf16 %v3329_v32, %v3329_v32  ;;  %v3545_v52 = vrot.slane %v3531_v49, %v6496_v41  ;;  %v3336_v57 = vpack.c.bf16 %v3330_v42, %v3330_v42 }
 0x1d7   : > { %5847 = vmatpush3.bf16.msra.mxu0 %v6080_v30  ;;  %5810 = vmatprep.mubr.msk.bf16.mxu0 %vm6123_vm4, %v6461_v63  ;;  %v3151_v54 = vcombine.low %v3051_v40, %v3058_v0  ;;  %v3159_v61 = vrot.slane %v3149_v17, %v6496_v41  ;;  %v3166_v10 = vrot.slane %v3150_v51, %v6496_v41 }
 0x1d8   : > { %5848 = vmatprep.subr.bf16.mxu0 %v6461_v63  ;;  %v3152_v60 = vcombine.low %v3059_v50, %v6954_v23  ;;  %v3411_v47 = vcombine.high %v6915_v3, %v6915_v3  ;;  %v3546_v62 = vcombine.low %v3538_v21, %v3545_v52  ;;  %v3418_v20 = vrot.slane %v3334_v26, %v6496_v41  ;;  %v6088_v52 = vld [vmem:[%s7290_s8 + $0x198] sm:$0xff]  }
 0x1d9   : > { %v3173_v2 = vrot.slane %v3151_v54, %v6496_v41  ;;  %v3441_v45 = vrot.slane %v3335_v35, %v6496_v41  ;;  %v3181_v4 = vcombine.low %v3159_v61, %v3166_v10  ;;  %v3464_v43 = vrot.slane %v3336_v57, %v6496_v41  ;;  %v6087_v57 = vld [vmem:[%s7290_s8 + $0x1e0] sm:$0xff]  }
 0x1da   : > { %v3180_v27 = vrot.slane %v3152_v60, %v6496_v41  ;;  %v3067_v5 = vcombine.high %v6939_v12, %v6939_v12  ;;  %5835 = vmatmul.mubr.bf16.vlgmr.msra.gmra.mxu1 %v3546_v62  ;;  %v3419_v6 = vcombine.high %v3418_v20, %v3418_v20  ;;  %v3426_v3 = vrot.slane %v3418_v20, %v6496_v41  ;;  %v6086_v12 = vld [vmem:[%s7290_s8 + $0x1a0] sm:$0xff]  }
 0x1db   : > { %5849 = vmatpush3.bf16.msra.mxu0 %v6082_v53  ;;  %v3442_v8 = vcombine.high %v3441_v45, %v3441_v45  ;;  %5875 = vmatpush3.bf16.msra.mxu1 %v6081_v59  ;;  %v3189_v15 = vrot.slane %v3181_v4, %v6496_v41  ;;  %v3449_v16 = vrot.slane %v3441_v45, %v6496_v41  ;;  %v6090_v4 = vld [vmem:[%s7290_s8 + $0x190] sm:$0xff]  }
 0x1dc   : > { %5838 = vmatprep.mubr.msk.bf16.mxu1 %vm6123_vm4, %v6461_v63  ;;  %v3182_v13 = vcombine.low %v3173_v2, %v3180_v27  ;;  %5876 = vmatprep.subr.bf16.mxu1 %v6461_v63  ;;  %v3433_v18 = vrot.slane %v3419_v6, %v6496_v41  ;;  %v3434_v46 = vcombine.high %v3426_v3, %v3426_v3 }
 0x1dd   : > { %v3456_v19 = vrot.slane %v3442_v8, %v6496_v41  ;;  %v3472_v22 = vrot.slane %v3464_v43, %v6496_v41  ;;  %v3457_v25 = vcombine.high %v3449_v16, %v3449_v16  ;;  %v3547_v11 = vcombine.low %v3411_v47, %v3426_v3  ;;  %5850 = vmatprep.subr.bf16.mxu0 %v6461_v63  ;;  %v4122_v8 = vld [vmem:[#allocation2 + $0x11] sm:$0x3f] }
 0x1de   : > { %v3196_v24 = vrot.slane %v3182_v13, %v6496_v41  ;;  %v3081_v38 = vrot.slane %v3067_v5, %v6496_v41  ;;  %v3548_v44 = vcombine.low %v3433_v18, %v3434_v46  ;;  %v3082_v26 = vcombine.high %v6954_v23, %v6954_v23 }
 0x1df   : > { %v3549_v55 = vcombine.low %v3449_v16, %v3456_v19  ;;  %5851 = vmatpush3.bf16.msra.mxu0 %v6084_v58  ;;  %v3465_v28 = vcombine.high %v3464_v43, %v3464_v43  ;;  %5877 = vmatpush3.bf16.msra.mxu1 %v6083_v9  ;;  %v3550_v31 = vcombine.low %v3457_v25, %v3472_v22  ;;  %v4123_v58 = vld [vmem:[#allocation2 + $0x19] sm:$0x3f] }
 0x1e0   : > { %v3197_v30 = vcombine.low %v3189_v15, %v3196_v24  ;;  %v3557_v32 = vrot.slane %v3547_v11, %v6496_v41  ;;  %5852 = vmatprep.subr.bf16.mxu0 %v6461_v63  ;;  %v3564_v40 = vrot.slane %v3548_v44, %v6496_v41  ;;  %5878 = vmatprep.subr.bf16.mxu1 %v6461_v63  ;;  %v6089_v15 = vld [vmem:[%s7290_s8 + $0x1d8] sm:$0xff]   ;;  %v4124_v24 = vld [vmem:[#allocation2 + $0x21] sm:$0x3f]  ;;  %v6092_v44 = vld [vmem:[%s7290_s8 + $0x188] sm:$0xff]  }
 0x1e1   : > { %v3571_v42 = vrot.slane %v3549_v55, %v6496_v41  ;;  %v3198_v49 = vcombine.low %v3081_v38, %v3082_v26  ;;  %v3479_v21 = vrot.slane %v3465_v28, %v6496_v41  ;;  %v3578_v0 = vrot.slane %v3550_v31, %v6496_v41  ;;  %v6091_v28 = vld [vmem:[%s7290_s8 + $0x1d0] sm:$0xff]   ;;  %v3727_v31 = vld [vmem:[#allocation2 + $0x28] sm:$0x3f] }
 0x1e2   : > { %5811 = vmatmul.mubr.bf16.gmra.mxu0 %v3197_v30  ;;  %v3480_v23 = vcombine.high %v3472_v22, %v3472_v22  ;;  %v3730_v50 = vpack.c.bf16 %v3724_v7, %v3724_v7  ;;  %v3731_v17 = vpack.c.bf16 %v3725_v29, %v3725_v29  ;;  %v3579_v51 = vcombine.low %v3557_v32, %v3564_v40  ;;  %v3728_v32 = vld [vmem:[#allocation2 + $0x30] sm:$0x3f] }
 0x1e3   : > { %5853 = vmatpush3.bf16.msra.mxu0 %v6086_v12  ;;  %5814 = vmatprep.mubr.msk.bf16.mxu0 %vm6123_vm4, %v6461_v63  ;;  %v3205_v35 = vrot.slane %v3198_v49, %v6496_v41  ;;  %v3732_v53 = vpack.c.bf16 %v3726_v37, %v3726_v37  ;;  %v3580_v54 = vcombine.low %v3571_v42, %v3578_v0 }
 0x1e4   : > { %5879 = vmatpush3.bf16.msra.mxu1 %v6085_v36  ;;  %v3596_v59 = vcombine.low %v3479_v21, %v3480_v23  ;;  %5854 = vmatprep.subr.bf16.mxu0 %v6461_v63  ;;  %v3748_v60 = vrot.slane %v3730_v50, %v6496_v41  ;;  %v3587_v61 = vrot.slane %v3579_v51, %v6496_v41  ;;  %v6094_v23 = vld [vmem:[%s7290_s8 + $0x180] sm:$0xff]  }
 0x1e5   : > { %5880 = vmatprep.subr.bf16.mxu1 %v6461_v63  ;;  %v3212_v10 = vrot.slane %v3205_v35, %v6496_v41  ;;  %v3771_v47 = vrot.slane %v3731_v17, %v6496_v41  ;;  %v3794_v62 = vrot.slane %v3732_v53, %v6496_v41  ;;  %v3594_v2 = vrot.slane %v3580_v54, %v6496_v41 }
 0x1e6   : > { %v3603_v20 = vrot.slane %v3596_v59, %v6496_v41  ;;  %v3749_v45 = vcombine.high %v3748_v60, %v3748_v60  ;;  %v3756_v27 = vrot.slane %v3748_v60, %v6496_v41  ;;  %v4128_v11 = vpack.c.bf16 %v4122_v8, %v4122_v8  ;;  %v6095_v8 = vld [vmem:[%s7290_s8 + $0x1c0] sm:$0xff]  }
 0x1e7   : > { %5855 = vmatpush3.bf16.msra.mxu0 %v6088_v52  ;;  %v3772_v43 = vcombine.high %v3771_v47, %v3771_v47  ;;  %v3779_v5 = vrot.slane %v3771_v47, %v6496_v41  ;;  %v3795_v6 = vcombine.high %v3794_v62, %v3794_v62  ;;  %v7035_v3 = vrot.slane %v3794_v62, %v6496_v41  ;;  %v6093_v52 = vld [vmem:[%s7290_s8 + $0x1c8] sm:$0xff]  }
 0x1e8   : > { %v3595_v9 = vcombine.low %v3587_v61, %v3594_v2  ;;  %5881 = vmatpush3.bf16.msra.mxu1 %v6087_v57  ;;  %v3610_v13 = vrot.slane %v3603_v20, %v6496_v41  ;;  %5856 = vmatprep.subr.bf16.mxu0 %v6461_v63  ;;  %v3763_v16 = vrot.slane %v3749_v45, %v6496_v41  ;;  %v4125_v45 = vld [vmem:[#allocation2 + $0x29] sm:$0x3f] }
 0x1e9   : > { %5882 = vmatprep.subr.bf16.mxu1 %v6461_v63  ;;  %v3764_v18 = vcombine.high %v3756_v27, %v3756_v27  ;;  %v3786_v46 = vrot.slane %v3772_v43, %v6496_v41  ;;  %v3787_v19 = vcombine.high %v3779_v5, %v3779_v5  ;;  %v3809_v22 = vrot.slane %v3795_v6, %v6496_v41  ;;  %v4126_v6 = vld [vmem:[#allocation2 + $0x31] sm:$0x3f] }
 0x1ea   : > { %5839 = vmatmul.mubr.bf16.gmra.mxu1 %v3595_v9  ;;  %5815 = vmatmul.mubr.bf16.gmra.mxu0 %v3212_v10  ;;  %v3897_v25 = vcombine.low %v3756_v27, %v3763_v16  ;;  %v4129_v38 = vpack.c.bf16 %v4123_v58, %v4123_v58  ;;  %v4130_v29 = vpack.c.bf16 %v4124_v24, %v4124_v24 }
 0x1eb   : > { %5842 = vmatprep.mubr.msk.bf16.mxu1 %vm6123_vm4, %v6461_v63  ;;  %5857 = vmatpush3.bf16.msra.mxu0 %v6090_v4  ;;  %v3898_v55 = vcombine.low %v3764_v18, %v3779_v5  ;;  %v3899_v12 = vcombine.low %v3786_v46, %v3787_v19  ;;  %v3900_v26 = vcombine.low %v7035_v3, %v3809_v22  ;;  %v6096_v5 = vld [vmem:[%s7290_s8 + $0x238] sm:$0xff]  }
 0x1ec   : > { %5883 = vmatpush3.bf16.msra.mxu1 %v6089_v15  ;;  %5858 = vmatprep.subr.bf16.mxu0 %v6461_v63  ;;  %v3907_v7 = vrot.slane %v3897_v25, %v6496_v41  ;;  %v4146_v30 = vrot.slane %v4128_v11, %v6496_v41  ;;  %v4169_v21 = vrot.slane %v4129_v38, %v6496_v41  ;;  %v6097_v38 = vld [vmem:[%s7290_s8 + $0x230] sm:$0xff]  }
 0x1ed   : > { %5884 = vmatprep.subr.bf16.mxu1 %v6461_v63  ;;  %5862 = vmatprep.mubr.msk.bf16.mxu0 %vm6123_vm4, %v6461_v63  ;;  %v3914_v36 = vrot.slane %v3898_v55, %v6496_v41  ;;  %v3921_v37 = vrot.slane %v3899_v12, %v6496_v41  ;;  %v3928_v40 = vrot.slane %v3900_v26, %v6496_v41 }
 0x1ee   : > { %v4147_v42 = vcombine.high %v4146_v30, %v4146_v30  ;;  %v4154_v49 = vrot.slane %v4146_v30, %v6496_v41  ;;  %v4192_v0 = vrot.slane %v4130_v29, %v6496_v41  ;;  %v3733_v51 = vpack.c.bf16 %v3727_v31, %v3727_v31 }
 0x1ef   : > { %5859 = vmatpush3.bf16.msra.mxu0 %v6092_v44  ;;  %v3929_v50 = vcombine.low %v3907_v7, %v3914_v36  ;;  %v3930_v17 = vcombine.low %v3921_v37, %v3928_v40  ;;  %v3734_v35 = vpack.c.bf16 %v3728_v32, %v3728_v32  ;;  %v4170_v57 = vcombine.high %v4169_v21, %v4169_v21  ;;  %v4520_v40 = vld [vmem:[#allocation2 + $0x12] sm:$0x3f] }
 0x1f0   : > { %5885 = vmatpush3.bf16.msra.mxu1 %v6091_v28  ;;  %5860 = vmatprep.subr.bf16.mxu0 %v6461_v63  ;;  %v4161_v53 = vrot.slane %v4147_v42, %v6496_v41  ;;  %v4162_v54 = vcombine.high %v4154_v49, %v4154_v49  ;;  %v4177_v61 = vrot.slane %v4169_v21, %v6496_v41 }
 0x1f1   : > { %5886 = vmatprep.subr.bf16.mxu1 %v6461_v63  ;;  %v3937_v59 = vrot.slane %v3929_v50, %v6496_v41  ;;  %v3944_v60 = vrot.slane %v3930_v17, %v6496_v41  ;;  %v4193_v10 = vcombine.high %v4192_v0, %v4192_v0  ;;  %v4184_v47 = vrot.slane %v4170_v57, %v6496_v41 }
 0x1f2   : > { %5843 = vmatmul.mubr.bf16.gmra.mxu1 %v3610_v13  ;;  %v7081_v62 = vrot.slane %v4192_v0, %v6496_v41  ;;  %v4295_v2 = vcombine.low %v4154_v49, %v4161_v53  ;;  %v3810_v20 = vcombine.high %v7035_v3, %v7035_v3  ;;  %v4185_v4 = vcombine.high %v4177_v61, %v4177_v61 }
 0x1f3   : > { %5861 = vmatpush3.bf16.msra.mxu0 %v6094_v23  ;;  %5890 = vmatprep.mubr.msk.bf16.mxu1 %vm6123_vm4, %v6461_v63  ;;  %v3945_v27 = vcombine.low %v3937_v59, %v3944_v60  ;;  %v4207_v43 = vrot.slane %v4193_v10, %v6496_v41  ;;  %v4296_v3 = vcombine.low %v4162_v54, %v4177_v61  ;;  %v6098_v23 = vld [vmem:[%s7290_s8 + $0x228] sm:$0xff]  }
 0x1f4   : > { %5887 = vmatpush3.bf16.msra.mxu1 %v6093_v52  ;;  %v4305_v58 = vrot.slane %v4295_v2, %v6496_v41  ;;  %5902 = vmatprep.subr.bf16.mxu0 %v6461_v63  ;;  %v3817_v9 = vrot.slane %v3733_v51, %v6496_v41  ;;  %v4297_v13 = vcombine.low %v4184_v47, %v4185_v4  ;;  %v4521_v47 = vld [vmem:[#allocation2 + $0x1a] sm:$0x3f] }
 0x1f5   : > { %5888 = vmatprep.subr.bf16.mxu1 %v6461_v63  ;;  %v4298_v15 = vcombine.low %v7081_v62, %v4207_v43  ;;  %v3840_v16 = vrot.slane %v3734_v35, %v6496_v41  ;;  %v4131_v18 = vpack.c.bf16 %v4125_v45, %v4125_v45  ;;  %v4312_v46 = vrot.slane %v4296_v3, %v6496_v41  ;;  %v4522_v45 = vld [vmem:[#allocation2 + $0x22] sm:$0x3f] }
 0x1f6   : > { %5863 = vmatmul.mubr.bf16.vlgmr.msra.gmra.mxu0 %v3945_v27  ;;  %v3818_v19 = vcombine.high %v3817_v9, %v3817_v9  ;;  %v3825_v22 = vrot.slane %v3817_v9, %v6496_v41  ;;  %v4132_v24 = vpack.c.bf16 %v4126_v6, %v4126_v6  ;;  %v4319_v25 = vrot.slane %v4297_v13, %v6496_v41 }
 0x1f7   : > { %v4326_v11 = vrot.slane %v4298_v15, %v6496_v41  ;;  %5903 = vmatpush3.bf16.msra.mxu0 %v6096_v5  ;;  %5866 = vmatprep.mubr.msk.bf16.mxu0 %vm6123_vm4, %v6461_v63  ;;  %v3841_v44 = vcombine.high %v3840_v16, %v3840_v16  ;;  %v4327_v55 = vcombine.low %v4305_v58, %v4312_v46  ;;  %v4523_v5 = vld [vmem:[#allocation2 + $0x2a] sm:$0x3f] }
 0x1f8   : > { %5889 = vmatpush3.bf16.msra.mxu1 %v6095_v8  ;;  %5904 = vmatprep.subr.bf16.mxu0 %v6461_v63  ;;  %v3832_v12 = vrot.slane %v3818_v19, %v6496_v41  ;;  %v3833_v26 = vcombine.high %v3825_v22, %v3825_v22  ;;  %v3848_v7 = vrot.slane %v3840_v16, %v6496_v41 }
 0x1f9   : > { %v4328_v28 = vcombine.low %v4319_v25, %v4326_v11  ;;  %v3855_v29 = vrot.slane %v3841_v44, %v6496_v41  ;;  %v3946_v30 = vcombine.low %v3810_v20, %v3825_v22  ;;  %5930 = vmatprep.subr.bf16.mxu1 %v6461_v63  ;;  %v4335_v31 = vrot.slane %v4327_v55, %v6496_v41  ;;  %v6100_v11 = vld [vmem:[%s7290_s8 + $0x218] sm:$0xff]   ;;  %v4524_v55 = vld [vmem:[#allocation2 + $0x32] sm:$0x3f] }
 0x1fa   : > { %v3947_v32 = vcombine.low %v3832_v12, %v3833_v26  ;;  %v4208_v36 = vcombine.high %v7081_v62, %v7081_v62  ;;  %v4215_v37 = vrot.slane %v4131_v18, %v6496_v41  ;;  %v3856_v49 = vcombine.high %v3848_v7, %v3848_v7 }
 0x1fb   : > { %v4342_v42 = vrot.slane %v4328_v28, %v6496_v41  ;;  %5905 = vmatpush3.bf16.msra.mxu0 %v6097_v38  ;;  %v3948_v21 = vcombine.low %v3848_v7, %v3855_v29  ;;  %v3956_v0 = vrot.slane %v3946_v30, %v6496_v41  ;;  %v4238_v35 = vrot.slane %v4132_v24, %v6496_v41 }
 0x1fc   : > { %v3963_v50 = vrot.slane %v3947_v32, %v6496_v41  ;;  %v4216_v17 = vcombine.high %v4215_v37, %v4215_v37  ;;  %v4223_v51 = vrot.slane %v4215_v37, %v6496_v41  ;;  %5906 = vmatprep.subr.bf16.mxu0 %v6461_v63  ;;  %v3949_v53 = vcombine.low %v3856_v49, %v6504_v56  ;;  %v6099_v56 = vld [vmem:[%s7290_s8 + $0x220] sm:$0xff]  }
 0x1fd   : > { %v4343_v52 = vcombine.low %v4335_v31, %v4342_v42  ;;  %v3970_v54 = vrot.slane %v3948_v21, %v6496_v41  ;;  %v4526_v57 = vpack.c.bf16 %v4520_v40, %v4520_v40  ;;  %v4239_v10 = vcombine.high %v4238_v35, %v4238_v35  ;;  %v6101_v42 = vld [vmem:[%s7290_s8 + $0x210] sm:$0xff]  }
 0x1fe   : > { %v3978_v59 = vcombine.low %v3956_v0, %v3963_v50  ;;  %v4230_v60 = vrot.slane %v4216_v17, %v6496_v41  ;;  %v4231_v61 = vcombine.high %v4223_v51, %v4223_v51  ;;  %v3977_v62 = vrot.slane %v3949_v53, %v6496_v41 }
 0x1ff   : > { %5891 = vmatmul.mubr.bf16.vlgmr.msra.gmra.mxu1 %v4343_v52  ;;  %v4246_v2 = vrot.slane %v4238_v35, %v6496_v41  ;;  %v4344_v20 = vcombine.low %v4208_v36, %v4223_v51  ;;  %5907 = vmatpush3.bf16.msra.mxu0 %v6098_v23  ;;  %v4253_v4 = vrot.slane %v4239_v10, %v6496_v41  ;;  %v6102_v10 = vld [vmem:[%s7290_s8 + $0x208] sm:$0xff]  }
 0x200   : > { %5894 = vmatprep.mubr.msk.bf16.mxu1 %vm6123_vm4, %v6461_v63  ;;  %v3986_v27 = vrot.slane %v3978_v59, %v6496_v41  ;;  %v4345_v43 = vcombine.low %v4230_v60, %v4231_v61  ;;  %5908 = vmatprep.subr.bf16.mxu0 %v6461_v63  ;;  %v3979_v6 = vcombine.low %v3970_v54, %v3977_v62 }
 0x201   : > { %v4254_v8 = vcombine.high %v4246_v2, %v4246_v2  ;;  %v4354_v3 = vrot.slane %v4344_v20, %v6496_v41  ;;  %v4527_v58 = vpack.c.bf16 %v4521_v47, %v4521_v47  ;;  %v4346_v9 = vcombine.low %v4246_v2, %v4253_v4 }
 0x202   : > { %v4361_v13 = vrot.slane %v4345_v43, %v6496_v41  ;;  %v4528_v15 = vpack.c.bf16 %v4522_v45, %v4522_v45  ;;  %v4544_v16 = vrot.slane %v4526_v57, %v6496_v41  ;;  %v3993_v18 = vrot.slane %v3979_v6, %v6496_v41 }
 0x203   : > { %v4347_v46 = vcombine.low %v4254_v8, %v6520_v1  ;;  %5909 = vmatpush3.bf16.msra.mxu0 %v6099_v56  ;;  %v4567_v19 = vrot.slane %v4527_v58, %v6496_v41  ;;  %v4529_v22 = vpack.c.bf16 %v4523_v5, %v4523_v5  ;;  %v4368_v24 = vrot.slane %v4346_v9, %v6496_v41 }
 0x204   : > { %v4376_v25 = vcombine.low %v4354_v3, %v4361_v13  ;;  %5910 = vmatprep.subr.bf16.mxu0 %v6461_v63  ;;  %v4545_v38 = vcombine.high %v4544_v16, %v4544_v16  ;;  %v4552_v44 = vrot.slane %v4544_v16, %v6496_v41  ;;  %v3994_v12 = vcombine.low %v3986_v27, %v3993_v18 }
 0x205   : > { %v4375_v1 = vrot.slane %v4347_v46, %v6496_v41  ;;  %v4568_v26 = vcombine.high %v4567_v19, %v4567_v19  ;;  %v4575_v28 = vrot.slane %v4567_v19, %v6496_v41  ;;  %v4590_v31 = vrot.slane %v4528_v15, %v6496_v41 }
 0x206   : > { %v4384_v7 = vrot.slane %v4376_v25, %v6496_v41  ;;  %v4559_v29 = vrot.slane %v4545_v38, %v6496_v41  ;;  %v4560_v30 = vcombine.high %v4552_v44, %v4552_v44  ;;  %5867 = vmatmul.mubr.bf16.gmra.mxu0 %v3994_v12  ;;  %v4530_v40 = vpack.c.bf16 %v4524_v55, %v4524_v55 }
 0x207   : > { %v4377_v32 = vcombine.low %v4368_v24, %v4375_v1  ;;  %v4582_v36 = vrot.slane %v4568_v26, %v6496_v41  ;;  %v4583_v37 = vcombine.high %v4575_v28, %v4575_v28  ;;  %5870 = vmatprep.mubr.msk.bf16.mxu0 %vm6123_vm4, %v6461_v63  ;;  %5911 = vmatpush3.bf16.msra.mxu0 %v6100_v11 }
 0x208   : > { %v4591_v49 = vcombine.high %v4590_v31, %v4590_v31  ;;  %v4598_v21 = vrot.slane %v4590_v31, %v6496_v41  ;;  %v4693_v0 = vcombine.low %v4552_v44, %v4559_v29  ;;  %5912 = vmatprep.subr.bf16.mxu0 %v6461_v63  ;;  %v4694_v50 = vcombine.low %v4560_v30, %v4575_v28  ;;  %v6104_v30 = vld [vmem:[%s7292_s10 + $0x38] sm:$0xff]  }
 0x209   : > { %v4391_v23 = vrot.slane %v4377_v32, %v6496_v41  ;;  %v4695_v17 = vcombine.low %v4582_v36, %v4583_v37  ;;  %v4613_v51 = vrot.slane %v4529_v22, %v6496_v41  ;;  %v4009_v35 = vrot.slane %v4002_v39, %v6496_v41  ;;  %5931 = vmatpush3.bf16.msra.mxu1 %v6104_v30  ;;  %v6105_v36 = vld [vmem:[%s7292_s10 + $0x30] sm:$0xff]  }
 0x20a   : > { %v4605_v52 = vrot.slane %v4591_v49, %v6496_v41  ;;  %v4703_v53 = vrot.slane %v4693_v0, %v6496_v41  ;;  %v4636_v54 = vrot.slane %v4530_v40, %v6496_v41  ;;  %v4710_v59 = vrot.slane %v4694_v50, %v6496_v41  ;;  %5932 = vmatprep.subr.bf16.mxu1 %v6461_v63 }
 0x20b   : > { %v4392_v57 = vcombine.low %v4384_v7, %v4391_v23  ;;  %v4606_v60 = vcombine.high %v4598_v21, %v4598_v21  ;;  %v4614_v61 = vcombine.high %v4613_v51, %v4613_v51  ;;  %5913 = vmatpush3.bf16.msra.mxu0 %v6101_v42  ;;  %v4621_v14 = vrot.slane %v4613_v51, %v6496_v41 }
 0x20c   : > { %v4696_v47 = vcombine.low %v4598_v21, %v4605_v52  ;;  %v4637_v39 = vcombine.high %v4636_v54, %v4636_v54  ;;  %v4644_v62 = vrot.slane %v4636_v54, %v6496_v41  ;;  %5914 = vmatprep.subr.bf16.mxu0 %v6461_v63  ;;  %v4717_v2 = vrot.slane %v4695_v17, %v6496_v41  ;;  %v6106_v21 = vld [vmem:[%s7292_s10 + $0x28] sm:$0xff]   ;;  %v6107_v17 = vld [vmem:[%s7292_s10 + $0x20] sm:$0xff]   ;;  %v6108_v52 = vld [vmem:[%s7292_s10 + $0x18] sm:$0xff]  }
 0x20d   : > { %5895 = vmatmul.mubr.bf16.gmra.mxu1 %v4392_v57  ;;  %v4628_v20 = vrot.slane %v4614_v61, %v6496_v41  ;;  %v4659_v56 = vrot.slane %v4531_v48, %v6496_v41  ;;  %v4629_v27 = vcombine.high %v4621_v14, %v4621_v14  ;;  %v4400_v5 = vrot.slane %v6550_v33, %v6496_v41  ;;  %v6109_v57 = vld [vmem:[%s7292_s10 + $0x10] sm:$0xff]  }
 0x20e   : > { %5898 = vmatprep.mubr.msk.bf16.mxu1 %vm6123_vm4, %v6461_v63  ;;  %v4724_v45 = vrot.slane %v4696_v47, %v6496_v41  ;;  %v4651_v4 = vrot.slane %v4637_v39, %v6496_v41  ;;  %v4652_v43 = vcombine.high %v4644_v62, %v4644_v62  ;;  %5871 = vmatmul.mubr.bf16.gmra.mxu0 %v4009_v35 }
 0x20f   : > { %v4725_v6 = vcombine.low %v4703_v53, %v4710_v59  ;;  %v4667_v8 = vrot.slane %v4659_v56, %v6496_v41  ;;  %5915 = vmatpush3.bf16.msra.mxu0 %v6102_v10  ;;  %5918 = vmatprep.mubr.msk.bf16.mxu0 %vm6123_vm4, %v6461_v63  ;;  %v4743_v3 = vcombine.low %v4628_v20, %v4629_v27 }
 0x210   : > { %v4726_v48 = vcombine.low %v4717_v2, %v4724_v45  ;;  %v4744_v58 = vcombine.low %v4644_v62, %v4651_v4  ;;  %5916 = vmatprep.subr.bf16.mxu0 %v6461_v63  ;;  %v4742_v9 = vcombine.low %v4606_v60, %v4621_v14  ;;  %v4407_v16 = vrot.slane %v4400_v5, %v6496_v41  ;;  %v6110_v14 = vld [vmem:[%s7292_s10 + $0x8] sm:$0xff]   ;;  %v6111_v45 = vld [vmem:[%s7292_s10] sm:$0xff]  }
 0x211   : > { %v4745_v13 = vcombine.low %v4652_v43, %v4667_v8  ;;  %v4733_v18 = vrot.slane %v4725_v6, %v6496_v41  ;;  %v4759_v46 = vrot.slane %v4743_v3, %v6496_v41  ;;  %v4660_v11 = vcombine.high %v4659_v56, %v4659_v56  ;;  %5933 = vmatpush3.bf16.msra.mxu1 %v6105_v36 }
 0x212   : > { %v4740_v33 = vrot.slane %v4726_v48, %v6496_v41  ;;  %v4766_v15 = vrot.slane %v4744_v58, %v6496_v41  ;;  %v4752_v24 = vrot.slane %v4742_v9, %v6496_v41  ;;  %v4675_v12 = vcombine.high %v4667_v8, %v4667_v8  ;;  %5934 = vmatprep.subr.bf16.mxu1 %v6461_v63 }
 0x213   : > { %v4773_v19 = vrot.slane %v4745_v13, %v6496_v41  ;;  %5917 = vmatpush3.bf16.msra.mxu0 %v6103_v34  ;;  %v4674_v55 = vrot.slane %v4660_v11, %v6496_v41 }
 0x214   : > { %v4741_v22 = vcombine.low %v4733_v18, %v4740_v33  ;;  %v4774_v38 = vcombine.low %v4752_v24, %v4759_v46 }
 0x215   : > { %5899 = vmatmul.mubr.bf16.gmra.mxu1 %v4407_v16  ;;  %v4775_v25 = vcombine.low %v4766_v15, %v4773_v19  ;;  %v4791_v28 = vcombine.low %v4674_v55, %v4675_v12 }
 0x216   : > { %5946 = vmatprep.mubr.msk.bf16.mxu1 %vm6123_vm4, %v6461_v63  ;;  %5919 = vmatmul.mubr.bf16.vlgmr.msra.gmra.mxu0 %v4741_v22  ;;  %v4782_v1 = vrot.slane %v4774_v38, %v6496_v41 }
 0x217   : > { %5922 = vmatprep.mubr.msk.bf16.mxu0 %vm6123_vm4, %v6461_v63  ;;  %v4789_v44 = vrot.slane %v4775_v25, %v6496_v41  ;;  %v4798_v7 = vrot.slane %v4791_v28, %v6496_v41  ;;  %5935 = vmatpush3.bf16.msra.mxu1 %v6106_v21 }
 0x218   : > { %5936 = vmatprep.subr.bf16.mxu1 %v6461_v63 }
 0x219   : > { %v4790_v26 = vcombine.low %v4782_v1, %v4789_v44  ;;  %v4805_v29 = vrot.slane %v4798_v7, %v6496_v41 }
 0x21b   : > { %5937 = vmatpush3.bf16.msra.mxu1 %v6107_v17 }
 0x21c   : > { %5938 = vmatprep.subr.bf16.mxu1 %v6461_v63 }
 0x21e   : > { %5923 = vmatmul.mubr.bf16.gmra.mxu0 %v4790_v26 }
 0x21f   : > { %5926 = vmatprep.mubr.msk.bf16.mxu0 %vm6123_vm4, %v6461_v63  ;;  %5939 = vmatpush3.bf16.msra.mxu1 %v6108_v52 }
 0x220   : > { %5940 = vmatprep.subr.bf16.mxu1 %v6461_v63 }
 0x223   : > { %5941 = vmatpush3.bf16.msra.mxu1 %v6109_v57 }
 0x224   : > { %5942 = vmatprep.subr.bf16.mxu1 %v6461_v63 }
 0x226   : > { %5927 = vmatmul.mubr.bf16.gmra.mxu0 %v4805_v29 }
 0x227   : > { %5943 = vmatpush3.bf16.msra.mxu1 %v6110_v14 }
 0x228   : > { %5944 = vmatprep.subr.bf16.mxu1 %v6461_v63 }
 0x22b   : > { %5945 = vmatpush3.bf16.msra.mxu1 %v6111_v45 }
 0x256   : > { %v1889_v31 = vpop.f32.mrf.mxu0 }
 0x257   : > { %v2109_v32 = vpop.f32.mrf.mxu1 }
 0x258   : > { %v2110_v37 = vadd.f32 %v2109_v32, %v1889_v31  ;;  %v5696_v40 = vpop.f32.mrf.mxu0 }
 0x259   : > { %v5724_v42 = vpop.f32.mrf.mxu1 }
 0x25a   : > { %v1892_v49 = vpop.f32.mrf.mxu0 }
 0x25b   : > { %v2112_v41 = vpop.f32.mrf.mxu1 }
 0x25c   : > { %v2113_v0 = vadd.f32 %v2112_v41, %v1892_v49  ;;  %v5697_v23 = vpop.f32.mrf.mxu0 }
 0x25d   : > { %v5725_v50 = vpop.f32.mrf.mxu1 }
 0x25e   : > { %v1897_v51 = vpop.f32.mrf.mxu0 }
 0x260   : > { %v5700_v35 = vpop.f32.mrf.mxu0 }
 0x262   : > { %v1900_v53 = vpop.f32.mrf.mxu0 }
 0x264   : > { %v5701_v54 = vpop.f32.mrf.mxu0 }
 0x266   : > { %v1905_v59 = vpop.f32.mrf.mxu0  ;;  %v2117_v60 = vpop.f32.mrf.mxu1 }
 0x267   : > { %v2118_v61 = vadd.f32 %v2117_v60, %v1897_v51 }
 0x268   : > { %v5704_v10 = vpop.f32.mrf.mxu0  ;;  %v5728_v47 = vpop.f32.mrf.mxu1 }
 0x26a   : > { %v1908_v39 = vpop.f32.mrf.mxu0  ;;  %v2120_v62 = vpop.f32.mrf.mxu1 }
 0x26b   : > { %v2121_v2 = vadd.f32 %v2120_v62, %v1900_v53 }
 0x26c   : > { %v5705_v20 = vpop.f32.mrf.mxu0  ;;  %v5729_v56 = vpop.f32.mrf.mxu1 }
 0x26e   : > { %v2125_v27 = vpop.f32.mrf.mxu1 }
 0x26f   : > { %v2126_v4 = vadd.f32 %v2125_v27, %v1905_v59 }
 0x270   : > { %v5732_v43 = vpop.f32.mrf.mxu1 }
 0x272   : > { %v2128_v5 = vpop.f32.mrf.mxu1 }
 0x274   : > { %v5733_v6 = vpop.f32.mrf.mxu1 }
 0x276   : > { %v2502_v8 = vpop.f32.mrf.mxu0 }
 0x277   : > { %v2524_v34 = vadd.f32 %v2502_v8, %v2110_v37  ;;  %v2900_v48 = vpop.f32.mrf.mxu1 }
 0x278   : > { %v5752_v3 = vpop.f32.mrf.mxu0 }
 0x279   : > { %v7249_v58 = vadd.f32 %v2900_v48, %v2524_v34  ;;  %v5780_v9 = vpop.f32.mrf.mxu1 }
 0x27a   : > { %v2505_v13 = vpop.f32.mrf.mxu0 }
 0x27b   : > { %v2525_v33 = vadd.f32 %v2505_v13, %v2113_v0  ;;  %v2903_v15 = vpop.f32.mrf.mxu1 }
 0x27c   : > { %v5753_v16 = vpop.f32.mrf.mxu0 }
 0x27d   : > { %v7251_v18 = vadd.f32 %v2903_v15, %v2525_v33  ;;  %v5781_v46 = vpop.f32.mrf.mxu1 }
 0x27e   : > { %v2510_v19 = vpop.f32.mrf.mxu0 }
 0x27f   : > { %v2526_v22 = vadd.f32 %v2510_v19, %v2118_v61 }
 0x280   : > { %v5756_v24 = vpop.f32.mrf.mxu0 }
 0x282   : > { %v2513_v25 = vpop.f32.mrf.mxu0 }
 0x283   : > { %v2527_v11 = vadd.f32 %v2513_v25, %v2121_v2 }
 0x284   : > { %v5757_v38 = vpop.f32.mrf.mxu0 }
 0x286   : > { %v2908_v44 = vpop.f32.mrf.mxu1  ;;  %v2518_v55 = vpop.f32.mrf.mxu0 }
 0x287   : > { %v2924_v12 = vadd.f32 %v2908_v44, %v2526_v22  ;;  %v2528_v1 = vadd.f32 %v2518_v55, %v2126_v4 }
 0x288   : > { %v5784_v26 = vpop.f32.mrf.mxu1  ;;  %v5760_v28 = vpop.f32.mrf.mxu0 }
 0x28a   : > { %v2911_v7 = vpop.f32.mrf.mxu1  ;;  %v2521_v29 = vpop.f32.mrf.mxu0 }
 0x28b   : > { %v7253_v30 = vadd.f32 %v2911_v7, %v2527_v11 }
 0x28c   : > { %v5785_v31 = vpop.f32.mrf.mxu1  ;;  %v5761_v32 = vpop.f32.mrf.mxu0 }
 0x28e   : > { %v2916_v36 = vpop.f32.mrf.mxu1 }
 0x28f   : > { %v7255_v37 = vadd.f32 %v2916_v36, %v2528_v1 }
 0x290   : > { %v5788_v40 = vpop.f32.mrf.mxu1 }
 0x292   : > { %v2919_v42 = vpop.f32.mrf.mxu1 }
 0x294   : > { %v5789_v49 = vpop.f32.mrf.mxu1 }
 0x296   : > { %v3298_v41 = vpop.f32.mrf.mxu0 }
 0x297   : > { %v3320_v33 = vadd.f32 %v3298_v41, %v7249_v58 }
 0x298   : > { %v5808_v21 = vpop.f32.mrf.mxu0 }
 0x29a   : > { %v3301_v0 = vpop.f32.mrf.mxu0  ;;  %v3696_v23 = vpop.f32.mrf.mxu1 }
 0x29b   : > { %v3718_v22 = vadd.f32 %v3696_v23, %v3320_v33  ;;  %v3321_v24 = vadd.f32 %v3301_v0, %v7251_v18  ;;  %v5439_v18 = vld [vmem:[%s7291_s9] ss:$0 sm:$0xff] }
 0x29c   : > { %v5809_v50 = vpop.f32.mrf.mxu0  ;;  %v5836_v17 = vpop.f32.mrf.mxu1 }
 0x29e   : > { %v3699_v51 = vpop.f32.mrf.mxu1 }
 0x29f   : > { %v3719_v1 = vadd.f32 %v3699_v51, %v3321_v24 }
 0x2a0   : > { %v5837_v35 = vpop.f32.mrf.mxu1 }
 0x2a2   : > { %v3306_v52 = vpop.f32.mrf.mxu0 }
 0x2a3   : > { %v3322_v26 = vadd.f32 %v3306_v52, %v2924_v12 }
 0x2a4   : > { %v5812_v53 = vpop.f32.mrf.mxu0 }
 0x2a6   : > { %v3309_v54 = vpop.f32.mrf.mxu0 }
 0x2a7   : > { %v3323_v40 = vadd.f32 %v3309_v54, %v7253_v30 }
 0x2a8   : > { %v5813_v57 = vpop.f32.mrf.mxu0 }
 0x2aa   : > { %v3704_v59 = vpop.f32.mrf.mxu1  ;;  %v3314_v60 = vpop.f32.mrf.mxu0 }
 0x2ab   : > { %v3720_v36 = vadd.f32 %v3704_v59, %v3322_v26  ;;  %v3324_v17 = vadd.f32 %v3314_v60, %v7255_v37 }
 0x2ac   : > { %v5840_v61 = vpop.f32.mrf.mxu1  ;;  %v5816_v10 = vpop.f32.mrf.mxu0 }
 0x2ae   : > { %v3707_v47 = vpop.f32.mrf.mxu1  ;;  %v3317_v14 = vpop.f32.mrf.mxu0 }
 0x2af   : > { %v3721_v50 = vadd.f32 %v3707_v47, %v3323_v40 }
 0x2b0   : > { %v5841_v39 = vpop.f32.mrf.mxu1  ;;  %v5817_v62 = vpop.f32.mrf.mxu0 }
 0x2b2   : > { %v3712_v2 = vpop.f32.mrf.mxu1 }
 0x2b3   : > { %v3722_v59 = vadd.f32 %v3712_v2, %v3324_v17 }
 0x2b4   : > { %v5844_v20 = vpop.f32.mrf.mxu1 }
 0x2b6   : > { %v3715_v56 = vpop.f32.mrf.mxu1  ;;  %v4095_v45 = vpop.f32.mrf.mxu0 }
 0x2b7   : > { %v4117_v38 = vadd.f32 %v4095_v45, %v3718_v22 }
 0x2b8   : > { %v5845_v27 = vpop.f32.mrf.mxu1  ;;  %v5864_v4 = vpop.f32.mrf.mxu0 }
 0x2ba   : > { %v4098_v43 = vpop.f32.mrf.mxu0 }
 0x2bb   : > { %v4118_v31 = vadd.f32 %v4098_v43, %v3719_v1 }
 0x2bc   : > { %v5865_v5 = vpop.f32.mrf.mxu0 }
 0x2bf   : > { %v4493_v6 = vpop.f32.mrf.mxu1 }
 0x2c0   : > { %v4515_v29 = vadd.f32 %v4493_v6, %v4117_v38 }
 0x2c1   : > { %v5892_v8 = vpop.f32.mrf.mxu1 }
 0x2c3   : > { %v4496_v34 = vpop.f32.mrf.mxu1 }
 0x2c4   : > { %v4516_v21 = vadd.f32 %v4496_v34, %v4118_v31 }
 0x2c5   : > { %v5893_v48 = vpop.f32.mrf.mxu1 }
 0x2c6   : > { %v4103_v3 = vpop.f32.mrf.mxu0 }
 0x2c7   : > { %v4119_v0 = vadd.f32 %v4103_v3, %v3720_v36 }
 0x2c8   : > { %v5868_v9 = vpop.f32.mrf.mxu0 }
 0x2ca   : > { %v4106_v13 = vpop.f32.mrf.mxu0 }
 0x2cb   : > { %v4120_v57 = vadd.f32 %v4106_v13, %v3721_v50 }
 0x2cc   : > { %v5869_v16 = vpop.f32.mrf.mxu0 }
 0x2cd   : > { %v4501_v15 = vpop.f32.mrf.mxu1 }
 0x2ce   : > { %v4111_v19 = vpop.f32.mrf.mxu0  ;;  %v4517_v53 = vadd.f32 %v4501_v15, %v4119_v0  ;;  %v5440_v15 = vld [vmem:[%s7293_s11] ss:$0 sm:$0xff] }
 0x2cf   : > { %v5896_v46 = vpop.f32.mrf.mxu1  ;;  %v4121_v20 = vadd.f32 %v4111_v19, %v3722_v59 }
 0x2d0   : > { %v5872_v11 = vpop.f32.mrf.mxu0 }
 0x2d1   : > { %v4504_v25 = vpop.f32.mrf.mxu1 }
 0x2d2   : > { %v4114_v55 = vpop.f32.mrf.mxu0  ;;  %v4518_v62 = vadd.f32 %v4504_v25, %v4120_v57 }
 0x2d3   : > { %v5897_v44 = vpop.f32.mrf.mxu1 }
 0x2d4   : > { %v5873_v7 = vpop.f32.mrf.mxu0 }
 0x2d5   : > { %v4509_v28 = vpop.f32.mrf.mxu1 }
 0x2d6   : > { %v4891_v58 = vpop.f32.mrf.mxu0  ;;  %v4519_v60 = vadd.f32 %v4509_v28, %v4121_v20 }
 0x2d7   : > { %v5900_v32 = vpop.f32.mrf.mxu1  ;;  %v4913_v42 = vadd.f32 %v4891_v58, %v4515_v29 }
 0x2d8   : > { %v5920_v41 = vpop.f32.mrf.mxu0 }
 0x2d9   : > { %v4512_v49 = vpop.f32.mrf.mxu1  ;;  %v4925_v51 = vadd.f32 %v5439_v18, %v4913_v42 }
 0x2da   : > { %v4894_v12 = vpop.f32.mrf.mxu0 }
 0x2db   : > { %v5901_v23 = vpop.f32.mrf.mxu1  ;;  %v4914_v35 = vadd.f32 %v4894_v12, %v4516_v21  ;;  %v4930_v61 = vmax.f32 %v4925_v51, 0.0 }
 0x2dc   : > { %v5921_v52 = vpop.f32.mrf.mxu0 }
 0x2dd   : > { %v4926_v30 = vadd.f32 %v5439_v18, %v4914_v35 }
 0x2de   : > { %v4899_v54 = vpop.f32.mrf.mxu0 }
 0x2df   : > { %v4931_v10 = vmax.f32 %v4926_v30, 0.0  ;;  %v4915_v14 = vadd.f32 %v4899_v54, %v4517_v53 }
 0x2e0   : > { %v5924_v39 = vpop.f32.mrf.mxu0 }
 0x2e1   : > { %v4935_v56 = vpack.c.bf16 %v4931_v10, %v4930_v61  ;;  %v4927_v27 = vadd.f32 %v5439_v18, %v4915_v14 }
 0x2e2   : > { %v4902_v45 = vpop.f32.mrf.mxu0 }
 0x2e3   : > { %v4916_v47 = vadd.f32 %v4902_v45, %v4518_v62  ;;  %5947 = vmatmul.mubr.bf16.vlgmr.msra.gmra.mxu1 %v4935_v56  ;;  %v4932_v2 = vmax.f32 %v4927_v27, 0.0 }
 0x2e4   : > { %v5925_v37 = vpop.f32.mrf.mxu0  ;;  %5950 = vmatprep.mubr.msk.bf16.mxu1 %vm6123_vm4, %v6461_v63 }
 0x2e5   : > { %v4928_v4 = vadd.f32 %v5439_v18, %v4916_v47 }
 0x2e6   : > { %v4907_v43 = vpop.f32.mrf.mxu0 }
 0x2e7   : > { %v4933_v5 = vmax.f32 %v4928_v4, 0.0  ;;  %v4917_v6 = vadd.f32 %v4907_v43, %v4519_v60 }
 0x2e8   : > { %v5928_v8 = vpop.f32.mrf.mxu0 }
 0x2e9   : > { %v4929_v34 = vadd.f32 %v5439_v18, %v4917_v6  ;;  %v4936_v48 = vpack.c.bf16 %v4933_v5, %v4932_v2 }
 0x2ea   : > { %v4910_v3 = vpop.f32.mrf.mxu0 }
 0x2eb   : > { %5951 = vmatmul.mubr.bf16.gmra.mxu1 %v4936_v48  ;;  %v4934_v13 = vmax.f32 %v4929_v34, 0.0 }
 0x2ec   : > { %v5929_v9 = vpop.f32.mrf.mxu0  ;;  %5954 = vmatprep.mubr.msk.bf16.mxu1 %vm6123_vm4, %v6461_v63 }
 0x2ed   : > { %v4937_v33 = vpack.c.bf16 %v4934_v13, %v4934_v13 }
 0x2f3   : > { %5955 = vmatmul.mubr.bf16.gmra.mxu1 %v4937_v33 }
 0x3a3   : > { %v5043_v16 = vpop.f32.mrf.mxu1 }
 0x3a4   : > { %v5044_v46 = vadd.f32 %v5440_v15, %v5043_v16 }
 0x3a5   : > { %v5948_v19 = vpop.f32.mrf.mxu1 }
 0x3a6   : > { %v5457_v22 = vpack.c.bf16 %v5044_v46, %v5044_v46 }
 0x3a7   : > { %v5046_v24 = vpop.f32.mrf.mxu1 }
 0x3a8   : > { %5087 = vst.msk [vmem:[%s447_s28] sm:$0xf] %vm5086_vm7, %v5457_v22  ;;  %v5047_v63 = vadd.f32 %v5440_v15, %v5046_v24 }
 0x3a9   : > { %v5949_v25 = vpop.f32.mrf.mxu1 }
 0x3aa   : > { %v5458_v11 = vpack.c.bf16 %v5047_v63, %v5047_v63 }
 0x3ab   : > { %v5051_v38 = vpop.f32.mrf.mxu1 }
 0x3ac   : > { %5088 = vst.msk [vmem:[%s447_s28 + $0x4] sm:$0xf] %vm5086_vm7, %v5458_v11  ;;  %v5052_v44 = vadd.f32 %v5440_v15, %v5051_v38 }
 0x3ad   : > { %v5952_v55 = vpop.f32.mrf.mxu1 }
 0x3ae   : > { %v5459_v1 = vpack.c.bf16 %v5052_v44, %v5052_v44 }
 0x3af   : > { %v5054_v26 = vpop.f32.mrf.mxu1 }
 0x3b0   : > { %5089 = vst.msk [vmem:[%s447_s28 + $0x8] sm:$0xf] %vm5086_vm7, %v5459_v1  ;;  %v5055_v28 = vadd.f32 %v5440_v15, %v5054_v26 }
 0x3b1   : > { %v5953_v7 = vpop.f32.mrf.mxu1 }
 0x3b2   : > { %v5460_v29 = vpack.c.bf16 %v5055_v28, %v5055_v28 }
 0x3b3   : > { %v5059_v31 = vpop.f32.mrf.mxu1 }
 0x3b4   : > { %5090 = vst.msk [vmem:[%s447_s28 + $0xc] sm:$0xf] %vm5086_vm7, %v5460_v29  ;;  %v5060_v32 = vadd.f32 %v5440_v15, %v5059_v31 }
 0x3b5   : > { %v5956_v58 = vpop.f32.mrf.mxu1 }
 0x3b6   : > { %v5461_v36 = vpack.c.bf16 %v5060_v32, %v5060_v32 }
 0x3b7   : > { %v5062_v40 = vpop.f32.mrf.mxu1 }
 0x3b8   : > { %5092 = vst.msk [vmem:[%s447_s28 + $0x10] sm:$0x3] %vm5091_vm8, %v5461_v36 }
 0x3b9   : > { %v5957_v42 = vpop.f32.mrf.mxu1 }
 0x3ba PF: > { %s22_s21 = sadd.s32 1, %s6119_s21  }
 0x3bb   : > { %p19_p4 = scmp.ge.s32.totalorder %s22_s21, 4  }
 0x3bd   :  { %21 = sbr.rel (!%p19_p4) target bundleno = 1 (0x1), region = 114 }

</bundles_post_ra>
